<compile_context>
chip_gen: v6e
topology: v6e:2x2x1
jax: 0.10.0
libtpu: 0.0.40
codegen_flags: <defaults>
</compile_context>

<pallas_src>
import jax
import jax.numpy as jnp
from jax import lax
from jax.experimental import pallas as pl
from jax.experimental.pallas import tpu as pltpu

BN_EPS = 1e-5
_LANE = 128


def _round_up(x, m):
    return ((x + m - 1) // m) * m


def _detect_vmem_limit_bytes():
    # Generation-aware scoped-VMEM limit: ~capacity - 16 MiB, capped at 100 MiB
    # (v5e/v6e: 128 MiB physical -> 100 MiB; v7x: 64 MiB physical -> 48 MiB).
    try:
        get_info = getattr(pltpu, "get_tpu_info", None)
        if get_info is not None:
            info = get_info()
            cap = (getattr(info, "vmem_capacity_bytes", None)
                   or getattr(info, "vmem_size_bytes", None))
            if cap:
                return int(max(32 << 20, min(int(cap) - (16 << 20), 100 << 20)))
    except Exception:
        pass
    return 48 << 20  # safe fallback on every generation (v7x has 64 MiB VMEM)


_VMEM_LIMIT_BYTES = _detect_vmem_limit_bytes()


def _compiler_params():
    cls = (getattr(pltpu, "CompilerParams", None)
           or getattr(pltpu, "TPUCompilerParams", None))
    return cls(dimension_semantics=("parallel",),
               vmem_limit_bytes=_VMEM_LIMIT_BYTES)


def _pallas_call(kernel, *, flops, bytes_accessed, **kwargs):
    if hasattr(pl, "CostEstimate"):
        kwargs["cost_estimate"] = pl.CostEstimate(
            flops=int(flops), transcendentals=0,
            bytes_accessed=int(bytes_accessed))
    return pl.pallas_call(kernel, compiler_params=_compiler_params(), **kwargs)


# --------------------------------------------------------------------------
# Stage 1: conv1 + bias + ReLU  ->  halo-padded bf16 z1  + BN1 statistics
# --------------------------------------------------------------------------
def _conv1_stage(patches, w1, b1, H, W, Cp):
    """patches: (N, Hp*Wp, 9*Cin) bf16 im2col over the *padded* output grid.
    w1: (9*Cin, Cp) bf16, b1: (1, Cp) f32.
    Returns z1p (N, Hp, Wp, Cp) bf16 with an exact zero 1-px halo ring, plus
    per-image per-channel sum / sum-of-squares (N, 1, Cp) f32."""
    N, HpWp, K = patches.shape
    Hp, Wp = H + 2, W + 2
    assert HpWp == Hp * Wp

    def kernel(p_ref, w_ref, b_ref, z_ref, sum_ref, ssq_ref):
        acc = jnp.dot(p_ref[0], w_ref[...],
                      preferred_element_type=jnp.float32)          # (Hp*Wp, Cp)
        z = jnp.maximum(acc + b_ref[...], 0.0).reshape(Hp, Wp, Cp)
        # Zero the halo ring: those rows ARE conv2's zero padding and must not
        # contribute to the BN statistics (cheap VPU work, off the MXU path).
        hh = lax.broadcasted_iota(jnp.int32, (Hp, Wp, Cp), 0)
        ww = lax.broadcasted_iota(jnp.int32, (Hp, Wp, Cp), 1)
        interior = ((hh >= 1) & (hh <= H)) & ((ww >= 1) & (ww <= W))
        z = jnp.where(interior, z, 0.0)
        zs = z.reshape(Hp * Wp, Cp)
        sum_ref[0] = jnp.sum(zs, axis=0, keepdims=True)
        ssq_ref[0] = jnp.sum(zs * zs, axis=0, keepdims=True)
        z_ref[0] = z.astype(jnp.bfloat16)                          # bf16 intermediate

    out_shape = (jax.ShapeDtypeStruct((N, Hp, Wp, Cp), jnp.bfloat16),
                 jax.ShapeDtypeStruct((N, 1, Cp), jnp.float32),
                 jax.ShapeDtypeStruct((N, 1, Cp), jnp.float32))
    out_specs = (pl.BlockSpec((1, Hp, Wp, Cp), lambda n: (n, 0, 0, 0)),
                 pl.BlockSpec((1, 1, Cp), lambda n: (n, 0, 0)),
                 pl.BlockSpec((1, 1, Cp), lambda n: (n, 0, 0)))
    in_specs = [pl.BlockSpec((1, HpWp, K), lambda n: (n, 0, 0)),
                pl.BlockSpec((K, Cp), lambda n: (0, 0)),
                pl.BlockSpec((1, Cp), lambda n: (0, 0))]
    flops = 2 * N * HpWp * K * Cp
    bytes_accessed = (patches.size * 2 + w1.size * 2 + b1.size * 4
                      + N * Hp * Wp * Cp * 2 + 2 * N * Cp * 4)
    return _pallas_call(kernel, flops=flops, bytes_accessed=bytes_accessed,
                        grid=(N,), in_specs=in_specs, out_specs=out_specs,
                        out_shape=out_shape)(patches, w1, b1)


# --------------------------------------------------------------------------
# Stage 2: BN1(folded) + conv2 + bias + ReLU  ->  bf16 z2  + BN2 statistics
# --------------------------------------------------------------------------
def _conv2_stage(z1p, w2, biasmap, H, W):
    """z1p: (N, Hp, Wp, Cp) bf16 halo-padded activations from stage 1.
    w2: (9*Cp, Cp) bf16 with the BN1 scale folded in per input channel.
    biasmap: (H*W, Cp) f32 = conv2(BN1-shift over the interior) + conv2 bias.
    Returns z2 (N, H, W, Cp) bf16 and per-image sum / sum-of-squares."""
    N, Hp, Wp, Cp = z1p.shape
    HW = H * W

    def kernel(x_ref, w_ref, bias_ref, z_ref, sum_ref, ssq_ref):
        # One upcast of the tile; the 9 shifted tap slices are taken in f32
        # (cheap), then cast back to bf16 for the lane-aligned im2col concat.
        x = x_ref[0].astype(jnp.float32)                           # (Hp, Wp, Cp)
        cols = []
        for kh in range(3):
            for kw in range(3):
                cols.append(x[kh:kh + H, kw:kw + W, :]
                            .reshape(HW, Cp).astype(jnp.bfloat16))
        patch = jnp.concatenate(cols, axis=-1)                     # (HW, 9*Cp)
        acc = jnp.dot(patch, w_ref[...],
                      preferred_element_type=jnp.float32)          # deep-K dot
        z = jnp.maximum(acc + bias_ref[...], 0.0)                  # (HW, Cp)
        sum_ref[0] = jnp.sum(z, axis=0, keepdims=True)
        ssq_ref[0] = jnp.sum(z * z, axis=0, keepdims=True)
        z_ref[0] = z.reshape(H, W, Cp).astype(jnp.bfloat16)

    out_shape = (jax.ShapeDtypeStruct((N, H, W, Cp), jnp.bfloat16),
                 jax.ShapeDtypeStruct((N, 1, Cp), jnp.float32),
                 jax.ShapeDtypeStruct((N, 1, Cp), jnp.float32))
    out_specs = (pl.BlockSpec((1, H, W, Cp), lambda n: (n, 0, 0, 0)),
                 pl.BlockSpec((1, 1, Cp), lambda n: (n, 0, 0)),
                 pl.BlockSpec((1, 1, Cp), lambda n: (n, 0, 0)))
    in_specs = [pl.BlockSpec((1, Hp, Wp, Cp), lambda n: (n, 0, 0, 0)),
                pl.BlockSpec((9 * Cp, Cp), lambda n: (0, 0)),
                pl.BlockSpec((HW, Cp), lambda n: (0, 0))]
    flops = 2 * N * HW * 9 * Cp * Cp
    bytes_accessed = (z1p.size * 2 + w2.size * 2 + biasmap.size * 4
                      + N * HW * Cp * 2 + 2 * N * Cp * 4)
    return _pallas_call(kernel, flops=flops, bytes_accessed=bytes_accessed,
                        grid=(N,), in_specs=in_specs, out_specs=out_specs,
                        out_shape=out_shape)(z1p, w2, biasmap)


# --------------------------------------------------------------------------
# BN2 apply fused with the channel un-pad (only the real Cout channels stored)
# --------------------------------------------------------------------------
def _bn_apply_unpad(z2, scale, shift, Cout):
    N, H, W, Cp = z2.shape

    def kernel(z_ref, sc_ref, sh_ref, o_ref):
        z = z_ref[0].astype(jnp.float32)[:, :, :Cout]              # (H, W, Cout)
        o_ref[0] = (z * sc_ref[...].reshape(1, 1, Cout)
                    + sh_ref[...].reshape(1, 1, Cout))

    flops = 2 * N * H * W * Cout
    bytes_accessed = z2.size * 2 + N * H * W * Cout * 4 + 2 * Cout * 4
    return _pallas_call(
        kernel, flops=flops, bytes_accessed=bytes_accessed,
        grid=(N,),
        in_specs=[pl.BlockSpec((1, H, W, Cp), lambda n: (n, 0, 0, 0)),
                  pl.BlockSpec((1, Cout), lambda n: (0, 0)),
                  pl.BlockSpec((1, Cout), lambda n: (0, 0))],
        out_specs=pl.BlockSpec((1, H, W, Cout), lambda n: (n, 0, 0, 0)),
        out_shape=jax.ShapeDtypeStruct((N, H, W, Cout), jnp.float32),
    )(z2, scale, shift)


# --------------------------------------------------------------------------
# Host-side (tiny) helpers
# --------------------------------------------------------------------------
def _bn_scale_shift(sums, ssqs, count, gamma, beta):
    # TODO(synk): E[x^2]-E[x]^2 in f32 can lose precision for very large
    #             batches / feature maps; use a compensated pass if needed.
    s = jnp.sum(sums, axis=0).reshape(-1)                  # (Cp,)
    q = jnp.sum(ssqs, axis=0).reshape(-1)
    mean = s / count
    var = jnp.maximum(q / count - mean * mean, 0.0)        # biased var (train)
    scale = gamma * lax.rsqrt(var + BN_EPS)
    shift = beta - mean * scale
    return scale, shift


def _prep_w1(w_oihw, cp):
    """(Cout, Cin, 3, 3) -> (9*Cin, Cp) bf16; row = (kh*3+kw)*Cin + cin."""
    co, ci = w_oihw.shape[0], w_oihw.shape[1]
    w = jnp.transpose(w_oihw, (2, 3, 1, 0)).reshape(9 * ci, co)
    return jnp.pad(w, ((0, 0), (0, cp - co))).astype(jnp.bfloat16)


def _prep_w2(w_oihw, cp):
    """(Cout, Cout, 3, 3) -> (9*Cp, Cp) f32 (BN1 scale is folded in later)."""
    co, ci = w_oihw.shape[0], w_oihw.shape[1]
    w = jnp.transpose(w_oihw, (2, 3, 1, 0))                        # (3,3,ci,co)
    w = jnp.pad(w, ((0, 0), (0, 0), (0, cp - ci), (0, cp - co)))
    return w.reshape(9 * cp, cp).astype(jnp.float32)


def _pad_vec(v, cp):
    v = v.astype(jnp.float32).reshape(-1)
    return jnp.pad(v, (0, cp - v.shape[0]))


def _conv2_biasmap(w2_oihw, b2, shift1_real, H, W, Cp):
    """Additive map folding BN1's shift (and conv2's bias) into conv2.

    The shift term of conv2 applied to the zero-padded BN1 output is
    sum_{taps inside the image} w2[tap, cin, :] * shift1[cin]; it only varies
    near the border, so compute it once (tiny XLA conv) and add it to the
    conv2 accumulator inside the kernel."""
    Cout = w2_oihw.shape[0]
    img = jnp.broadcast_to(shift1_real.reshape(1, Cout, 1, 1),
                           (1, Cout, H, W)).astype(jnp.float32)
    sc = lax.conv_general_dilated(
        img, w2_oihw.astype(jnp.float32), (1, 1), ((1, 1), (1, 1)),
        dimension_numbers=("NCHW", "OIHW", "NCHW"),
        precision=lax.Precision.HIGHEST)                           # (1,Cout,H,W)
    bm = jnp.transpose(sc[0], (1, 2, 0)) + b2.reshape(1, 1, Cout)  # (H,W,Cout)
    bm = jnp.pad(bm, ((0, 0), (0, 0), (0, Cp - Cout)))
    return bm.reshape(H * W, Cp).astype(jnp.float32)


# --------------------------------------------------------------------------
# ConvBlock forward
# --------------------------------------------------------------------------
def conv_block_forward(x_nchw, params):
    """conv1 -> ReLU -> BN -> conv2 -> ReLU -> BN (training-mode batch stats,
    shared gamma/beta as in the PyTorch module's single nn.BatchNorm2d).
    x_nchw: (N, Cin, H, W) f32 -> (N, Cout, H, W) f32."""
    N, Cin, H, W = x_nchw.shape
    Hp, Wp = H + 2, W + 2
    Cout = params["w1"].shape[0]
    Cp = _round_up(max(Cout, _LANE), _LANE)        # lane-dense channel padding
    count = N * H * W

    w1 = _prep_w1(params["w1"], Cp)                # (9*Cin, Cp) bf16
    b1 = _pad_vec(params["b1"], Cp).reshape(1, Cp)
    w2_mat = _prep_w2(params["w2"], Cp)            # (9*Cp, Cp) f32
    gamma = _pad_vec(params["gamma"], Cp)
    beta = _pad_vec(params["beta"], Cp)

    # Stage 1. im2col for conv1 is done in the wrapper: 9*Cin is tiny, so the
    # extra HBM traffic is negligible and the kernel gets one deep-K MXU dot.
    x = jnp.transpose(x_nchw, (0, 2, 3, 1)).astype(jnp.float32)    # NHWC
    xpp = jnp.pad(x, ((0, 0), (2, 2), (2, 2), (0, 0)))             # 2-px pad
    cols = [xpp[:, kh:kh + Hp, kw:kw + Wp, :]
            for kh in range(3) for kw in range(3)]
    patches = (jnp.concatenate(cols, axis=-1)
               .reshape(N, Hp * Wp, 9 * Cin).astype(jnp.bfloat16))

    z1p, s1, q1 = _conv1_stage(patches, w1, b1, H, W, Cp)
    scale1, shift1 = _bn_scale_shift(s1, q1, count, gamma, beta)

    # Fold BN1 into conv2: scale -> weights, shift -> additive map.
    w2 = (w2_mat * jnp.tile(scale1, 9)[:, None]).astype(jnp.bfloat16)
    biasmap2 = _conv2_biasmap(params["w2"], params["b2"], shift1[:Cout],
                              H, W, Cp)

    # Stage 2.
    z2, s2, q2 = _conv2_stage(z1p, w2, biasmap2, H, W)
    scale2, shift2 = _bn_scale_shift(s2, q2, count, gamma, beta)

    # BN2 apply + channel un-pad (Pallas); NHWC -> NCHW of the small tensor (XLA).
    y = _bn_apply_unpad(z2, scale2[:Cout].reshape(1, Cout),
                        shift2[:Cout].reshape(1, Cout), Cout)
    return jnp.transpose(y, (0, 3, 1, 2))


def init_params(key, in_channels, out_channels):
    k1, k2, k3, k4, k5, k6 = jax.random.split(key, 6)
    fan1 = in_channels * 9
    fan2 = out_channels * 9
    return {
        "w1": jax.random.normal(k1, (out_channels, in_channels, 3, 3),
                                jnp.float32) * (1.0 / fan1) ** 0.5,
        "b1": jax.random.uniform(k2, (out_channels,), jnp.float32, -0.1, 0.1),
        "w2": jax.random.normal(k3, (out_channels, out_channels, 3, 3),
                                jnp.float32) * (1.0 / fan2) ** 0.5,
        "b2": jax.random.uniform(k4, (out_channels,), jnp.float32, -0.1, 0.1),
        # BatchNorm2d affine params (shared between the two BN applications).
        "gamma": jnp.ones((out_channels,), jnp.float32)
                 + 0.01 * jax.random.normal(k5, (out_channels,), jnp.float32),
        "beta": 0.01 * jax.random.normal(k6, (out_channels,), jnp.float32),
    }


def _reference_forward(x_nchw, params):
    """Pure-JAX/XLA f32 reference of the PyTorch ConvBlock forward (train mode)."""
    def conv(x, w, b):
        y = lax.conv_general_dilated(
            x, w, window_strides=(1, 1), padding=((1, 1), (1, 1)),
            dimension_numbers=("NCHW", "OIHW", "NCHW"),
            precision=lax.Precision.HIGHEST)
        return y + b.reshape(1, -1, 1, 1)

    def bn(x, gamma, beta):
        mean = jnp.mean(x, axis=(0, 2, 3), keepdims=True)
        var = jnp.mean(jnp.square(x - mean), axis=(0, 2, 3), keepdims=True)
        return ((x - mean) * lax.rsqrt(var + BN_EPS) * gamma.reshape(1, -1, 1, 1)
                + beta.reshape(1, -1, 1, 1))

    x = bn(jnp.maximum(conv(x_nchw, params["w1"], params["b1"]), 0.0),
           params["gamma"], params["beta"])
    x = bn(jnp.maximum(conv(x, params["w2"], params["b2"]), 0.0),
           params["gamma"], params["beta"])
    return x


if __name__ == "__main__":
    key = jax.random.PRNGKey(0)
    kx, kp = jax.random.split(key)

    N, Cin, Cout, H, W = 2, 4, 8, 16, 16
    x = jax.random.normal(kx, (N, Cin, H, W), jnp.float32)
    params = init_params(kp, Cin, Cout)

    out = jax.jit(conv_block_forward)(x, params)
    out = jax.block_until_ready(out)

    assert out.shape == (N, Cout, H, W), out.shape
    assert out.dtype == jnp.float32
    assert bool(jnp.all(jnp.isfinite(out)))

    # Loose self-check vs. the f32 XLA reference (the Pallas path uses bf16
    # MXU operands and bf16 inter-stage activations, so allow ~1e-1 absolute
    # slack on O(1) normalized values).
    ref = _reference_forward(x, params)
    max_err = float(jnp.max(jnp.abs(out - ref)))
    assert max_err < 1.5e-1, max_err

    print("KERNEL_OK")
</pallas_src>

<mosaic_0001>
module attributes {stable_mosaic.version = 11 : i64} {
  func.func @kernel(%arg0: i32, %arg1: memref<1x324x36xbf16, #tpu.memory_space<vmem>>, %arg2: memref<36x128xbf16, #tpu.memory_space<vmem>>, %arg3: memref<1x128xf32, #tpu.memory_space<vmem>>, %arg4: memref<1x18x18x128xbf16, #tpu.memory_space<vmem>>, %arg5: memref<1x1x128xf32, #tpu.memory_space<vmem>>, %arg6: memref<1x1x128xf32, #tpu.memory_space<vmem>>) attributes {dimension_semantics = [#tpu.dimension_semantics<parallel>], iteration_bounds = array<i64: 2>, scalar_prefetch = 0 : i64, scratch_operands = 0 : i64, tpu.core_type = #tpu.core_type<tc>, window_params = [{transform_indices = @transform_0, window_bounds = array<i64: 1, 324, 36>}, {pipeline_mode = #tpu.pipeline_mode<synchronous>, transform_indices = @transform_1, window_bounds = array<i64: 36, 128>}, {pipeline_mode = #tpu.pipeline_mode<synchronous>, transform_indices = @transform_2, window_bounds = array<i64: 1, 128>}, {transform_indices = @transform_3, window_bounds = array<i64: 1, 18, 18, 128>}, {transform_indices = @transform_4, window_bounds = array<i64: 1, 1, 128>}, {transform_indices = @transform_5, window_bounds = array<i64: 1, 1, 128>}]} {
    %c0 = arith.constant 0 : index
    %c0_0 = arith.constant 0 : index
    %c0_1 = arith.constant 0 : index
    %0 = vector.load %arg1[%c0, %c0_0, %c0_1] : memref<1x324x36xbf16, #tpu.memory_space<vmem>>, vector<1x324x36xbf16>
    %1 = vector.shape_cast %0 : vector<1x324x36xbf16> to vector<324x36xbf16>
    %c0_2 = arith.constant 0 : index
    %c0_3 = arith.constant 0 : index
    %2 = vector.load %arg2[%c0_2, %c0_3] : memref<36x128xbf16, #tpu.memory_space<vmem>>, vector<36x128xbf16>
    %cst = arith.constant dense<0.000000e+00> : vector<324x128xf32>
    %3 = tpu.matmul %1, %2, %cst {dimension_numbers = #tpu.dot_dimension_numbers<[1], [0], [0], [1], [0, 0, 1, 1], [], []>} : vector<324x36xbf16>, vector<36x128xbf16>, vector<324x128xf32> -> vector<324x128xf32>
    %c0_4 = arith.constant 0 : index
    %c0_5 = arith.constant 0 : index
    %4 = vector.load %arg3[%c0_4, %c0_5] : memref<1x128xf32, #tpu.memory_space<vmem>>, vector<1x128xf32>
    %5 = vector.broadcast %4 : vector<1x128xf32> to vector<324x128xf32>
    %6 = arith.addf %3, %5 : vector<324x128xf32>
    %cst_6 = arith.constant 0.000000e+00 : f32
    %7 = vector.broadcast %cst_6 : f32 to vector<324x128xf32>
    %8 = arith.maximumf %6, %7 : vector<324x128xf32>
    %9 = vector.shape_cast %8 : vector<324x128xf32> to vector<18x18x128xf32>
    %10 = tpu.iota {dimensions = array<i32: 0>} : vector<18x18x128xi32>
    %11 = tpu.iota {dimensions = array<i32: 1>} : vector<18x18x128xi32>
    %c1_i32 = arith.constant 1 : i32
    %12 = vector.broadcast %c1_i32 : i32 to vector<18x18x128xi32>
    %13 = arith.cmpi sge, %10, %12 : vector<18x18x128xi32>
    %c16_i32 = arith.constant 16 : i32
    %14 = vector.broadcast %c16_i32 : i32 to vector<18x18x128xi32>
    %15 = arith.cmpi sle, %10, %14 : vector<18x18x128xi32>
    %16 = arith.andi %13, %15 : vector<18x18x128xi1>
    %c1_i32_7 = arith.constant 1 : i32
    %17 = vector.broadcast %c1_i32_7 : i32 to vector<18x18x128xi32>
    %18 = arith.cmpi sge, %11, %17 : vector<18x18x128xi32>
    %c16_i32_8 = arith.constant 16 : i32
    %19 = vector.broadcast %c16_i32_8 : i32 to vector<18x18x128xi32>
    %20 = arith.cmpi sle, %11, %19 : vector<18x18x128xi32>
    %21 = arith.andi %18, %20 : vector<18x18x128xi1>
    %22 = arith.andi %16, %21 : vector<18x18x128xi1>
    %cst_9 = arith.constant 0.000000e+00 : f32
    %23 = vector.broadcast %cst_9 : f32 to vector<18x18x128xf32>
    %24 = arith.select %22, %9, %23 : vector<18x18x128xi1>, vector<18x18x128xf32>
    %25 = vector.shape_cast %24 : vector<18x18x128xf32> to vector<324x128xf32>
    %cst_10 = arith.constant dense<0.000000e+00> : vector<128xf32>
    %26 = vector.multi_reduction <add>, %25, %cst_10 [0] : vector<324x128xf32> to vector<128xf32>
    %27 = vector.shape_cast %26 : vector<128xf32> to vector<1x128xf32>
    %c0_11 = arith.constant 0 : index
    %c0_12 = arith.constant 0 : index
    %c0_13 = arith.constant 0 : index
    %28 = vector.load %arg5[%c0_11, %c0_12, %c0_13] : memref<1x1x128xf32, #tpu.memory_space<vmem>>, vector<1x1x128xf32>
    %29 = vector.shape_cast %28 : vector<1x1x128xf32> to vector<1x128xf32>
    %30 = vector.shape_cast %27 : vector<1x128xf32> to vector<1x1x128xf32>
    tpu.vector_store %arg5[%c0_11, %c0_12, %c0_13], %30 {strides = array<i32>} : memref<1x1x128xf32, #tpu.memory_space<vmem>>, vector<1x1x128xf32>,
    %31 = arith.mulf %25, %25 : vector<324x128xf32>
    %cst_14 = arith.constant dense<0.000000e+00> : vector<128xf32>
    %32 = vector.multi_reduction <add>, %31, %cst_14 [0] : vector<324x128xf32> to vector<128xf32>
    %33 = vector.shape_cast %32 : vector<128xf32> to vector<1x128xf32>
    %c0_15 = arith.constant 0 : index
    %c0_16 = arith.constant 0 : index
    %c0_17 = arith.constant 0 : index
    %34 = vector.load %arg6[%c0_15, %c0_16, %c0_17] : memref<1x1x128xf32, #tpu.memory_space<vmem>>, vector<1x1x128xf32>
    %35 = vector.shape_cast %34 : vector<1x1x128xf32> to vector<1x128xf32>
    %36 = vector.shape_cast %33 : vector<1x128xf32> to vector<1x1x128xf32>
    tpu.vector_store %arg6[%c0_15, %c0_16, %c0_17], %36 {strides = array<i32>} : memref<1x1x128xf32, #tpu.memory_space<vmem>>, vector<1x1x128xf32>,
    %37 = arith.truncf %24 : vector<18x18x128xf32> to vector<18x18x128xbf16>
    %c0_18 = arith.constant 0 : index
    %c0_19 = arith.constant 0 : index
    %c0_20 = arith.constant 0 : index
    %c0_21 = arith.constant 0 : index
    %38 = vector.load %arg4[%c0_18, %c0_19, %c0_20, %c0_21] : memref<1x18x18x128xbf16, #tpu.memory_space<vmem>>, vector<1x18x18x128xbf16>
    %39 = vector.shape_cast %38 : vector<1x18x18x128xbf16> to vector<18x18x128xbf16>
    %40 = vector.shape_cast %37 : vector<18x18x128xbf16> to vector<1x18x18x128xbf16>
    tpu.vector_store %arg4[%c0_18, %c0_19, %c0_20, %c0_21], %40 {strides = array<i32>} : memref<1x18x18x128xbf16, #tpu.memory_space<vmem>>, vector<1x18x18x128xbf16>,
    return
  }
  func.func @transform_0(%arg0: i32) -> (i32, i32, i32) {
    %c0_i32 = arith.constant 0 : i32
    %c0_i32_0 = arith.constant 0 : i32
    %c0_i32_1 = arith.constant 0 : i32
    return %arg0, %c0_i32, %c0_i32_0 : i32, i32, i32
  }
  func.func @transform_1(%arg0: i32) -> (i32, i32) {
    %c0_i32 = arith.constant 0 : i32
    %c0_i32_0 = arith.constant 0 : i32
    %c0_i32_1 = arith.constant 0 : i32
    return %c0_i32, %c0_i32_0 : i32, i32
  }
  func.func @transform_2(%arg0: i32) -> (i32, i32) {
    %c0_i32 = arith.constant 0 : i32
    %c0_i32_0 = arith.constant 0 : i32
    %c0_i32_1 = arith.constant 0 : i32
    return %c0_i32, %c0_i32_0 : i32, i32
  }
  func.func @transform_3(%arg0: i32) -> (i32, i32, i32, i32) {
    %c0_i32 = arith.constant 0 : i32
    %c0_i32_0 = arith.constant 0 : i32
    %c0_i32_1 = arith.constant 0 : i32
    %c0_i32_2 = arith.constant 0 : i32
    return %arg0, %c0_i32, %c0_i32_0, %c0_i32_1 : i32, i32, i32, i32
  }
  func.func @transform_4(%arg0: i32) -> (i32, i32, i32) {
    %c0_i32 = arith.constant 0 : i32
    %c0_i32_0 = arith.constant 0 : i32
    %c0_i32_1 = arith.constant 0 : i32
    return %arg0, %c0_i32, %c0_i32_0 : i32, i32, i32
  }
  func.func @transform_5(%arg0: i32) -> (i32, i32, i32) {
    %c0_i32 = arith.constant 0 : i32
    %c0_i32_0 = arith.constant 0 : i32
    %c0_i32_1 = arith.constant 0 : i32
    return %arg0, %c0_i32, %c0_i32_0 : i32, i32, i32
  }
}

module attributes {stable_mosaic.version = 11 : i64} {
  func.func @kernel(%arg0: i32, %arg1: memref<1x18x18x128xbf16, #tpu.memory_space<vmem>>, %arg2: memref<1152x128xbf16, #tpu.memory_space<vmem>>, %arg3: memref<256x128xf32, #tpu.memory_space<vmem>>, %arg4: memref<1x16x16x128xbf16, #tpu.memory_space<vmem>>, %arg5: memref<1x1x128xf32, #tpu.memory_space<vmem>>, %arg6: memref<1x1x128xf32, #tpu.memory_space<vmem>>) attributes {dimension_semantics = [#tpu.dimension_semantics<parallel>], iteration_bounds = array<i64: 2>, scalar_prefetch = 0 : i64, scratch_operands = 0 : i64, tpu.core_type = #tpu.core_type<tc>, window_params = [{transform_indices = @transform_0, window_bounds = array<i64: 1, 18, 18, 128>}, {pipeline_mode = #tpu.pipeline_mode<synchronous>, transform_indices = @transform_1, window_bounds = array<i64: 1152, 128>}, {pipeline_mode = #tpu.pipeline_mode<synchronous>, transform_indices = @transform_2, window_bounds = array<i64: 256, 128>}, {transform_indices = @transform_3, window_bounds = array<i64: 1, 16, 16, 128>}, {transform_indices = @transform_4, window_bounds = array<i64: 1, 1, 128>}, {transform_indices = @transform_5, window_bounds = array<i64: 1, 1, 128>}]} {
    %c0 = arith.constant 0 : index
    %c0_0 = arith.constant 0 : index
    %c0_1 = arith.constant 0 : index
    %c0_2 = arith.constant 0 : index
    %0 = vector.load %arg1[%c0, %c0_0, %c0_1, %c0_2] : memref<1x18x18x128xbf16, #tpu.memory_space<vmem>>, vector<1x18x18x128xbf16>
    %1 = vector.shape_cast %0 : vector<1x18x18x128xbf16> to vector<18x18x128xbf16>
    %2 = arith.extf %1 : vector<18x18x128xbf16> to vector<18x18x128xf32>
    %3 = vector.extract_strided_slice %2 {offsets = [0, 0, 0], sizes = [16, 16, 128], strides = [1, 1, 1]} : vector<18x18x128xf32> to vector<16x16x128xf32>
    %4 = vector.shape_cast %3 : vector<16x16x128xf32> to vector<256x128xf32>
    %5 = arith.truncf %4 : vector<256x128xf32> to vector<256x128xbf16>
    %6 = vector.extract_strided_slice %2 {offsets = [0, 1, 0], sizes = [16, 16, 128], strides = [1, 1, 1]} : vector<18x18x128xf32> to vector<16x16x128xf32>
    %7 = vector.shape_cast %6 : vector<16x16x128xf32> to vector<256x128xf32>
    %8 = arith.truncf %7 : vector<256x128xf32> to vector<256x128xbf16>
    %9 = vector.extract_strided_slice %2 {offsets = [0, 2, 0], sizes = [16, 16, 128], strides = [1, 1, 1]} : vector<18x18x128xf32> to vector<16x16x128xf32>
    %10 = vector.shape_cast %9 : vector<16x16x128xf32> to vector<256x128xf32>
    %11 = arith.truncf %10 : vector<256x128xf32> to vector<256x128xbf16>
    %12 = vector.extract_strided_slice %2 {offsets = [1, 0, 0], sizes = [16, 16, 128], strides = [1, 1, 1]} : vector<18x18x128xf32> to vector<16x16x128xf32>
    %13 = vector.shape_cast %12 : vector<16x16x128xf32> to vector<256x128xf32>
    %14 = arith.truncf %13 : vector<256x128xf32> to vector<256x128xbf16>
    %15 = vector.extract_strided_slice %2 {offsets = [1, 1, 0], sizes = [16, 16, 128], strides = [1, 1, 1]} : vector<18x18x128xf32> to vector<16x16x128xf32>
    %16 = vector.shape_cast %15 : vector<16x16x128xf32> to vector<256x128xf32>
    %17 = arith.truncf %16 : vector<256x128xf32> to vector<256x128xbf16>
    %18 = vector.extract_strided_slice %2 {offsets = [1, 2, 0], sizes = [16, 16, 128], strides = [1, 1, 1]} : vector<18x18x128xf32> to vector<16x16x128xf32>
    %19 = vector.shape_cast %18 : vector<16x16x128xf32> to vector<256x128xf32>
    %20 = arith.truncf %19 : vector<256x128xf32> to vector<256x128xbf16>
    %21 = vector.extract_strided_slice %2 {offsets = [2, 0, 0], sizes = [16, 16, 128], strides = [1, 1, 1]} : vector<18x18x128xf32> to vector<16x16x128xf32>
    %22 = vector.shape_cast %21 : vector<16x16x128xf32> to vector<256x128xf32>
    %23 = arith.truncf %22 : vector<256x128xf32> to vector<256x128xbf16>
    %24 = vector.extract_strided_slice %2 {offsets = [2, 1, 0], sizes = [16, 16, 128], strides = [1, 1, 1]} : vector<18x18x128xf32> to vector<16x16x128xf32>
    %25 = vector.shape_cast %24 : vector<16x16x128xf32> to vector<256x128xf32>
    %26 = arith.truncf %25 : vector<256x128xf32> to vector<256x128xbf16>
    %27 = vector.extract_strided_slice %2 {offsets = [2, 2, 0], sizes = [16, 16, 128], strides = [1, 1, 1]} : vector<18x18x128xf32> to vector<16x16x128xf32>
    %28 = vector.shape_cast %27 : vector<16x16x128xf32> to vector<256x128xf32>
    %29 = arith.truncf %28 : vector<256x128xf32> to vector<256x128xbf16>
    %30 = tpu.concatenate %5, %8, %11, %14, %17, %20, %23, %26, %29 in 1 : vector<256x128xbf16>, vector<256x128xbf16>, vector<256x128xbf16>, vector<256x128xbf16>, vector<256x128xbf16>, vector<256x128xbf16>, vector<256x128xbf16>, vector<256x128xbf16>, vector<256x128xbf16> -> vector<256x1152xbf16>
    %c0_3 = arith.constant 0 : index
    %c0_4 = arith.constant 0 : index
    %31 = vector.load %arg2[%c0_3, %c0_4] : memref<1152x128xbf16, #tpu.memory_space<vmem>>, vector<1152x128xbf16>
    %cst = arith.constant dense<0.000000e+00> : vector<256x128xf32>
    %32 = tpu.matmul %30, %31, %cst {dimension_numbers = #tpu.dot_dimension_numbers<[1], [0], [0], [1], [0, 0, 1, 1], [], []>} : vector<256x1152xbf16>, vector<1152x128xbf16>, vector<256x128xf32> -> vector<256x128xf32>
    %c0_5 = arith.constant 0 : index
    %c0_6 = arith.constant 0 : index
    %33 = vector.load %arg3[%c0_5, %c0_6] : memref<256x128xf32, #tpu.memory_space<vmem>>, vector<256x128xf32>
    %34 = arith.addf %32, %33 : vector<256x128xf32>
    %cst_7 = arith.constant 0.000000e+00 : f32
    %35 = vector.broadcast %cst_7 : f32 to vector<256x128xf32>
    %36 = arith.maximumf %34, %35 : vector<256x128xf32>
    %cst_8 = arith.constant dense<0.000000e+00> : vector<128xf32>
    %37 = vector.multi_reduction <add>, %36, %cst_8 [0] : vector<256x128xf32> to vector<128xf32>
    %38 = vector.shape_cast %37 : vector<128xf32> to vector<1x128xf32>
    %c0_9 = arith.constant 0 : index
    %c0_10 = arith.constant 0 : index
    %c0_11 = arith.constant 0 : index
    %39 = vector.load %arg5[%c0_9, %c0_10, %c0_11] : memref<1x1x128xf32, #tpu.memory_space<vmem>>, vector<1x1x128xf32>
    %40 = vector.shape_cast %39 : vector<1x1x128xf32> to vector<1x128xf32>
    %41 = vector.shape_cast %38 : vector<1x128xf32> to vector<1x1x128xf32>
    tpu.vector_store %arg5[%c0_9, %c0_10, %c0_11], %41 {strides = array<i32>} : memref<1x1x128xf32, #tpu.memory_space<vmem>>, vector<1x1x128xf32>,
    %42 = arith.mulf %36, %36 : vector<256x128xf32>
    %cst_12 = arith.constant dense<0.000000e+00> : vector<128xf32>
    %43 = vector.multi_reduction <add>, %42, %cst_12 [0] : vector<256x128xf32> to vector<128xf32>
    %44 = vector.shape_cast %43 : vector<128xf32> to vector<1x128xf32>
    %c0_13 = arith.constant 0 : index
    %c0_14 = arith.constant 0 : index
    %c0_15 = arith.constant 0 : index
    %45 = vector.load %arg6[%c0_13, %c0_14, %c0_15] : memref<1x1x128xf32, #tpu.memory_space<vmem>>, vector<1x1x128xf32>
    %46 = vector.shape_cast %45 : vector<1x1x128xf32> to vector<1x128xf32>
    %47 = vector.shape_cast %44 : vector<1x128xf32> to vector<1x1x128xf32>
    tpu.vector_store %arg6[%c0_13, %c0_14, %c0_15], %47 {strides = array<i32>} : memref<1x1x128xf32, #tpu.memory_space<vmem>>, vector<1x1x128xf32>,
    %48 = vector.shape_cast %36 : vector<256x128xf32> to vector<16x16x128xf32>
    %49 = arith.truncf %48 : vector<16x16x128xf32> to vector<16x16x128xbf16>
    %c0_16 = arith.constant 0 : index
    %c0_17 = arith.constant 0 : index
    %c0_18 = arith.constant 0 : index
    %c0_19 = arith.constant 0 : index
    %50 = vector.load %arg4[%c0_16, %c0_17, %c0_18, %c0_19] : memref<1x16x16x128xbf16, #tpu.memory_space<vmem>>, vector<1x16x16x128xbf16>
    %51 = vector.shape_cast %50 : vector<1x16x16x128xbf16> to vector<16x16x128xbf16>
    %52 = vector.shape_cast %49 : vector<16x16x128xbf16> to vector<1x16x16x128xbf16>
    tpu.vector_store %arg4[%c0_16, %c0_17, %c0_18, %c0_19], %52 {strides = array<i32>} : memref<1x16x16x128xbf16, #tpu.memory_space<vmem>>, vector<1x16x16x128xbf16>,
    return
  }
  func.func @transform_0(%arg0: i32) -> (i32, i32, i32, i32) {
    %c0_i32 = arith.constant 0 : i32
    %c0_i32_0 = arith.constant 0 : i32
    %c0_i32_1 = arith.constant 0 : i32
    %c0_i32_2 = arith.constant 0 : i32
    return %arg0, %c0_i32, %c0_i32_0, %c0_i32_1 : i32, i32, i32, i32
  }
  func.func @transform_1(%arg0: i32) -> (i32, i32) {
    %c0_i32 = arith.constant 0 : i32
    %c0_i32_0 = arith.constant 0 : i32
    %c0_i32_1 = arith.constant 0 : i32
    return %c0_i32, %c0_i32_0 : i32, i32
  }
  func.func @transform_2(%arg0: i32) -> (i32, i32) {
    %c0_i32 = arith.constant 0 : i32
    %c0_i32_0 = arith.constant 0 : i32
    %c0_i32_1 = arith.constant 0 : i32
    return %c0_i32, %c0_i32_0 : i32, i32
  }
  func.func @transform_3(%arg0: i32) -> (i32, i32, i32, i32) {
    %c0_i32 = arith.constant 0 : i32
    %c0_i32_0 = arith.constant 0 : i32
    %c0_i32_1 = arith.constant 0 : i32
    %c0_i32_2 = arith.constant 0 : i32
    return %arg0, %c0_i32, %c0_i32_0, %c0_i32_1 : i32, i32, i32, i32
  }
  func.func @transform_4(%arg0: i32) -> (i32, i32, i32) {
    %c0_i32 = arith.constant 0 : i32
    %c0_i32_0 = arith.constant 0 : i32
    %c0_i32_1 = arith.constant 0 : i32
    return %arg0, %c0_i32, %c0_i32_0 : i32, i32, i32
  }
  func.func @transform_5(%arg0: i32) -> (i32, i32, i32) {
    %c0_i32 = arith.constant 0 : i32
    %c0_i32_0 = arith.constant 0 : i32
    %c0_i32_1 = arith.constant 0 : i32
    return %arg0, %c0_i32, %c0_i32_0 : i32, i32, i32
  }
}

module attributes {stable_mosaic.version = 11 : i64} {
  func.func @kernel(%arg0: i32, %arg1: memref<1x16x16x128xbf16, #tpu.memory_space<vmem>>, %arg2: memref<1x8xf32, #tpu.memory_space<vmem>>, %arg3: memref<1x8xf32, #tpu.memory_space<vmem>>, %arg4: memref<1x16x16x8xf32, #tpu.memory_space<vmem>>) attributes {dimension_semantics = [#tpu.dimension_semantics<parallel>], iteration_bounds = array<i64: 2>, scalar_prefetch = 0 : i64, scratch_operands = 0 : i64, tpu.core_type = #tpu.core_type<tc>, window_params = [{transform_indices = @transform_0, window_bounds = array<i64: 1, 16, 16, 128>}, {pipeline_mode = #tpu.pipeline_mode<synchronous>, transform_indices = @transform_1, window_bounds = array<i64: 1, 8>}, {pipeline_mode = #tpu.pipeline_mode<synchronous>, transform_indices = @transform_2, window_bounds = array<i64: 1, 8>}, {transform_indices = @transform_3, window_bounds = array<i64: 1, 16, 16, 8>}]} {
    %c0 = arith.constant 0 : index
    %c0_0 = arith.constant 0 : index
    %c0_1 = arith.constant 0 : index
    %c0_2 = arith.constant 0 : index
    %0 = vector.load %arg1[%c0, %c0_0, %c0_1, %c0_2] : memref<1x16x16x128xbf16, #tpu.memory_space<vmem>>, vector<1x16x16x128xbf16>
    %1 = vector.shape_cast %0 : vector<1x16x16x128xbf16> to vector<16x16x128xbf16>
    %2 = arith.extf %1 : vector<16x16x128xbf16> to vector<16x16x128xf32>
    %3 = vector.extract_strided_slice %2 {offsets = [0, 0, 0], sizes = [16, 16, 8], strides = [1, 1, 1]} : vector<16x16x128xf32> to vector<16x16x8xf32>
    %c0_3 = arith.constant 0 : index
    %c0_4 = arith.constant 0 : index
    %4 = vector.load %arg2[%c0_3, %c0_4] : memref<1x8xf32, #tpu.memory_space<vmem>>, vector<1x8xf32>
    %5 = vector.shape_cast %4 : vector<1x8xf32> to vector<1x1x8xf32>
    %6 = vector.broadcast %5 : vector<1x1x8xf32> to vector<16x16x8xf32>
    %7 = arith.mulf %3, %6 : vector<16x16x8xf32>
    %c0_5 = arith.constant 0 : index
    %c0_6 = arith.constant 0 : index
    %8 = vector.load %arg3[%c0_5, %c0_6] : memref<1x8xf32, #tpu.memory_space<vmem>>, vector<1x8xf32>
    %9 = vector.shape_cast %8 : vector<1x8xf32> to vector<1x1x8xf32>
    %10 = vector.broadcast %9 : vector<1x1x8xf32> to vector<16x16x8xf32>
    %11 = arith.addf %7, %10 : vector<16x16x8xf32>
    %c0_7 = arith.constant 0 : index
    %c0_8 = arith.constant 0 : index
    %c0_9 = arith.constant 0 : index
    %c0_10 = arith.constant 0 : index
    %12 = vector.load %arg4[%c0_7, %c0_8, %c0_9, %c0_10] : memref<1x16x16x8xf32, #tpu.memory_space<vmem>>, vector<1x16x16x8xf32>
    %13 = vector.shape_cast %12 : vector<1x16x16x8xf32> to vector<16x16x8xf32>
    %14 = vector.shape_cast %11 : vector<16x16x8xf32> to vector<1x16x16x8xf32>
    tpu.vector_store %arg4[%c0_7, %c0_8, %c0_9, %c0_10], %14 {strides = array<i32>} : memref<1x16x16x8xf32, #tpu.memory_space<vmem>>, vector<1x16x16x8xf32>,
    return
  }
  func.func @transform_0(%arg0: i32) -> (i32, i32, i32, i32) {
    %c0_i32 = arith.constant 0 : i32
    %c0_i32_0 = arith.constant 0 : i32
    %c0_i32_1 = arith.constant 0 : i32
    %c0_i32_2 = arith.constant 0 : i32
    return %arg0, %c0_i32, %c0_i32_0, %c0_i32_1 : i32, i32, i32, i32
  }
  func.func @transform_1(%arg0: i32) -> (i32, i32) {
    %c0_i32 = arith.constant 0 : i32
    %c0_i32_0 = arith.constant 0 : i32
    %c0_i32_1 = arith.constant 0 : i32
    return %c0_i32, %c0_i32_0 : i32, i32
  }
  func.func @transform_2(%arg0: i32) -> (i32, i32) {
    %c0_i32 = arith.constant 0 : i32
    %c0_i32_0 = arith.constant 0 : i32
    %c0_i32_1 = arith.constant 0 : i32
    return %c0_i32, %c0_i32_0 : i32, i32
  }
  func.func @transform_3(%arg0: i32) -> (i32, i32, i32, i32) {
    %c0_i32 = arith.constant 0 : i32
    %c0_i32_0 = arith.constant 0 : i32
    %c0_i32_1 = arith.constant 0 : i32
    %c0_i32_2 = arith.constant 0 : i32
    return %arg0, %c0_i32, %c0_i32_0, %c0_i32_1 : i32, i32, i32, i32
  }
}

</mosaic_0001>

<bundles_post_ra>
// kernel: conv_block_forward.3
= control target key start
LH: loop header
LB: loop body
LE: loop exit
PB: predicated region body
PF: predicated region fallthrough
CT: control target
= control target key end

     0   :  { %s5966_s18 = smov 0   ;;  %s7422_s0 = inlined_call_operand.vmem [shape: bf16[2,324,36], index: 0, kind: input, shape index: {}]   ;;  %s7423_s1 = inlined_call_operand.vmem [shape: bf16[36,128], index: 1, kind: input, shape index: {}]   ;;  %s7424_s2 = inlined_call_operand.vmem [shape: f32[1,128], index: 2, kind: input, shape index: {}]   ;;  %s7425_s3 = inlined_call_operand.vmem [shape: bf16[2,18,18,128], index: 3, kind: output, shape index: {0}]   ;;  %s7426_s4 = inlined_call_operand.vmem [shape: f32[2,1,128], index: 4, kind: output, shape index: {1}]   ;;  %s7427_s5 = inlined_call_operand.vmem [shape: f32[2,1,128], index: 5, kind: output, shape index: {2}]  }
   0x1 LB: > { %s5543_s19 = sadd.s32 4294967295, %s5930_s18   ;;  %p5547_p0 = scmp.ge.s32.totalorder %s5930_s18, 1  ;;  %s5930_s18 = sphi %s5966_s18, %s16_s18  }
   0x2   : > { %p192_p1 = scmp.lt.s32.totalorder %s5930_s18, 3 }
   0x4   : > { %p193_p2 = pnand %p5547_p0, %p192_p1 }
   0x6   : > { %196 = sbr.rel (%p193_p2) target bundleno = 573 (0x23d), region = 32 }
   0xb   : > { %v5898_v0 = vld [vmem:[%s7423_s1 + $0x10] ss:$0 sps:$4 sm:$0x33]   ;;  %v5932_v1 = vmov 0.0   ;;  %vm478_vm0 = vcmask 1041408   ;;  %v5899_v3 = vld [vmem:[%s7423_s1 + $0x8] sm:$0xff]   ;;  %v802_v28 = vlaneseq }
   0xc   : > { %5788 = vmatprep.subr.bf16.mxu0 %v5932_v1  ;;  %5878 = vmatprep.subr.bf16.mxu1 %v5932_v1  ;;  %v480_v2 = vsel %vm478_vm0, %v5898_v0, 0  ;;  %p226_p3 = scmp.lt.s32.totalorder %s5543_s19, 1  ;;  %vm5933_vm1 = vmmov 0   ;;  %v5900_v4 = vld [vmem:[%s7423_s1] sm:$0xff]   ;;  %vm414_vm2 = vcmask 293888   ;;  %v2371_v31 = vcombine.high %v5932_v1, %v5932_v1 }
   0xd   : > { %5789 = vmatpush3.bf16.msra.mxu0 %v480_v2  ;;  %5881 = vmatpush3.bf16.msra.mxu1 %v480_v2  ;;  %v5934_v26 = vmov 1983009808   ;;  %v6081_v30 = vshrl.u32 %v802_v28, 7  ;;  %v6122_v44 = vld [vmem:[%s7424_s2] ss:$0 sm:$0xff]  ;;  %vm4039_vm5 = vcmask 1043456  }
   0xe   : > { %5790 = vmatprep.subr.bf16.mxu0 %v5932_v1  ;;  %5794 = vmatprep.mubr.msk.bf16.mxu0 %vm5933_vm1, %v5932_v1  ;;  %s7562_s19 = smov (!%p226_p3, %s5543_s19), 1  ;;  %v800_v27 = vunpack.c.l.s4 %v5934_v26 }
   0xf   : > { %5879 = vmatprep.subr.bf16.mxu1 %v5932_v1  ;;  %5838 = vmatprep.mubr.msk.bf16.mxu1 %vm5933_vm1, %v5932_v1  ;;  %s5884_s26 = smul.u32 164, %s7562_s19  ;;  %7466 = vst [vmem:[#allocation2_spill] sm:$0xff] %v6081_v30  ;;  %v6134_v55 = vadd.s32 16, %v6081_v30  ;;  %vm1456_vm4 = vcmp.ge.s32.totalorder %v6081_v30, 1  ;;  %s238_s17 = scalar_lea.vmem %s7426_s4, %s7562_s19 }
  0x10   : > { %v801_v29 = vunpack.c.0.s8 %v800_v27  ;;  %s5885_s7 = smul.u32 216, %s7562_s19  ;;  %s241_s22 = scalar_lea.vmem %s7427_s5, %s7562_s19 }
  0x11   : > { %5791 = vmatpush3.bf16.msra.mxu0 %v5899_v3  ;;  %5882 = vmatpush3.bf16.msra.mxu1 %v5899_v3  ;;  %s5999_s29 = scalar_lea.vmem %s7422_s0, %s5884_s26  ;;  %7475 = vst [vmem:[#allocation11_spill] sm:$0xff] %v6134_v55  ;;  %vm1461_vm3 = vcmp.le.s32.totalorder %v6134_v55, 16 }
  0x12   : > { %5792 = vmatprep.subr.bf16.mxu0 %v5932_v1  ;;  %5880 = vmatprep.subr.bf16.mxu1 %v5932_v1  ;;  %v5901_v5 = vld [vmem:[%s5999_s29] sm:$0xff]   ;;  %v5907_v6 = vld [vmem:[%s5999_s29 + $0x58] sm:$0xff]   ;;  %v5902_v7 = vld [vmem:[%s5999_s29 + $0x8] sm:$0xff]   ;;  %v6086_v32 = vsub.s32 %v801_v29, %v6081_v30  ;;  %s6173_s10 = scalar_lea.vmem %s7425_s3, %s5885_s7 }
  0x13   : > { %v5909_v8 = vld [vmem:[%s5999_s29 + $0x60] sm:$0xff]   ;;  %v5903_v9 = vld [vmem:[%s5999_s29 + $0x10] sm:$0xff]   ;;  %v5911_v10 = vld [vmem:[%s5999_s29 + $0x68] sm:$0xff]  }
  0x14   : > { %v5904_v11 = vld [vmem:[%s5999_s29 + $0x18] sm:$0xff]   ;;  %v5913_v12 = vld [vmem:[%s5999_s29 + $0x70] sm:$0xff]   ;;  %v5905_v13 = vld [vmem:[%s5999_s29 + $0x20] sm:$0xff]   ;;  %v6090_v33 = vrot.slane %v5932_v1, %v6086_v32  ;;  %v6093_v34 = vrot.slane %v2371_v31, %v6086_v32 }
  0x15   : > { %5793 = vmatpush3.bf16.msra.mxu0 %v5900_v4  ;;  %5883 = vmatpush3.bf16.msra.mxu1 %v5900_v4  ;;  %v5915_v14 = vld [vmem:[%s5999_s29 + $0x78] sm:$0xff]   ;;  %v5906_v15 = vld [vmem:[%s5999_s29 + $0x28] sm:$0xff]   ;;  %v5917_v16 = vld [vmem:[%s5999_s29 + $0x80] sm:$0xff]  }
  0x16   : > { %v5908_v17 = vld [vmem:[%s5999_s29 + $0x30] sm:$0xff]   ;;  %v5918_v18 = vld [vmem:[%s5999_s29 + $0x88] sm:$0xff]   ;;  %v5910_v19 = vld [vmem:[%s5999_s29 + $0x38] sm:$0xff]   ;;  %7467 = vst [vmem:[#allocation3_spill] sm:$0xff] %v6090_v33  ;;  %v6097_v35 = vcombine.high %v6090_v33, %v6090_v33  ;;  %v6101_v36 = vcombine.high %v6093_v34, %v6093_v34  ;;  %v6105_v39 = vmul.f32 %v6090_v33, %v6090_v33  ;;  %v6113_v41 = vmul.f32 %v6093_v34, %v6093_v34 }
  0x17   : > { %v5919_v20 = vld [vmem:[%s5999_s29 + $0x90] sm:$0xff]   ;;  %v5912_v21 = vld [vmem:[%s5999_s29 + $0x40] sm:$0xff]   ;;  %v5920_v22 = vld [vmem:[%s5999_s29 + $0x98] sm:$0xff]   ;;  %7468 = vst [vmem:[#allocation4_spill] sm:$0xff] %v6093_v34 }
  0x18   : > { %5795 = vmatmul.mubr.msk.bf16.vlgmr.msra.gmra.mxu0 %vm414_vm2, %v5901_v5  ;;  %5839 = vmatmul.mubr.msk.bf16.vlgmr.msra.gmra.mxu1 %vm414_vm2, %v5907_v6  ;;  %v5914_v23 = vld [vmem:[%s5999_s29 + $0x48] sm:$0xff]   ;;  %v5921_v24 = vld [vmem:[%s5999_s29 + $0xa0] ss:$0 sps:$4 sm:$0x33]   ;;  %v5916_v25 = vld [vmem:[%s5999_s29 + $0x50] sm:$0xff]   ;;  %7469 = vst [vmem:[#allocation5_spill] sm:$0xff] %v6097_v35  ;;  %v6109_v40 = vmul.f32 %v6097_v35, %v6097_v35  ;;  %v6117_v42 = vmul.f32 %v6101_v36, %v6101_v36 }
  0x19   : > { %5798 = vmatprep.mubr.msk.bf16.mxu0 %vm5933_vm1, %v5932_v1  ;;  %5842 = vmatprep.mubr.msk.bf16.mxu1 %vm5933_vm1, %v5932_v1  ;;  %7470 = vst [vmem:[#allocation6_spill] sm:$0xff] %v6101_v36  ;;  %7471 = vst [vmem:[#allocation7_spill] sm:$0xff] %v6105_v39  ;;  %v3271_v45 = vcombine.low %v6090_v33, %v6097_v35  ;;  %v3272_v46 = vcombine.low %v6093_v34, %v6101_v36 }
  0x1a   : > { %7472 = vst [vmem:[#allocation8_spill] sm:$0xff] %v6109_v40  ;;  %7473 = vst [vmem:[#allocation9_spill] sm:$0xff] %v6113_v41  ;;  %v4373_v50 = vcombine.low %v6105_v39, %v6109_v40  ;;  %v4374_v51 = vcombine.low %v6113_v41, %v6117_v42 }
  0x1b   : > { %7474 = vst [vmem:[#allocation10_spill] sm:$0xff] %v6117_v42  ;;  %v3279_v56 = vrot.slane %v3271_v45, %v6086_v32  ;;  %v3286_v57 = vrot.slane %v3272_v46, %v6086_v32 }
  0x1c   : > { %v4381_v0 = vrot.slane %v4373_v50, %v6086_v32 }
  0x20   : > { %5799 = vmatmul.mubr.msk.bf16.gmra.mxu0 %vm414_vm2, %v5902_v7  ;;  %5843 = vmatmul.mubr.msk.bf16.gmra.mxu1 %vm414_vm2, %v5909_v8  ;;  %v3287_v8 = vcombine.low %v3279_v56, %v3286_v57 }
  0x21   : > { %5802 = vmatprep.mubr.msk.bf16.mxu0 %vm5933_vm1, %v5932_v1  ;;  %5846 = vmatprep.mubr.msk.bf16.mxu1 %vm5933_vm1, %v5932_v1 }
  0x28   : > { %5803 = vmatmul.mubr.msk.bf16.gmra.mxu0 %vm414_vm2, %v5903_v9  ;;  %5847 = vmatmul.mubr.msk.bf16.gmra.mxu1 %vm414_vm2, %v5911_v10 }
  0x29   : > { %5806 = vmatprep.mubr.msk.bf16.mxu0 %vm5933_vm1, %v5932_v1  ;;  %5850 = vmatprep.mubr.msk.bf16.mxu1 %vm5933_vm1, %v5932_v1 }
  0x30   : > { %5807 = vmatmul.mubr.msk.bf16.gmra.mxu0 %vm414_vm2, %v5904_v11  ;;  %5851 = vmatmul.mubr.msk.bf16.gmra.mxu1 %vm414_vm2, %v5913_v12 }
  0x31   : > { %5810 = vmatprep.mubr.msk.bf16.mxu0 %vm5933_vm1, %v5932_v1  ;;  %5854 = vmatprep.mubr.msk.bf16.mxu1 %vm5933_vm1, %v5932_v1 }
  0x38   : > { %5811 = vmatmul.mubr.msk.bf16.gmra.mxu0 %vm414_vm2, %v5905_v13  ;;  %5855 = vmatmul.mubr.msk.bf16.gmra.mxu1 %vm414_vm2, %v5915_v14 }
  0x39   : > { %5814 = vmatprep.mubr.msk.bf16.mxu0 %vm5933_vm1, %v5932_v1  ;;  %5858 = vmatprep.mubr.msk.bf16.mxu1 %vm5933_vm1, %v5932_v1 }
  0x40   : > { %5815 = vmatmul.mubr.msk.bf16.gmra.mxu0 %vm414_vm2, %v5906_v15  ;;  %5859 = vmatmul.mubr.msk.bf16.gmra.mxu1 %vm414_vm2, %v5917_v16 }
  0x41   : > { %5818 = vmatprep.mubr.msk.bf16.mxu0 %vm5933_vm1, %v5932_v1  ;;  %5862 = vmatprep.mubr.msk.bf16.mxu1 %vm5933_vm1, %v5932_v1 }
  0x48   : > { %5819 = vmatmul.mubr.msk.bf16.gmra.mxu0 %vm414_vm2, %v5908_v17  ;;  %5863 = vmatmul.mubr.msk.bf16.gmra.mxu1 %vm414_vm2, %v5918_v18 }
  0x49   : > { %5822 = vmatprep.mubr.msk.bf16.mxu0 %vm5933_vm1, %v5932_v1  ;;  %5866 = vmatprep.mubr.msk.bf16.mxu1 %vm5933_vm1, %v5932_v1 }
  0x50   : > { %5823 = vmatmul.mubr.msk.bf16.gmra.mxu0 %vm414_vm2, %v5910_v19  ;;  %5867 = vmatmul.mubr.msk.bf16.gmra.mxu1 %vm414_vm2, %v5919_v20 }
  0x51   : > { %5826 = vmatprep.mubr.msk.bf16.mxu0 %vm5933_vm1, %v5932_v1  ;;  %5870 = vmatprep.mubr.msk.bf16.mxu1 %vm5933_vm1, %v5932_v1 }
  0x58   : > { %5827 = vmatmul.mubr.msk.bf16.gmra.mxu0 %vm414_vm2, %v5912_v21  ;;  %5871 = vmatmul.mubr.msk.bf16.gmra.mxu1 %vm414_vm2, %v5920_v22 }
  0x59   : > { %5830 = vmatprep.mubr.msk.bf16.mxu0 %vm5933_vm1, %v5932_v1  ;;  %5874 = vmatprep.mubr.msk.bf16.mxu1 %vm5933_vm1, %v5932_v1 }
  0x60   : > { %5831 = vmatmul.mubr.msk.bf16.gmra.mxu0 %vm414_vm2, %v5914_v23  ;;  %5875 = vmatmul.mubr.msk.bf16.gmra.mxu1 %vm414_vm2, %v5921_v24 }
  0x61   : > { %5834 = vmatprep.mubr.msk.bf16.mxu0 %vm5933_vm1, %v5932_v1  ;;  %v4388_v1 = vrot.slane %v4374_v51, %v6086_v32 }
  0x63   : > { %v4389_v15 = vcombine.low %v4381_v0, %v4388_v1 }
  0x68   : > { %5835 = vmatmul.mubr.msk.bf16.gmra.mxu0 %vm414_vm2, %v5916_v25  ;;  %v6157_v25 = vadd.f32 %v3287_v8, %v3287_v8 }
  0xd8   : > { %v516_v37 = vpop.f32.mrf.mxu0  ;;  %v604_v47 = vpop.f32.mrf.mxu1 }
  0xd9   : > { %v605_v48 = vadd.f32 %v6122_v44, %v604_v47  ;;  %v6165_v47 = vadd.f32 %v4389_v15, %v4389_v15 }
  0xda   : > { %v5796_v38 = vpop.f32.mrf.mxu0  ;;  %v5840_v52 = vpop.f32.mrf.mxu1 }
  0xdb   : > { %v704_v53 = vmax.f32 %v605_v48, 0.0 }
  0xdc   : > { %v519_v43 = vpop.f32.mrf.mxu0  ;;  %v607_v58 = vpop.f32.mrf.mxu1 }
  0xdd   : > { %v1138_v60 = vcombine.high %v704_v53, %v704_v53  ;;  %v6140_v61 = vrot.slane %v704_v53, %v6086_v32  ;;  %v608_v62 = vadd.f32 %v6122_v44, %v607_v58 }
  0xde   : > { %v5797_v49 = vpop.f32.mrf.mxu0  ;;  %v5841_v2 = vpop.f32.mrf.mxu1 }
  0xdf   : > { %v1152_v4 = vrot.slane %v1138_v60, %v6086_v32  ;;  %v1153_v5 = vcombine.high %v6140_v61, %v6140_v61  ;;  %v705_v6 = vmax.f32 %v608_v62, 0.0 }
  0xe0   : > { %v524_v54 = vpop.f32.mrf.mxu0  ;;  %v612_v9 = vpop.f32.mrf.mxu1 }
  0xe1   : > { %v525_v59 = vadd.f32 %v6122_v44, %v524_v54  ;;  %v1154_v13 = vcombine.high %v1152_v4, %v1152_v4  ;;  %v1880_v16 = vrot.slane %v1153_v5, %v6086_v32  ;;  %v1155_v17 = vcombine.high %v705_v6, %v705_v6 }
  0xe2   : > { %v5800_v63 = vpop.f32.mrf.mxu0  ;;  %v1162_v18 = vrot.slane %v705_v6, %v6086_v32  ;;  %v5844_v19 = vpop.f32.mrf.mxu1  ;;  %v613_v23 = vadd.f32 %v6122_v44, %v612_v9 }
  0xe3   : > { %v684_v3 = vmax.f32 %v525_v59, 0.0  ;;  %v1881_v26 = vcombine.low %v1152_v4, %v1154_v13  ;;  %v2292_v27 = vsel %vm1461_vm3, %v1880_v16, 0.0  ;;  %v6168_v49 = vrot.slane %v1155_v17, %v6086_v32 }
  0xe4   : > { %v527_v7 = vpop.f32.mrf.mxu0  ;;  %v1170_v28 = vcombine.high %v1162_v18, %v1162_v18  ;;  %v6161_v29 = vpop.f32.mrf.mxu1  ;;  %v5694_v48 = vpack.c.bf16 %v2292_v27, %v2292_v27  ;;  %v6176_v54 = vmax.f32 %v613_v23, 0.0  ;;  %v6187_v6 = vrot.slane %v2292_v27, %v6086_v32 }
  0xe5   : > { %v798_v10 = vcombine.high %v684_v3, %v684_v3  ;;  %v805_v11 = vrot.slane %v684_v3, %v6086_v32  ;;  %v528_v12 = vadd.f32 %v6122_v44, %v527_v7  ;;  %v1889_v59 = vrot.slane %v1881_v26, %v6086_v32 }
  0xe6   : > { %v5801_v14 = vpop.f32.mrf.mxu0  ;;  %v5845_v50 = vpop.f32.mrf.mxu1  ;;  %5413 = vst [vmem:[%s6173_s10 + $0x74] sm:$0x1] %v5694_v48  ;;  %v1882_v60 = vcombine.low %v1162_v18, %v1170_v28 }
  0xe7   : > { %v812_v20 = vrot.slane %v798_v10, %v6086_v32  ;;  %v813_v21 = vcombine.high %v805_v11, %v805_v11  ;;  %v685_v22 = vmax.f32 %v528_v12, 0.0 }
  0xe8   : > { %v532_v24 = vpop.f32.mrf.mxu0  ;;  %v6181_v62 = vpop.f32.mrf.mxu1  ;;  %v1896_v7 = vrot.slane %v1882_v60, %v6086_v32 }
  0xe9   : > { %v1512_v31 = vcombine.low %v813_v21, %v812_v20  ;;  %v814_v37 = vcombine.high %v812_v20, %v812_v20  ;;  %v815_v38 = vcombine.high %v685_v22, %v685_v22  ;;  %v822_v43 = vrot.slane %v685_v22, %v6086_v32 }
  0xea   : > { %v533_v45 = vadd.f32 %v6122_v44, %v532_v24  ;;  %v5804_v46 = vpop.f32.mrf.mxu0  ;;  %v5848_v8 = vpop.f32.mrf.mxu1  ;;  %v6194_v17 = vcombine.low %v1889_v59, %v1896_v7 }
  0xeb   : > { %v829_v51 = vrot.slane %v815_v38, %v6086_v32  ;;  %v830_v52 = vcombine.high %v822_v43, %v822_v43  ;;  %v1513_v53 = vcombine.low %v814_v37, %v822_v43  ;;  %v1520_v56 = vrot.slane %v1512_v31, %v6086_v32 }
  0xec   : > { %v686_v57 = vmax.f32 %v533_v45, 0.0  ;;  %v535_v58 = vpop.f32.mrf.mxu0  ;;  %v6204_v22 = vpop.f32.mrf.mxu1 }
  0xed   : > { %v1527_v63 = vrot.slane %v1513_v53, %v6086_v32  ;;  %v1529_v0 = vcombine.low %v830_v52, %v829_v51  ;;  %v831_v1 = vcombine.high %v829_v51, %v829_v51  ;;  %v536_v2 = vadd.f32 %v6122_v44, %v535_v58 }
  0xee   : > { %v832_v3 = vcombine.high %v686_v57, %v686_v57  ;;  %v839_v4 = vrot.slane %v686_v57, %v6086_v32  ;;  %v5805_v5 = vpop.f32.mrf.mxu0  ;;  %v5849_v45 = vpop.f32.mrf.mxu1 }
  0xef   : > { %v1528_v9 = vcombine.low %v1520_v56, %v1527_v63  ;;  %v1537_v10 = vrot.slane %v1529_v0, %v6086_v32  ;;  %v687_v11 = vmax.f32 %v536_v2, 0.0 }
  0xf0   : > { %v846_v13 = vrot.slane %v832_v3, %v6086_v32  ;;  %v847_v14 = vcombine.high %v839_v4, %v839_v4  ;;  %v1530_v15 = vcombine.low %v831_v1, %v839_v4  ;;  %v540_v16 = vpop.f32.mrf.mxu0 }
  0xf1   : > { %v2266_v18 = vsel %vm1456_vm4, %v1528_v9, 0.0  ;;  %v849_v19 = vcombine.high %v687_v11, %v687_v11  ;;  %v6199_v20 = vrot.slane %v687_v11, %v6086_v32  ;;  %v6202_v21 = vadd.f32 %v6122_v44, %v540_v16 }
  0xf2   : > { %v2412_v23 = vcombine.high %v2266_v18, %v2266_v18  ;;  %v2419_v24 = vrot.slane %v2266_v18, %v6086_v32  ;;  %v5668_v26 = vpack.c.bf16 %v2266_v18, %v2266_v18  ;;  %v848_v27 = vcombine.high %v846_v13, %v846_v13  ;;  %v5808_v28 = vpop.f32.mrf.mxu0 }
  0xf3   : > { %v1544_v31 = vrot.slane %v1530_v15, %v6086_v32  ;;  %v1552_v37 = vrot.slane %v847_v14, %v6086_v32  ;;  %v6210_v38 = vrot.slane %v849_v19, %v6086_v32  ;;  %v864_v43 = vcombine.high %v6199_v20, %v6199_v20 }
  0xf4   : > { %v2426_v46 = vrot.slane %v2412_v23, %v6086_v32  ;;  %v2427_v48 = vcombine.high %v2419_v24, %v2419_v24  ;;  %v3305_v50 = vcombine.low %v6090_v33, %v2419_v24  ;;  %v4058_v51 = vmul.f32 %v2419_v24, %v2419_v24  ;;  %5387 = vst [vmem:[%s6173_s10 + $0xc] sm:$0xf] %v5668_v26  ;;  %v543_v52 = vpop.f32.mrf.mxu0 }
  0xf5   : > { %v1545_v53 = vcombine.low %v1537_v10, %v1544_v31  ;;  %v6217_v56 = vcombine.low %v846_v13, %v848_v27  ;;  %v2268_v57 = vsel %vm1461_vm3, %v1552_v37, 0.0  ;;  %v5596_v58 = vcombine.low %v1544_v31, %v1544_v31  ;;  %v6231_v27 = vpop.f32.mrf.mxu1 }
  0xf6   : > { %v3306_v59 = vcombine.low %v2427_v48, %v2426_v46  ;;  %v3313_v60 = vrot.slane %v3305_v50, %v6086_v32  ;;  %v4059_v63 = vmul.f32 %v2427_v48, %v2427_v48  ;;  %v4060_v0 = vmul.f32 %v2426_v46, %v2426_v46  ;;  %v5809_v1 = vpop.f32.mrf.mxu0 }
  0xf7   : > { %v4407_v2 = vcombine.low %v6105_v39, %v4058_v51  ;;  %v1561_v3 = vrot.slane %v6217_v56, %v6086_v32  ;;  %v2428_v4 = vcombine.high %v2426_v46, %v2426_v46  ;;  %v2436_v5 = vrot.slane %v1545_v53, %v6086_v32 }
  0xf8   : > { %v3320_v7 = vrot.slane %v3306_v59, %v6086_v32  ;;  %v4408_v8 = vcombine.low %v4059_v63, %v4060_v0  ;;  %v2443_v9 = vrot.slane %v5596_v58, %v6086_v32  ;;  %v2452_v10 = vrot.slane %v2268_v57, %v6086_v32  ;;  %v548_v11 = vpop.f32.mrf.mxu0  ;;  %v5852_v58 = vpop.f32.mrf.mxu1 }
  0xf9   : > { %v4415_v13 = vrot.slane %v4407_v2, %v6086_v32  ;;  %v2444_v14 = vcombine.high %v2436_v5, %v2436_v5  ;;  %v3322_v15 = vcombine.low %v2428_v4, %v2436_v5  ;;  %v4061_v16 = vmul.f32 %v2428_v4, %v2428_v4 }
  0xfa   : > { %v3321_v18 = vcombine.low %v3313_v60, %v3320_v7  ;;  %v4422_v19 = vrot.slane %v4408_v8, %v6086_v32  ;;  %v2445_v23 = vcombine.high %v2443_v9, %v2443_v9  ;;  %v4062_v24 = vmul.f32 %v2436_v5, %v2436_v5  ;;  %v5812_v26 = vpop.f32.mrf.mxu0 }
  0xfb   : > { %v3323_v28 = vcombine.low %v2444_v14, %v2443_v9  ;;  %v3330_v31 = vrot.slane %v3322_v15, %v6086_v32  ;;  %v4063_v37 = vmul.f32 %v2444_v14, %v2444_v14  ;;  %v4064_v45 = vmul.f32 %v2443_v9, %v2443_v9 }
  0xfc   : > { %v4423_v46 = vcombine.low %v4415_v13, %v4422_v19  ;;  %v3339_v48 = vcombine.low %v2445_v23, %v2452_v10  ;;  %v4001_v50 = vadd.f32 %v6157_v25, %v3321_v18  ;;  %v4065_v51 = vmul.f32 %v2445_v23, %v2445_v23  ;;  %v551_v56 = vpop.f32.mrf.mxu0 }
  0xfd   : > { %v3337_v59 = vrot.slane %v3323_v28, %v6086_v32  ;;  %v4066_v60 = vmul.f32 %v2452_v10, %v2452_v10  ;;  %v4424_v63 = vcombine.low %v4061_v16, %v4062_v24  ;;  %v4425_v0 = vcombine.low %v4063_v37, %v4064_v45 }
  0xfe   : > { %v6237_v1 = vrot.slane %v3339_v48, %v6086_v32  ;;  %v5669_v2 = vpack.c.bf16 %v1545_v53, %v1545_v53  ;;  %v5670_v4 = vpack.c.bf16 %v2268_v57, %v2268_v57  ;;  %v865_v5 = vcombine.high %v6210_v38, %v6210_v38  ;;  %v5813_v7 = vpop.f32.mrf.mxu0 }
  0xff   : > { %v3338_v25 = vcombine.low %v3330_v31, %v3337_v59  ;;  %v6242_v8 = vrot.slane %v4424_v63, %v6086_v32  ;;  %v6245_v9 = vrot.slane %v4425_v0, %v6086_v32  ;;  %v4441_v13 = vcombine.low %v4065_v51, %v4066_v60 }
 0x100   : > { %5388 = vst [vmem:[%s6173_s10 + $0x10] sm:$0xf] %v5669_v2  ;;  %5389 = vst [vmem:[%s6173_s10 + $0x14] sm:$0x1] %v5670_v4  ;;  %v1554_v10 = vcombine.low %v6199_v20, %v864_v43  ;;  %v1570_v14 = vcombine.low %v6210_v38, %v865_v5  ;;  %v688_v53 = vmax.f32 %v6202_v21, 0.0  ;;  %v544_v57 = vadd.f32 %v6122_v44, %v543_v52  ;;  %v556_v15 = vpop.f32.mrf.mxu0 }
 0x101   : > { %v6253_v16 = vadd.f32 %v4001_v50, %v3338_v25  ;;  %v4440_v18 = vcombine.low %v6242_v8, %v6245_v9  ;;  %v6258_v19 = vrot.slane %v4441_v13, %v6086_v32  ;;  %v549_v23 = vadd.f32 %v6122_v44, %v548_v11 }
 0x102   : > { %v1568_v24 = vrot.slane %v1554_v10, %v6086_v32  ;;  %v1578_v20 = vrot.slane %v1570_v14, %v6086_v32  ;;  %v866_v38 = vcombine.high %v688_v53, %v688_v53  ;;  %v873_v21 = vrot.slane %v688_v53, %v6086_v32  ;;  %v5816_v43 = vpop.f32.mrf.mxu0 }
 0x103   : > { %v689_v52 = vmax.f32 %v544_v57, 0.0  ;;  %v690_v26 = vmax.f32 %v549_v23, 0.0  ;;  %v6265_v28 = vadd.f32 %v6165_v47, %v4423_v46  ;;  %v6268_v31 = vadd.f32 %v6122_v44, %v551_v56 }
 0x104   : > { %v1569_v37 = vcombine.low %v1561_v3, %v1568_v24  ;;  %v880_v45 = vrot.slane %v866_v38, %v6086_v32  ;;  %v881_v11 = vcombine.high %v873_v21, %v873_v21  ;;  %v6272_v48 = vadd.f32 %v6122_v44, %v556_v15  ;;  %v6274_v50 = vpop.f32.mrf.mxu0 }
 0x105   : > { %v883_v51 = vcombine.high %v689_v52, %v689_v52  ;;  %v890_v58 = vrot.slane %v689_v52, %v6086_v32  ;;  %v900_v59 = vcombine.high %v690_v26, %v690_v26  ;;  %v6278_v60 = vrot.slane %v690_v26, %v6086_v32 }
 0x106   : > { %v2269_v47 = vsel %vm1456_vm4, %v1569_v37, 0.0  ;;  %v1571_v46 = vcombine.low %v873_v21, %v881_v11  ;;  %v1593_v3 = vrot.slane %v880_v45, %v6086_v32  ;;  %v882_v56 = vcombine.high %v880_v45, %v880_v45  ;;  %v5817_v63 = vpop.f32.mrf.mxu0 }
 0x107   : > { %v2453_v0 = vcombine.high %v2269_v47, %v2269_v47  ;;  %v2460_v2 = vrot.slane %v2269_v47, %v6086_v32  ;;  %v6285_v4 = vrot.slane %v883_v51, %v6086_v32  ;;  %v898_v5 = vcombine.high %v890_v58, %v890_v58 }
 0x108   : > { %v1585_v7 = vrot.slane %v1571_v46, %v6086_v32  ;;  %v2271_v25 = vsel %vm1461_vm3, %v1593_v3, 0.0  ;;  %v1594_v13 = vcombine.low %v882_v56, %v890_v58  ;;  %v6291_v10 = vrot.slane %v900_v59, %v6086_v32  ;;  %v6293_v14 = vpop.f32.mrf.mxu0 }
 0x109   : > { %v2467_v53 = vrot.slane %v2453_v0, %v6086_v32  ;;  %v2468_v57 = vcombine.high %v2460_v2, %v2460_v2  ;;  %v4067_v15 = vmul.f32 %v2460_v2, %v2460_v2  ;;  %v6297_v23 = vrot.slane %v2271_v25, %v6086_v32 }
 0x10a   : > { %v1586_v24 = vcombine.low %v1578_v20, %v1585_v7  ;;  %v5597_v38 = vcombine.low %v1585_v7, %v1585_v7  ;;  %v5673_v21 = vpack.c.bf16 %v2271_v25, %v2271_v25  ;;  %v1595_v43 = vcombine.low %v898_v5, %v6285_v4  ;;  %v5820_v52 = vpop.f32.mrf.mxu0 }
 0x10b   : > { %v2469_v26 = vcombine.high %v2467_v53, %v2467_v53  ;;  %v3340_v37 = vcombine.low %v2460_v2, %v2468_v57  ;;  %v4068_v45 = vmul.f32 %v2468_v57, %v2468_v57  ;;  %v4069_v11 = vmul.f32 %v2467_v53, %v2467_v53 }
 0x10c   : > { %v2477_v51 = vrot.slane %v1586_v24, %v6086_v32  ;;  %v2484_v58 = vrot.slane %v5597_v38, %v6086_v32  ;;  %v6304_v59 = vmul.f32 %v6297_v23, %v6297_v23  ;;  %v5719_v46 = vpack.c.bf16 %v1586_v24, %v2269_v47  ;;  %5392 = vst [vmem:[%s6173_s10 + $0x20] sm:$0x1] %v5673_v21  ;;  %v6307_v20 = vpop.f32.mrf.mxu0  ;;  %v6314_v24 = vpop.f32.mrf.mxu1 }
 0x10d   : > { %v3354_v3 = vrot.slane %v3340_v37, %v6086_v32  ;;  %v3356_v56 = vcombine.low %v2467_v53, %v2469_v26  ;;  %v4070_v63 = vmul.f32 %v2469_v26, %v2469_v26  ;;  %v4442_v0 = vcombine.low %v4067_v15, %v4068_v45 }
 0x10e   : > { %v2485_v2 = vcombine.high %v2477_v51, %v2477_v51  ;;  %v2486_v5 = vcombine.high %v2484_v58, %v2484_v58  ;;  %v4071_v7 = vmul.f32 %v2477_v51, %v2477_v51  ;;  %v4073_v25 = vmul.f32 %v2484_v58, %v2484_v58  ;;  %5756 = vst [vmem:[%s6173_s10 + $0x18] sm:$0xff] %v5719_v46   ;;  %v5821_v57 = vpop.f32.mrf.mxu0 }
 0x10f   : > { %v3355_v38 = vcombine.low %v6237_v1, %v3354_v3  ;;  %v4456_v52 = vrot.slane %v4442_v0, %v6086_v32  ;;  %v4458_v12 = vcombine.low %v4069_v11, %v4070_v63  ;;  %v3364_v47 = vrot.slane %v3356_v56, %v6086_v32  ;;  %v5853_v3 = vpop.f32.mrf.mxu1 }
 0x110   : > { %v3357_v21 = vcombine.low %v2477_v51, %v2485_v2  ;;  %v3373_v37 = vcombine.low %v2484_v58, %v2486_v5  ;;  %v4072_v53 = vmul.f32 %v2485_v2, %v2485_v2  ;;  %v4074_v26 = vmul.f32 %v2486_v5, %v2486_v5  ;;  %v6316_v15 = vpop.f32.mrf.mxu0 }
 0x111   : > { %v4457_v45 = vcombine.low %v6258_v19, %v4456_v52  ;;  %v4003_v46 = vadd.f32 %v6253_v16, %v3355_v38  ;;  %v4466_v57 = vrot.slane %v4458_v12, %v6086_v32  ;;  %v1602_v1 = vrot.slane %v1594_v13, %v6086_v32 }
 0x112   : > { %v3371_v11 = vrot.slane %v3357_v21, %v6086_v32  ;;  %v6324_v56 = vrot.slane %v3373_v37, %v6086_v32  ;;  %v4459_v51 = vcombine.low %v4071_v7, %v4072_v53  ;;  %v4475_v58 = vcombine.low %v4073_v25, %v4074_v26  ;;  %v5824_v63 = vpop.f32.mrf.mxu0 }
 0x113   : > { %v1609_v0 = vrot.slane %v1595_v43, %v6086_v32  ;;  %v899_v19 = vcombine.high %v6285_v4, %v6285_v4  ;;  %v915_v16 = vcombine.high %v6278_v60, %v6278_v60  ;;  %v916_v12 = vcombine.high %v6291_v10, %v6291_v10 }
 0x114   : > { %v3372_v13 = vcombine.low %v3364_v47, %v3371_v11  ;;  %v4473_v2 = vrot.slane %v4459_v51, %v6086_v32  ;;  %v6335_v5 = vrot.slane %v4475_v58, %v6086_v32  ;;  %v5104_v43 = vadd.f32 %v6265_v28, %v4440_v18  ;;  %v6341_v7 = vpop.f32.mrf.mxu0 }
 0x115   : > { %v1610_v4 = vcombine.low %v1602_v1, %v1609_v0  ;;  %v1611_v25 = vcombine.low %v899_v19, %v6278_v60  ;;  %v1612_v38 = vcombine.low %v915_v16, %v6291_v10  ;;  %v1634_v52 = vrot.slane %v916_v12, %v6086_v32 }
 0x116   : > { %v4004_v47 = vadd.f32 %v4003_v46, %v3372_v13  ;;  %v4474_v21 = vcombine.low %v4466_v57, %v4473_v2  ;;  %v5105_v37 = vadd.f32 %v5104_v43, %v4457_v45  ;;  %v6347_v53 = vmax.f32 %v6268_v31, 0.0  ;;  %v5825_v26 = vpop.f32.mrf.mxu0 }
 0x117   : > { %v2272_v8 = vsel %vm1456_vm4, %v1610_v4, 0.0  ;;  %v1619_v9 = vrot.slane %v1611_v25, %v6086_v32  ;;  %v1626_v18 = vrot.slane %v1612_v38, %v6086_v32  ;;  %v2274_v28 = vsel %vm1461_vm3, %v1634_v52, 0.0 }
 0x118   : > { %v2494_v60 = vcombine.high %v2272_v8, %v2272_v8  ;;  %v2501_v10 = vrot.slane %v2272_v8, %v6086_v32  ;;  %v5674_v46 = vpack.c.bf16 %v2272_v8, %v2272_v8  ;;  %v2534_v45 = vrot.slane %v2274_v28, %v6086_v32  ;;  %v6357_v31 = vpop.f32.mrf.mxu0 }
 0x119   : > { %v1627_v57 = vcombine.low %v1619_v9, %v1626_v18  ;;  %v5598_v1 = vcombine.low %v1626_v18, %v1626_v18  ;;  %v5106_v3 = vadd.f32 %v5105_v37, %v4474_v21  ;;  %v5676_v11 = vpack.c.bf16 %v2274_v28, %v2274_v28 }
 0x11a   : > { %v2508_v51 = vrot.slane %v2494_v60, %v6086_v32  ;;  %v2509_v58 = vcombine.high %v2501_v10, %v2501_v10  ;;  %v3374_v63 = vcombine.low %v6297_v23, %v2501_v10  ;;  %v4076_v0 = vmul.f32 %v2501_v10, %v2501_v10  ;;  %5393 = vst [vmem:[%s6173_s10 + $0x24] sm:$0xf] %v5674_v46  ;;  %v5828_v19 = vpop.f32.mrf.mxu0 }
 0x11b   : > { %v2518_v16 = vrot.slane %v1627_v57, %v6086_v32  ;;  %v2525_v12 = vrot.slane %v5598_v1, %v6086_v32  ;;  %v4084_v13 = vmul.f32 %v2534_v45, %v2534_v45  ;;  %v5675_v2 = vpack.c.bf16 %v1627_v57, %v1627_v57  ;;  %5395 = vst [vmem:[%s6173_s10 + $0x2c] sm:$0x1] %v5676_v11 }
 0x11c   : > { %v3388_v43 = vrot.slane %v3374_v63, %v6086_v32  ;;  %v3390_v4 = vcombine.low %v2509_v58, %v2508_v51  ;;  %v4077_v25 = vmul.f32 %v2509_v58, %v2509_v58  ;;  %v4078_v38 = vmul.f32 %v2508_v51, %v2508_v51  ;;  %v6366_v52 = vpop.f32.mrf.mxu0 }
 0x11d   : > { %v4476_v23 = vcombine.low %v6304_v59, %v4076_v0  ;;  %v2510_v21 = vcombine.high %v2508_v51, %v2508_v51  ;;  %v2526_v37 = vcombine.high %v2518_v16, %v2518_v16  ;;  %v2527_v26 = vcombine.high %v2525_v12, %v2525_v12  ;;  %5394 = vst [vmem:[%s6173_s10 + $0x28] sm:$0xf] %v5675_v2 }
 0x11e   : > { %v3389_v8 = vcombine.low %v6324_v56, %v3388_v43  ;;  %v4492_v9 = vcombine.low %v4077_v25, %v4078_v38  ;;  %v3398_v18 = vrot.slane %v3390_v4, %v6086_v32  ;;  %v4080_v28 = vmul.f32 %v2518_v16, %v2518_v16  ;;  %v5829_v60 = vpop.f32.mrf.mxu0 }
 0x11f   : > { %v4490_v10 = vrot.slane %v4476_v23, %v6086_v32  ;;  %v3391_v46 = vcombine.low %v2510_v21, %v2518_v16  ;;  %v3407_v57 = vcombine.low %v2526_v37, %v2525_v12  ;;  %v3408_v1 = vcombine.low %v2527_v26, %v2534_v45 }
 0x120   : > { %v4005_v11 = vadd.f32 %v4004_v47, %v3389_v8  ;;  %v4079_v58 = vmul.f32 %v2510_v21, %v2510_v21  ;;  %v4081_v63 = vmul.f32 %v2526_v37, %v2526_v37  ;;  %v4082_v59 = vmul.f32 %v2525_v12, %v2525_v12  ;;  %v6373_v51 = vpop.f32.mrf.mxu0  ;;  %v6382_v21 = vpop.f32.mrf.mxu1 }
 0x121   : > { %v4491_v0 = vcombine.low %v6335_v5, %v4490_v10  ;;  %v3405_v56 = vrot.slane %v3391_v46, %v6086_v32  ;;  %v3415_v19 = vrot.slane %v3407_v57, %v6086_v32  ;;  %v3422_v2 = vrot.slane %v3408_v1, %v6086_v32 }
 0x122   : > { %v4083_v43 = vmul.f32 %v2527_v26, %v2527_v26  ;;  %v4493_v4 = vcombine.low %v4079_v58, %v4080_v28  ;;  %v4500_v16 = vrot.slane %v4492_v9, %v6086_v32  ;;  %v4509_v25 = vcombine.low %v4081_v63, %v4082_v59  ;;  %v5832_v45 = vpop.f32.mrf.mxu0  ;;  %v5856_v60 = vpop.f32.mrf.mxu1 }
 0x123   : > { %v3406_v47 = vcombine.low %v3398_v18, %v3405_v56  ;;  %v3423_v38 = vcombine.low %v3415_v19, %v3422_v2  ;;  %v5107_v23 = vadd.f32 %v5106_v3, %v4491_v0  ;;  %v917_v12 = vcombine.high %v6347_v53, %v6347_v53 }
 0x124   : > { %v4507_v5 = vrot.slane %v4493_v4, %v6086_v32  ;;  %v4510_v37 = vcombine.low %v4083_v43, %v4084_v13  ;;  %v4517_v8 = vrot.slane %v4509_v25, %v6086_v32  ;;  %v924_v26 = vrot.slane %v6347_v53, %v6086_v32  ;;  %v6402_v56 = vpop.f32.mrf.mxu0  ;;  %v6430_v60 = vpop.f32.mrf.mxu1 }
 0x125   : > { %v4006_v28 = vadd.f32 %v4005_v11, %v3406_v47  ;;  %v931_v9 = vrot.slane %v917_v12, %v6086_v32  ;;  %v692_v18 = vmax.f32 %v6272_v48, 0.0  ;;  %v560_v3 = vadd.f32 %v6122_v44, %v6274_v50 }
 0x126   : > { %v4508_v10 = vcombine.low %v4500_v16, %v4507_v5  ;;  %v4524_v46 = vrot.slane %v4510_v37, %v6086_v32  ;;  %v932_v57 = vcombine.high %v924_v26, %v924_v26  ;;  %v7476_v13 = vcombine.high %v6168_v49, %v6168_v49  ;;  %v5833_v47 = vpop.f32.mrf.mxu0 }
 0x127   : > { %v6399_v53 = vadd.f32 %v4006_v28, %v3423_v38  ;;  %v933_v11 = vcombine.high %v931_v9, %v931_v9  ;;  %v934_v58 = vcombine.high %v692_v18, %v692_v18  ;;  %v941_v48 = vrot.slane %v692_v18, %v6086_v32 }
 0x128   : > { %v6397_v1 = vcombine.low %v6168_v49, %v7476_v13  ;;  %v4525_v63 = vcombine.low %v4517_v8, %v4524_v46  ;;  %v5108_v59 = vadd.f32 %v5107_v23, %v4508_v10  ;;  %v1635_v50 = vcombine.low %v924_v26, %v932_v57 }
 0x129   : > { %v693_v0 = vmax.f32 %v560_v3, 0.0  ;;  %v1636_v19 = vcombine.low %v931_v9, %v933_v11  ;;  %v948_v2 = vrot.slane %v934_v58, %v6086_v32  ;;  %v949_v43 = vcombine.high %v941_v48, %v941_v48 }
 0x12a   : > { %v6408_v49 = vsel %vm1456_vm4, %v6194_v17, 0.0  ;;  %v6410_v4 = vadd.f32 %v5108_v59, %v4525_v63  ;;  %v1643_v16 = vrot.slane %v1635_v50, %v6086_v32  ;;  %v6428_v3 = vmul.f32 %v6187_v6, %v6187_v6  ;;  %v5857_v59 = vpop.f32.mrf.mxu1 }
 0x12b   : > { %v951_v25 = vcombine.high %v693_v0, %v693_v0  ;;  %v958_v45 = vrot.slane %v693_v0, %v6086_v32  ;;  %v1650_v38 = vrot.slane %v1636_v19, %v6086_v32  ;;  %v950_v23 = vcombine.high %v948_v2, %v948_v2 }
 0x12c   : > { %v1652_v12 = vcombine.low %v941_v48, %v949_v43  ;;  %v2781_v5 = vcombine.high %v6408_v49, %v6408_v49  ;;  %v6423_v26 = vrot.slane %v6408_v49, %v6086_v32 }
 0x12d   : > { %v6418_v37 = vrot.slane %v951_v25, %v6086_v32  ;;  %v966_v17 = vcombine.high %v958_v45, %v958_v45  ;;  %v1675_v8 = vrot.slane %v958_v45, %v6086_v32  ;;  %v1651_v28 = vcombine.low %v1643_v16, %v1650_v38 }
 0x12e   : > { %v1653_v9 = vcombine.low %v948_v2, %v950_v23  ;;  %v1660_v18 = vrot.slane %v1652_v12, %v6086_v32  ;;  %v6438_v57 = vrot.slane %v2781_v5, %v6086_v32  ;;  %v6442_v13 = vcombine.high %v6423_v26, %v6423_v26 }
 0x12f   : > { %v6433_v10 = vcombine.low %v966_v17, %v6418_v37  ;;  %v2277_v46 = vsel %vm1461_vm3, %v1675_v8, 0.0  ;;  %v2275_v11 = vsel %vm1456_vm4, %v1651_v28, 0.0  ;;  %v1172_v2 = vcombine.high %v6176_v54, %v6176_v54 }
 0x130   : > { %v1667_v58 = vrot.slane %v1653_v9, %v6086_v32  ;;  %v6448_v48 = vrot.slane %v2277_v46, %v6086_v32  ;;  %v5679_v63 = vpack.c.bf16 %v2277_v46, %v2277_v46  ;;  %v2535_v50 = vcombine.high %v2275_v11, %v2275_v11 }
 0x131   : > { %v2542_v0 = vrot.slane %v2275_v11, %v6086_v32  ;;  %v6460_v45 = vmul.f32 %v6423_v26, %v6423_v26  ;;  %v2797_v12 = vcombine.high %v6438_v57, %v6438_v57  ;;  %v3646_v28 = vcombine.low %v6423_v26, %v6442_v13 }
 0x132   : > { %v1668_v43 = vcombine.low %v1660_v18, %v1667_v58  ;;  %v5599_v16 = vcombine.low %v1667_v58, %v1667_v58  ;;  %5398 = vst [vmem:[%s6173_s10 + $0x38] sm:$0x1] %v5679_v63  ;;  %v2549_v47 = vrot.slane %v2535_v50, %v6086_v32  ;;  %v6465_v23 = vmul.f32 %v6448_v48, %v6448_v48 }
 0x133   : > { %v2550_v38 = vcombine.high %v2542_v0, %v2542_v0  ;;  %v4085_v46 = vmul.f32 %v2542_v0, %v2542_v0 }
 0x134   : > { %v2559_v5 = vrot.slane %v1668_v43, %v6086_v32  ;;  %v2566_v17 = vrot.slane %v5599_v16, %v6086_v32  ;;  %v5724_v8 = vpack.c.bf16 %v1668_v43, %v2275_v11  ;;  %v2551_v9 = vcombine.high %v2549_v47, %v2549_v47  ;;  %v6474_v43 = vpop.f32.mrf.mxu0 }
 0x135   : > { %v3424_v18 = vcombine.low %v2542_v0, %v2550_v38  ;;  %v4086_v58 = vmul.f32 %v2550_v38, %v2550_v38  ;;  %v4087_v63 = vmul.f32 %v2549_v47, %v2549_v47 }
 0x136   : > { %v2567_v59 = vcombine.high %v2559_v5, %v2559_v5  ;;  %v2568_v50 = vcombine.high %v2566_v17, %v2566_v17  ;;  %v4089_v25 = vmul.f32 %v2559_v5, %v2559_v5  ;;  %5757 = vst [vmem:[%s6173_s10 + $0x30] sm:$0xff] %v5724_v8   ;;  %v3425_v19 = vcombine.low %v2549_v47, %v2551_v9 }
 0x137   : > { %v4088_v42 = vmul.f32 %v2551_v9, %v2551_v9  ;;  %v4526_v39 = vcombine.low %v4085_v46, %v4086_v58  ;;  %v4091_v40 = vmul.f32 %v2566_v17, %v2566_v17  ;;  %v3432_v26 = vrot.slane %v3424_v18, %v6086_v32  ;;  %v5836_v46 = vpop.f32.mrf.mxu0 }
 0x138   : > { %v3441_v41 = vcombine.low %v2559_v5, %v2567_v59  ;;  %v3442_v36 = vcombine.low %v2566_v17, %v2568_v50  ;;  %v4090_v16 = vmul.f32 %v2567_v59, %v2567_v59  ;;  %v4092_v11 = vmul.f32 %v2568_v50, %v2568_v50 }
 0x139   : > { %v3439_v0 = vrot.slane %v3425_v19, %v6086_v32  ;;  %v4527_v38 = vcombine.low %v4087_v63, %v4088_v42  ;;  %v4534_v33 = vrot.slane %v4526_v39, %v6086_v32  ;;  %v4141_v58 = vmul.f32 %v6438_v57, %v6438_v57 }
 0x13a   : > { %v3449_v35 = vrot.slane %v3441_v41, %v6086_v32  ;;  %v3456_v47 = vrot.slane %v3442_v36, %v6086_v32  ;;  %v4543_v8 = vcombine.low %v4089_v25, %v4090_v16  ;;  %v4544_v9 = vcombine.low %v4091_v40, %v4092_v11 }
 0x13b   : > { %v3440_v5 = vcombine.low %v3432_v26, %v3439_v0  ;;  %v4541_v17 = vrot.slane %v4527_v38, %v6086_v32  ;;  %v4142_v59 = vmul.f32 %v2797_v12, %v2797_v12  ;;  %v6488_v39 = vmul.f32 %v6442_v13, %v6442_v13 }
 0x13c   : > { %v3457_v18 = vcombine.low %v3449_v35, %v3456_v47  ;;  %v4551_v19 = vrot.slane %v4543_v8, %v6086_v32  ;;  %v4558_v42 = vrot.slane %v4544_v9, %v6086_v32  ;;  %v3662_v41 = vcombine.low %v6438_v57, %v2797_v12 }
 0x13d   : > { %v4542_v36 = vcombine.low %v4534_v33, %v4541_v17  ;;  %v4008_v40 = vadd.f32 %v6399_v53, %v3440_v5  ;;  %v565_v25 = vadd.f32 %v6122_v44, %v6293_v14  ;;  %v4764_v50 = vcombine.low %v4141_v58, %v4142_v59 }
 0x13e   : > { %v4559_v63 = vcombine.low %v4551_v19, %v4558_v42  ;;  %v967_v35 = vcombine.high %v6418_v37, %v6418_v37  ;;  %v1179_v16 = vrot.slane %v6176_v54, %v6086_v32  ;;  %v6502_v53 = vrot.slane %v1172_v2, %v6086_v32 }
 0x13f   : > { %v6498_v11 = vadd.f32 %v4008_v40, %v3457_v18  ;;  %v5110_v13 = vadd.f32 %v6410_v4, %v4542_v36  ;;  %v694_v33 = vmax.f32 %v565_v25, 0.0  ;;  %v6505_v57 = vrot.slane %v3646_v28, %v6086_v32  ;;  %v6531_v40 = vpop.f32.mrf.mxu1 }
 0x140   : > { %v1187_v12 = vcombine.high %v1179_v16, %v1179_v16  ;;  %v568_v37 = vadd.f32 %v6122_v44, %v6307_v20  ;;  %v1921_v4 = vrot.slane %v6502_v53, %v6086_v32  ;;  %v6517_v38 = vrot.slane %v3662_v41, %v6086_v32 }
 0x141   : > { %v6511_v26 = vadd.f32 %v5110_v13, %v4559_v63  ;;  %v968_v54 = vcombine.high %v694_v33, %v694_v33  ;;  %v975_v0 = vrot.slane %v694_v33, %v6086_v32  ;;  %v6520_v28 = vrot.slane %v4764_v50, %v6086_v32 }
 0x142   : > { %v1899_v2 = vcombine.low %v1179_v16, %v1187_v12  ;;  %v695_v47 = vmax.f32 %v568_v37, 0.0  ;;  %v2295_v46 = vsel %vm1461_vm3, %v1921_v4, 0.0  ;;  %v7478_v41 = vrot.slane %v6397_v1, %v6086_v32 }
 0x143   : > { %7477 = vst [vmem:[#allocation12_spill] sm:$0xff] %v6520_v28  ;;  %v982_v8 = vrot.slane %v968_v54, %v6086_v32  ;;  %v983_v20 = vcombine.high %v975_v0, %v975_v0  ;;  %v1677_v9 = vcombine.low %v967_v35, %v975_v0  ;;  %v6527_v17 = vrot.slane %v2295_v46, %v6086_v32  ;;  %v5860_v54 = vpop.f32.mrf.mxu1 }
 0x144   : > { %v1913_v5 = vrot.slane %v1899_v2, %v6086_v32  ;;  %v5697_v58 = vpack.c.bf16 %v2295_v46, %v2295_v46  ;;  %v985_v59 = vcombine.high %v695_v47, %v695_v47  ;;  %v992_v36 = vrot.slane %v695_v47, %v6086_v32 }
 0x145   : > { %v1691_v18 = vrot.slane %v1677_v9, %v6086_v32  ;;  %v1693_v19 = vcombine.low %v983_v20, %v982_v8  ;;  %v984_v42 = vcombine.high %v982_v8, %v982_v8  ;;  %v616_v35 = vadd.f32 %v6122_v44, %v6161_v29 }
 0x146   : > { %v1914_v25 = vcombine.low %v7478_v41, %v1913_v5  ;;  %v5605_v63 = vcombine.low %v1913_v5, %v1913_v5  ;;  %5416 = vst [vmem:[%s6173_s10 + $0x80] sm:$0x1] %v5697_v58  ;;  %v999_v50 = vrot.slane %v985_v59, %v6086_v32  ;;  %v7479_v16 = vrot.slane %v6433_v10, %v6086_v32  ;;  %v6564_v41 = vpop.f32.mrf.mxu0 }
 0x147   : > { %v1000_v33 = vcombine.high %v992_v36, %v992_v36  ;;  %v1694_v12 = vcombine.low %v984_v42, %v992_v36  ;;  %v6549_v4 = vmul.f32 %v6527_v17, %v6527_v17  ;;  %v1701_v29 = vrot.slane %v1693_v19, %v6086_v32 }
 0x148   : > { %v1692_v13 = vcombine.low %v7479_v16, %v1691_v18  ;;  %v2805_v1 = vrot.slane %v1914_v25, %v6086_v32  ;;  %v2812_v0 = vrot.slane %v5605_v63, %v6086_v32  ;;  %v5739_v44 = vpack.c.bf16 %v1914_v25, %v6408_v49  ;;  %v5837_v14 = vpop.f32.mrf.mxu0 }
 0x149   : > { %v1001_v2 = vcombine.high %v999_v50, %v999_v50  ;;  %v1708_v47 = vrot.slane %v1694_v12, %v6086_v32  ;;  %v1716_v49 = vrot.slane %v1000_v33, %v6086_v32 }
 0x14a   : > { %v2278_v10 = vsel %vm1456_vm4, %v1692_v13, 0.0  ;;  %v2813_v46 = vcombine.high %v2805_v1, %v2805_v1  ;;  %5760 = vst [vmem:[%s6173_s10 + $0x78] sm:$0xff] %v5739_v44   ;;  %v2814_v5 = vcombine.high %v2812_v0, %v2812_v0  ;;  %v4143_v58 = vmul.f32 %v2805_v1, %v2805_v1 }
 0x14b   : > { %v2576_v8 = vcombine.high %v2278_v10, %v2278_v10  ;;  %v2583_v20 = vrot.slane %v2278_v10, %v6086_v32  ;;  %v5680_v9 = vpack.c.bf16 %v2278_v10, %v2278_v10  ;;  %v6558_v59 = vmul.f32 %v2812_v0, %v2812_v0 }
 0x14c   : > { %v3663_v25 = vcombine.low %v2805_v1, %v2813_v46  ;;  %v3679_v63 = vcombine.low %v2812_v0, %v2814_v5  ;;  %v4144_v16 = vmul.f32 %v2813_v46, %v2813_v46  ;;  %v4146_v13 = vmul.f32 %v2814_v5, %v2814_v5 }
 0x14d   : > { %v2590_v18 = vrot.slane %v2576_v8, %v6086_v32  ;;  %v2591_v19 = vcombine.high %v2583_v20, %v2583_v20  ;;  %v3458_v42 = vcombine.low %v6448_v48, %v2583_v20  ;;  %v4094_v36 = vmul.f32 %v2583_v20, %v2583_v20  ;;  %5399 = vst [vmem:[%s6173_s10 + $0x3c] sm:$0xf] %v5680_v9 }
 0x14e   : > { %v707_v10 = vmax.f32 %v616_v35, 0.0  ;;  %v6568_v8 = vrot.slane %v3663_v25, %v6086_v32  ;;  %v4765_v37 = vcombine.low %v4143_v58, %v4144_v16  ;;  %v1709_v48 = vcombine.low %v1701_v29, %v1708_v47 }
 0x14f   : > { %v3459_v12 = vcombine.low %v2591_v19, %v2590_v18  ;;  %v4095_v54 = vmul.f32 %v2591_v19, %v2591_v19  ;;  %v4096_v44 = vmul.f32 %v2590_v18, %v2590_v18  ;;  %v4560_v33 = vcombine.low %v6465_v23, %v4094_v36 }
 0x150   : > { %v3466_v20 = vrot.slane %v3458_v42, %v6086_v32  ;;  %v6573_v0 = vrot.slane %v3679_v63, %v6086_v32  ;;  %v6578_v14 = vrot.slane %v4765_v37, %v6086_v32  ;;  %v4781_v23 = vcombine.low %v6558_v59, %v4146_v13 }
 0x151   : > { %v3473_v9 = vrot.slane %v3459_v12, %v6086_v32  ;;  %v4561_v1 = vcombine.low %v4095_v54, %v4096_v44  ;;  %v2280_v35 = vsel %vm1461_vm3, %v1716_v49, 0.0  ;;  %v4568_v5 = vrot.slane %v4560_v33, %v6086_v32 }
 0x152   : > { %7480 = vst [vmem:[#allocation13_spill] sm:$0xff] %v6578_v14  ;;  %v6585_v19 = vcombine.low %v999_v50, %v1001_v2  ;;  %v2592_v36 = vcombine.high %v2590_v18, %v2590_v18  ;;  %v5600_v25 = vcombine.low %v1708_v47, %v1708_v47  ;;  %v2600_v37 = vrot.slane %v1709_v48, %v6086_v32 }
 0x153   : > { %v3474_v29 = vcombine.low %v3466_v20, %v3473_v9  ;;  %v4575_v58 = vrot.slane %v4561_v1, %v6086_v32  ;;  %v2616_v59 = vrot.slane %v2280_v35, %v6086_v32  ;;  %v5681_v16 = vpack.c.bf16 %v1709_v48, %v1709_v48 }
 0x154   : > { %v2607_v13 = vrot.slane %v5600_v25, %v6086_v32  ;;  %v2608_v12 = vcombine.high %v2600_v37, %v2600_v37  ;;  %v3475_v50 = vcombine.low %v2592_v36, %v2600_v37  ;;  %v4097_v2 = vmul.f32 %v2592_v36, %v2592_v36 }
 0x155   : > { %v4576_v63 = vcombine.low %v4568_v5, %v4575_v58  ;;  %v4010_v49 = vadd.f32 %v6498_v11, %v3474_v29  ;;  %v4098_v54 = vmul.f32 %v2600_v37, %v2600_v37  ;;  %v4102_v44 = vmul.f32 %v2616_v59, %v2616_v59  ;;  %5400 = vst [vmem:[%s6173_s10 + $0x40] sm:$0xf] %v5681_v16 }
 0x156   : > { %v5682_v18 = vpack.c.bf16 %v2280_v35, %v2280_v35  ;;  %v2609_v47 = vcombine.high %v2607_v13, %v2607_v13  ;;  %v3476_v20 = vcombine.low %v2608_v12, %v2607_v13  ;;  %v3483_v9 = vrot.slane %v3475_v50, %v6086_v32 }
 0x157   : > { %v5112_v33 = vadd.f32 %v6511_v26, %v4576_v63  ;;  %v4099_v1 = vmul.f32 %v2608_v12, %v2608_v12  ;;  %v4100_v5 = vmul.f32 %v2607_v13, %v2607_v13  ;;  %v4577_v11 = vcombine.low %v4097_v2, %v4098_v54  ;;  %v6602_v26 = vld [vmem:[%s7424_s2] ss:$0 sm:$0xff] }
 0x158   : > { %5401 = vst [vmem:[%s6173_s10 + $0x44] sm:$0x1] %v5682_v18  ;;  %v1189_v48 = vcombine.high %v707_v10, %v707_v10  ;;  %v1196_v29 = vrot.slane %v707_v10, %v6086_v32  ;;  %v3490_v58 = vrot.slane %v3476_v20, %v6086_v32  ;;  %v3492_v36 = vcombine.low %v2609_v47, %v2616_v59 }
 0x159   : > { %v4101_v25 = vmul.f32 %v2609_v47, %v2609_v47  ;;  %v573_v35 = vadd.f32 %v6602_v26, %v6316_v15  ;;  %v4578_v37 = vcombine.low %v4099_v1, %v4100_v5  ;;  %v4585_v63 = vrot.slane %v4577_v11, %v6086_v32 }
 0x15a   : > { %v1203_v16 = vrot.slane %v1189_v48, %v6086_v32  ;;  %v1204_v13 = vcombine.high %v1196_v29, %v1196_v29  ;;  %v6609_v10 = vrot.slane %v4781_v23, %v6086_v32  ;;  %v3491_v12 = vcombine.low %v3483_v9, %v3490_v58  ;;  %v6632_v58 = vpop.f32.mrf.mxu1 }
 0x15b   : > { %v4594_v59 = vcombine.low %v4101_v25, %v4102_v44  ;;  %v7482_v50 = vcombine.high %v6502_v53, %v6502_v53  ;;  %v4592_v54 = vrot.slane %v4578_v37, %v6086_v32  ;;  %v696_v47 = vmax.f32 %v573_v35, 0.0 }
 0x15c   : > { %7481 = vst [vmem:[#allocation14_spill] sm:$0xff] %v6609_v10  ;;  %v1923_v18 = vcombine.low %v1204_v13, %v1203_v16  ;;  %v621_v15 = vadd.f32 %v6602_v26, %v6181_v62  ;;  %v1725_v20 = vrot.slane %v6585_v19, %v6086_v32  ;;  %v6620_v1 = vrot.slane %v3492_v36, %v6086_v32 }
 0x15d   : > { %v1922_v2 = vcombine.low %v7482_v50, %v1196_v29  ;;  %v6622_v23 = vadd.f32 %v4010_v49, %v3491_v12  ;;  %v4593_v9 = vcombine.low %v4585_v63, %v4592_v54  ;;  %v1002_v5 = vcombine.high %v696_v47, %v696_v47  ;;  %v5861_v12 = vpop.f32.mrf.mxu1 }
 0x15e   : > { %v1937_v53 = vrot.slane %v1923_v18, %v6086_v32  ;;  %v1009_v11 = vrot.slane %v696_v47, %v6086_v32  ;;  %v6628_v48 = vrot.slane %v4594_v59, %v6086_v32  ;;  %v708_v62 = vmax.f32 %v621_v15, 0.0 }
 0x15f   : > { %v1930_v44 = vrot.slane %v1922_v2, %v6086_v32  ;;  %v1205_v29 = vcombine.high %v1203_v16, %v1203_v16  ;;  %v576_v19 = vadd.f32 %v6602_v26, %v6341_v7  ;;  %v6634_v49 = vadd.f32 %v5112_v33, %v4593_v9 }
 0x160   : > { %v1016_v25 = vrot.slane %v1002_v5, %v6086_v32  ;;  %v1017_v35 = vcombine.high %v1009_v11, %v1009_v11  ;;  %v1206_v37 = vcombine.high %v708_v62, %v708_v62  ;;  %v1213_v63 = vrot.slane %v708_v62, %v6086_v32  ;;  %v6654_v62 = vpop.f32.mrf.mxu1 }
 0x161   : > { %v1938_v36 = vcombine.low %v1930_v44, %v1937_v53  ;;  %v624_v13 = vadd.f32 %v6602_v26, %v6204_v22  ;;  %v581_v16 = vadd.f32 %v6602_v26, %v6357_v31  ;;  %v6644_v50 = vmax.f32 %v576_v19, 0.0 }
 0x162   : > { %v1018_v33 = vcombine.high %v1016_v25, %v1016_v25  ;;  %v1718_v59 = vcombine.low %v1009_v11, %v1017_v35  ;;  %v1220_v47 = vrot.slane %v1206_v37, %v6086_v32  ;;  %v1221_v31 = vcombine.high %v1213_v63, %v1213_v63 }
 0x163   : > { %v2296_v7 = vsel %vm1456_vm4, %v1938_v36, 0.0  ;;  %v1939_v44 = vcombine.low %v1205_v29, %v1213_v63  ;;  %v6656_v12 = vmax.f32 %v624_v13, 0.0  ;;  %v6663_v63 = vmax.f32 %v581_v16, 0.0 }
 0x164   : > { %v2822_v2 = vcombine.high %v2296_v7, %v2296_v7  ;;  %v2829_v54 = vrot.slane %v2296_v7, %v6086_v32  ;;  %v5698_v18 = vpack.c.bf16 %v2296_v7, %v2296_v7  ;;  %v1732_v22 = vrot.slane %v1718_v59, %v6086_v32  ;;  %v5864_v7 = vpop.f32.mrf.mxu1 }
 0x165   : > { %v6649_v15 = vcombine.low %v1016_v25, %v1018_v33  ;;  %v1222_v36 = vcombine.high %v1220_v47, %v1220_v47  ;;  %v1940_v35 = vcombine.low %v1221_v31, %v1220_v47 }
 0x166   : > { %v2836_v9 = vrot.slane %v2822_v2, %v6086_v32  ;;  %v2837_v53 = vcombine.high %v2829_v54, %v2829_v54  ;;  %v3680_v5 = vcombine.low %v6527_v17, %v2829_v54  ;;  %v4148_v11 = vmul.f32 %v2829_v54, %v2829_v54  ;;  %5417 = vst [vmem:[%s6173_s10 + $0x84] sm:$0xf] %v5698_v18 }
 0x167   : > { %v1733_v19 = vcombine.low %v1725_v20, %v1732_v22  ;;  %v1947_v20 = vrot.slane %v1939_v44, %v6086_v32  ;;  %v1954_v13 = vrot.slane %v1940_v35, %v6086_v32  ;;  %v1962_v47 = vrot.slane %v1222_v36, %v6086_v32 }
 0x168   : > { %v6659_v37 = vrot.slane %v3680_v5, %v6086_v32  ;;  %v3696_v25 = vcombine.low %v2837_v53, %v2836_v9  ;;  %v4782_v17 = vcombine.low %v6549_v4, %v4148_v11  ;;  %v4149_v2 = vmul.f32 %v2837_v53, %v2837_v53 }
 0x169   : > { %v6668_v33 = vsel %vm1456_vm4, %v1733_v19, 0.0  ;;  %v1955_v18 = vcombine.low %v1947_v20, %v1954_v13  ;;  %v2838_v22 = vcombine.high %v2836_v9, %v2836_v9  ;;  %v4150_v31 = vmul.f32 %v2836_v9, %v2836_v9 }
 0x16a   : > { %v2617_v54 = vcombine.high %v6668_v33, %v6668_v33  ;;  %v2624_v16 = vrot.slane %v6668_v33, %v6086_v32  ;;  %v6679_v4 = vrot.slane %v4782_v17, %v6086_v32  ;;  %v5606_v11 = vcombine.low %v1954_v13, %v1954_v13 }
 0x16b   : > { %v2298_v35 = vsel %vm1461_vm3, %v1962_v47, 0.0  ;;  %v2846_v7 = vrot.slane %v1955_v18, %v6086_v32  ;;  %v6695_v20 = vrot.slane %v3696_v25, %v6086_v32  ;;  %v4798_v59 = vcombine.low %v4149_v2, %v4150_v31 }
 0x16c   : > { %7483 = vst [vmem:[#allocation15_spill] sm:$0xff] %v6679_v4  ;;  %v6683_v44 = vrot.slane %v2617_v54, %v6086_v32  ;;  %v2632_v5 = vcombine.high %v2624_v16, %v2624_v16  ;;  %v4103_v19 = vmul.f32 %v2624_v16, %v2624_v16  ;;  %v2853_v13 = vrot.slane %v5606_v11, %v6086_v32 }
 0x16d   : > { %7484 = vst [vmem:[#allocation16_spill] sm:$0xff] %v6695_v20  ;;  %v2854_v54 = vcombine.high %v2846_v7, %v2846_v7  ;;  %v2862_v53 = vrot.slane %v2298_v35, %v6086_v32  ;;  %v3697_v42 = vcombine.low %v2838_v22, %v2846_v7  ;;  %v4152_v31 = vmul.f32 %v2846_v7, %v2846_v7 }
 0x16e   : > { %v6692_v17 = vcombine.high %v6683_v44, %v6683_v44  ;;  %v3493_v36 = vcombine.low %v2624_v16, %v2632_v5  ;;  %v4104_v9 = vmul.f32 %v2632_v5, %v2632_v5  ;;  %v6702_v46 = vmul.f32 %v6683_v44, %v6683_v44 }
 0x16f   : > { %v2855_v34 = vcombine.high %v2853_v13, %v2853_v13  ;;  %v6705_v16 = vrot.slane %v3697_v42, %v6086_v32  ;;  %v3713_v25 = vcombine.low %v2854_v54, %v2853_v13  ;;  %v4151_v5 = vmul.f32 %v2838_v22, %v2838_v22 }
 0x170   : > { %v3507_v47 = vrot.slane %v3493_v36, %v6086_v32  ;;  %v4595_v29 = vcombine.low %v4103_v19, %v4104_v9  ;;  %v6710_v4 = vmul.f32 %v6692_v17, %v6692_v17  ;;  %v4153_v42 = vmul.f32 %v2854_v54, %v2854_v54  ;;  %v6718_v9 = vpop.f32.mrf.mxu1 }
 0x171   : > { %7485 = vst [vmem:[#allocation17_spill] sm:$0xff] %v6705_v16  ;;  %v3714_v10 = vcombine.low %v2855_v34, %v2862_v53  ;;  %v6716_v19 = vrot.slane %v3713_v25, %v6086_v32  ;;  %v4156_v14 = vmul.f32 %v2862_v53, %v2862_v53  ;;  %v6725_v7 = vrot.slane %v4798_v59, %v6086_v32 }
 0x172   : > { %v3508_v11 = vcombine.low %v6620_v1, %v3507_v47  ;;  %v4609_v2 = vrot.slane %v4595_v29, %v6086_v32  ;;  %v4154_v1 = vmul.f32 %v2853_v13, %v2853_v13  ;;  %v4155_v47 = vmul.f32 %v2855_v34, %v2855_v34  ;;  %v5865_v25 = vpop.f32.mrf.mxu1 }
 0x173   : > { %7486 = vst [vmem:[#allocation18_spill] sm:$0xff] %v6716_v19  ;;  %v6722_v28 = vrot.slane %v3714_v10, %v6086_v32  ;;  %v4799_v29 = vcombine.low %v4151_v5, %v4152_v31  ;;  %7488 = vst [vmem:[#allocation20_spill] sm:$0xff] %v6725_v7  ;;  %v5699_v36 = vpack.c.bf16 %v1955_v18, %v1955_v18 }
 0x174   : > { %v4610_v22 = vcombine.low %v6628_v48, %v4609_v2  ;;  %v4815_v16 = vcombine.low %v4153_v42, %v4154_v1  ;;  %v4816_v54 = vcombine.low %v4155_v47, %v4156_v14  ;;  %v5700_v20 = vpack.c.bf16 %v2298_v35, %v2298_v35  ;;  %v6768_v31 = vpop.f32.mrf.mxu1 }
 0x175   : > { %7487 = vst [vmem:[#allocation19_spill] sm:$0xff] %v6722_v28  ;;  %v1019_v48 = vcombine.high %v6644_v50, %v6644_v50  ;;  %v3509_v34 = vcombine.low %v6683_v44, %v6692_v17  ;;  %v6734_v53 = vrot.slane %v4799_v29, %v6086_v32  ;;  %5418 = vst [vmem:[%s6173_s10 + $0x88] sm:$0xf] %v5699_v36 }
 0x176   : > { %v1026_v59 = vrot.slane %v6644_v50, %v6086_v32  ;;  %v6740_v18 = vrot.slane %v4815_v16, %v6086_v32  ;;  %v6743_v14 = vrot.slane %v4816_v54, %v6086_v32  ;;  %5419 = vst [vmem:[%s6173_s10 + $0x8c] sm:$0x1] %v5700_v20  ;;  %v6748_v44 = vadd.f32 %v6622_v23, %v3508_v11 }
 0x177   : > { %7489 = vst [vmem:[#allocation21_spill] sm:$0xff] %v6734_v53  ;;  %v1033_v35 = vrot.slane %v1019_v48, %v6086_v32  ;;  %v4611_v17 = vcombine.low %v6702_v46, %v6710_v4  ;;  %v6755_v50 = vadd.f32 %v6634_v49, %v4610_v22  ;;  %v1223_v2 = vcombine.high %v6656_v12, %v6656_v12 }
 0x178   : > { %7490 = vst [vmem:[#allocation22_spill] sm:$0xff] %v6740_v18  ;;  %7491 = vst [vmem:[#allocation23_spill] sm:$0xff] %v6743_v14  ;;  %v1034_v5 = vcombine.high %v1026_v59, %v1026_v59  ;;  %v1230_v23 = vrot.slane %v6656_v12, %v6086_v32  ;;  %v1036_v4 = vcombine.high %v6663_v63, %v6663_v63 }
 0x179   : > { %v1757_v20 = vrot.slane %v1033_v35, %v6086_v32  ;;  %v1035_v46 = vcombine.high %v1033_v35, %v1033_v35  ;;  %v1043_v49 = vrot.slane %v6663_v63, %v6086_v32  ;;  %v1237_v42 = vrot.slane %v1223_v2, %v6086_v32  ;;  %v5868_v63 = vpop.f32.mrf.mxu1 }
 0x17a   : > { %v1735_v11 = vcombine.low %v1026_v59, %v1034_v5  ;;  %v1238_v22 = vcombine.high %v1230_v23, %v1230_v23  ;;  %v629_v12 = vadd.f32 %v6602_v26, %v6231_v27  ;;  %v3517_v47 = vrot.slane %v3509_v34, %v6086_v32 }
 0x17b   : > { %v2283_v36 = vsel %vm1461_vm3, %v1757_v20, 0.0  ;;  %v6778_v25 = vrot.slane %v1036_v4, %v6086_v32  ;;  %v1239_v54 = vcombine.high %v1237_v42, %v1237_v42  ;;  %v1051_v59 = vcombine.high %v1043_v49, %v1043_v49  ;;  %v6799_v13 = vpop.f32.mrf.mxu1 }
 0x17c   : > { %v1749_v1 = vrot.slane %v1735_v11, %v6086_v32  ;;  %v5685_v29 = vpack.c.bf16 %v2283_v36, %v2283_v36  ;;  %v1963_v48 = vcombine.low %v1230_v23, %v1238_v22  ;;  %v1758_v35 = vcombine.low %v1035_v46, %v1043_v49 }
 0x17d   : > { %v7492_v5 = vrot.slane %v6649_v15, %v6086_v32  ;;  %v2657_v27 = vrot.slane %v2283_v36, %v6086_v32  ;;  %v710_v11 = vmax.f32 %v629_v12, 0.0  ;;  %v4619_v34 = vrot.slane %v4611_v17, %v6086_v32 }
 0x17e   : > { %v5601_v2 = vcombine.low %v1749_v1, %v1749_v1  ;;  %5404 = vst [vmem:[%s6173_s10 + $0x50] sm:$0x1] %v5685_v29  ;;  %v1964_v16 = vcombine.low %v1237_v42, %v1239_v54  ;;  %v1971_v4 = vrot.slane %v1963_v48, %v6086_v32  ;;  %v1759_v63 = vcombine.low %v1051_v59, %v6778_v25 }
 0x17f   : > { %v1750_v20 = vcombine.low %v7492_v5, %v1749_v1  ;;  %v1240_v49 = vcombine.high %v710_v11, %v710_v11  ;;  %v1766_v36 = vrot.slane %v1758_v35, %v6086_v32  ;;  %v1247_v17 = vrot.slane %v710_v11, %v6086_v32 }
 0x180   : > { %v2648_v46 = vrot.slane %v5601_v2, %v6086_v32  ;;  %v1978_v22 = vrot.slane %v1964_v16, %v6086_v32  ;;  %v1773_v12 = vrot.slane %v1759_v63, %v6086_v32  ;;  %v4111_v29 = vmul.f32 %v2657_v27, %v2657_v27 }
 0x181   : > { %v2641_v23 = vrot.slane %v1750_v20, %v6086_v32  ;;  %v5729_v15 = vpack.c.bf16 %v1750_v20, %v6668_v33  ;;  %v584_v54 = vadd.f32 %v6602_v26, %v6366_v52  ;;  %v1254_v33 = vrot.slane %v1240_v49, %v6086_v32 }
 0x182   : > { %v2650_v1 = vcombine.high %v2648_v46, %v2648_v46  ;;  %v1979_v48 = vcombine.low %v1971_v4, %v1978_v22  ;;  %v1774_v59 = vcombine.low %v1766_v36, %v1773_v12  ;;  %v1255_v5 = vcombine.high %v1247_v17, %v1247_v17  ;;  %v5869_v36 = vpop.f32.mrf.mxu1 }
 0x183   : > { %v2649_v42 = vcombine.high %v2641_v23, %v2641_v23  ;;  %5758 = vst [vmem:[%s6173_s10 + $0x48] sm:$0xff] %v5729_v15   ;;  %v4107_v16 = vmul.f32 %v2641_v23, %v2641_v23  ;;  %v4109_v11 = vmul.f32 %v2648_v46, %v2648_v46  ;;  %v1256_v49 = vcombine.high %v1254_v33, %v1254_v33 }
 0x184   : > { %v4110_v35 = vmul.f32 %v2650_v1, %v2650_v1  ;;  %v3526_v63 = vcombine.low %v2648_v46, %v2650_v1  ;;  %v6803_v10 = vsel %vm1456_vm4, %v1979_v48, 0.0  ;;  %v2284_v52 = vsel %vm1456_vm4, %v1774_v59, 0.0 }
 0x185   : > { %v3510_v20 = vcombine.low %v2641_v23, %v2649_v42  ;;  %v4108_v2 = vmul.f32 %v2649_v42, %v2649_v42  ;;  %v1980_v22 = vcombine.low %v1247_v17, %v1255_v5  ;;  %v2863_v23 = vcombine.high %v6803_v10, %v6803_v10 }
 0x186   : > { %v2870_v46 = vrot.slane %v6803_v10, %v6086_v32  ;;  %v2658_v12 = vcombine.high %v2284_v52, %v2284_v52  ;;  %v2665_v42 = vrot.slane %v2284_v52, %v6086_v32  ;;  %v4628_v59 = vcombine.low %v4109_v11, %v4110_v35 }
 0x187   : > { %v3524_v4 = vrot.slane %v3510_v20, %v6086_v32  ;;  %v4612_v15 = vcombine.low %v4107_v16, %v4108_v2  ;;  %v5686_v14 = vpack.c.bf16 %v2284_v52, %v2284_v52  ;;  %v2877_v20 = vrot.slane %v2863_v23, %v6086_v32 }
 0x188   : > { %v2878_v16 = vcombine.high %v2870_v46, %v2870_v46  ;;  %v4157_v17 = vmul.f32 %v2870_v46, %v2870_v46  ;;  %v2672_v5 = vrot.slane %v2658_v12, %v6086_v32  ;;  %v2673_v18 = vcombine.high %v2665_v42, %v2665_v42 }
 0x189   : > { %v3525_v1 = vcombine.low %v3517_v47, %v3524_v4  ;;  %v4626_v48 = vrot.slane %v4612_v15, %v6086_v32  ;;  %v3527_v53 = vcombine.low %v2657_v27, %v2665_v42  ;;  %5405 = vst [vmem:[%s6173_s10 + $0x54] sm:$0xf] %v5686_v14  ;;  %v2879_v7 = vcombine.high %v2877_v20, %v2877_v20 }
 0x18a   : > { %v3730_v28 = vcombine.low %v2870_v46, %v2878_v16  ;;  %v4158_v19 = vmul.f32 %v2878_v16, %v2878_v16  ;;  %v4159_v47 = vmul.f32 %v2877_v20, %v2877_v20  ;;  %v3534_v4 = vrot.slane %v3526_v63, %v6086_v32 }
 0x18b   : > { %v4013_v2 = vadd.f32 %v6748_v44, %v3525_v1  ;;  %v4627_v36 = vcombine.low %v4619_v34, %v4626_v48  ;;  %v3541_v11 = vrot.slane %v3527_v53, %v6086_v32  ;;  %v4112_v52 = vmul.f32 %v2665_v42, %v2665_v42 }
 0x18c   : > { %v4636_v15 = vrot.slane %v4628_v59, %v6086_v32  ;;  %v3731_v23 = vcombine.low %v2877_v20, %v2879_v7  ;;  %v4160_v12 = vmul.f32 %v2879_v7, %v2879_v7  ;;  %v4832_v44 = vcombine.low %v4157_v17, %v4158_v19 }
 0x18d   : > { %v5115_v35 = vadd.f32 %v6755_v50, %v4627_v36  ;;  %v3542_v34 = vcombine.low %v3534_v4, %v3541_v11  ;;  %v4113_v1 = vmul.f32 %v2673_v18, %v2673_v18  ;;  %v4114_v27 = vmul.f32 %v2672_v5, %v2672_v5 }
 0x18e   : > { %v4629_v14 = vcombine.low %v4111_v29, %v4112_v52  ;;  %v6823_v46 = vrot.slane %v3730_v28, %v6086_v32  ;;  %v4833_v48 = vcombine.low %v4159_v47, %v4160_v12  ;;  %v3543_v16 = vcombine.low %v2673_v18, %v2672_v5 }
 0x18f   : > { %v1981_v63 = vcombine.low %v1254_v33, %v1256_v49  ;;  %v6826_v50 = vrot.slane %v3731_v23, %v6086_v32  ;;  %v1988_v42 = vrot.slane %v1980_v22, %v6086_v32  ;;  %v699_v59 = vmax.f32 %v584_v54, 0.0 }
 0x190   : > { %v4643_v53 = vrot.slane %v4629_v14, %v6086_v32  ;;  %v6831_v19 = vrot.slane %v4832_v44, %v6086_v32  ;;  %v4645_v7 = vcombine.low %v4113_v1, %v4114_v27  ;;  %v1052_v28 = vcombine.high %v6778_v25, %v6778_v25  ;;  %v6855_v14 = vpop.f32.mrf.mxu1 }
 0x191   : > { %v1995_v29 = vrot.slane %v1981_v63, %v6086_v32  ;;  %v1053_v18 = vcombine.high %v699_v59, %v699_v59  ;;  %v1060_v33 = vrot.slane %v699_v59, %v6086_v32  ;;  %v2674_v49 = vcombine.high %v2672_v5, %v2672_v5  ;;  %7495 = vst [vmem:[#allocation26_spill] sm:$0xff] %v6855_v14 }
 0x192   : > { %7493 = vst [vmem:[#allocation24_spill] sm:$0xff] %v6831_v19  ;;  %v4644_v20 = vcombine.low %v4636_v15, %v4643_v53  ;;  %v6838_v17 = vrot.slane %v4833_v48, %v6086_v32  ;;  %v6841_v54 = vrot.slane %v3543_v16, %v6086_v32  ;;  %v6844_v52 = vadd.f32 %v4013_v2, %v3542_v34  ;;  %v5872_v59 = vpop.f32.mrf.mxu1 }
 0x193   : > { %v1996_v36 = vcombine.low %v1988_v42, %v1995_v29  ;;  %v5607_v22 = vcombine.low %v1995_v29, %v1995_v29  ;;  %v1067_v47 = vrot.slane %v1053_v18, %v6086_v32  ;;  %v1068_v4 = vcombine.high %v1060_v33, %v1060_v33 }
 0x194   : > { %7494 = vst [vmem:[#allocation25_spill] sm:$0xff] %v6838_v17  ;;  %v1775_v11 = vcombine.low %v1052_v28, %v1060_v33  ;;  %v6849_v23 = vmul.f32 %v2674_v49, %v2674_v49  ;;  %v6853_v27 = vrot.slane %v4645_v7, %v6086_v32  ;;  %v6860_v53 = vadd.f32 %v5115_v35, %v4644_v20 }
 0x195   : > { %v2887_v25 = vrot.slane %v1996_v36, %v6086_v32  ;;  %v2894_v15 = vrot.slane %v5607_v22, %v6086_v32  ;;  %v5744_v5 = vpack.c.bf16 %v1996_v36, %v6803_v10  ;;  %v1069_v12 = vcombine.high %v1067_v47, %v1067_v47 }
 0x196   : > { %v1776_v44 = vcombine.low %v1068_v4, %v1067_v47  ;;  %v1783_v1 = vrot.slane %v1775_v11, %v6086_v32  ;;  %v632_v42 = vadd.f32 %v6602_v26, %v6314_v24  ;;  %v671_v4 = vpop.f32.mrf.mxu1 }
 0x197   : > { %v2895_v48 = vcombine.high %v2887_v25, %v2887_v25  ;;  %v2896_v2 = vcombine.high %v2894_v15, %v2894_v15  ;;  %v4161_v34 = vmul.f32 %v2887_v25, %v2887_v25  ;;  %v4163_v16 = vmul.f32 %v2894_v15, %v2894_v15  ;;  %5761 = vst [vmem:[%s6173_s10 + $0x90] sm:$0xff] %v5744_v5  }
 0x198   : > { %v1790_v63 = vrot.slane %v1776_v44, %v6086_v32  ;;  %v1798_v10 = vrot.slane %v1069_v12, %v6086_v32  ;;  %v711_v47 = vmax.f32 %v632_v42, 0.0  ;;  %v5873_v44 = vpop.f32.mrf.mxu1 }
 0x199   : > { %v3747_v29 = vcombine.low %v2887_v25, %v2895_v48  ;;  %v3748_v7 = vcombine.low %v2894_v15, %v2896_v2  ;;  %v4162_v28 = vmul.f32 %v2895_v48, %v2895_v48  ;;  %v4164_v18 = vmul.f32 %v2896_v2, %v2896_v2 }
 0x19a   : > { %v1791_v33 = vcombine.low %v1783_v1, %v1790_v63  ;;  %v2286_v36 = vsel %vm1461_vm3, %v1798_v10, 0.0  ;;  %v5602_v22 = vcombine.low %v1790_v63, %v1790_v63  ;;  %v676_v59 = vpop.f32.mrf.mxu1 }
 0x19b   : > { %v6867_v11 = vrot.slane %v3747_v29, %v6086_v32  ;;  %v6870_v35 = vrot.slane %v3748_v7, %v6086_v32  ;;  %v4849_v24 = vcombine.low %v4161_v34, %v4162_v28  ;;  %v4850_v20 = vcombine.low %v4163_v16, %v4164_v18 }
 0x19c   : > { %v2682_v25 = vrot.slane %v1791_v33, %v6086_v32  ;;  %v2689_v15 = vrot.slane %v5602_v22, %v6086_v32  ;;  %v2698_v5 = vrot.slane %v2286_v36, %v6086_v32  ;;  %v5687_v12 = vpack.c.bf16 %v1791_v33, %v1791_v33 }
 0x19d   : > { %v6878_v48 = vrot.slane %v4849_v24, %v6086_v32  ;;  %v6881_v2 = vrot.slane %v4850_v20, %v6086_v32  ;;  %v5688_v34 = vpack.c.bf16 %v2286_v36, %v2286_v36  ;;  %v1257_v18 = vcombine.high %v711_v47, %v711_v47  ;;  %v5876_v20 = vpop.f32.mrf.mxu1 }
 0x19e   : > { %v2690_v16 = vcombine.high %v2682_v25, %v2682_v25  ;;  %v2691_v63 = vcombine.high %v2689_v15, %v2689_v15  ;;  %v3544_v10 = vcombine.low %v2674_v49, %v2682_v25  ;;  %v4116_v42 = vmul.f32 %v2682_v25, %v2682_v25  ;;  %5406 = vst [vmem:[%s6173_s10 + $0x58] sm:$0xf] %v5687_v12 }
 0x19f   : > { %7496 = vst [vmem:[#allocation27_spill] sm:$0xff] %v6878_v48  ;;  %7497 = vst [vmem:[#allocation28_spill] sm:$0xff] %v6881_v2  ;;  %v4118_v7 = vmul.f32 %v2689_v15, %v2689_v15  ;;  %v4120_v28 = vmul.f32 %v2698_v5, %v2698_v5  ;;  %v1264_v49 = vrot.slane %v711_v47, %v6086_v32  ;;  %v679_v1 = vpop.f32.mrf.mxu1 }
 0x1a0   : > { %5407 = vst [vmem:[%s6173_s10 + $0x5c] sm:$0x1] %v5688_v34  ;;  %v3558_v33 = vrot.slane %v3544_v10, %v6086_v32  ;;  %v3560_v22 = vcombine.low %v2690_v16, %v2689_v15  ;;  %v3561_v4 = vcombine.low %v2691_v63, %v2698_v5  ;;  %v4117_v24 = vmul.f32 %v2690_v16, %v2690_v16 }
 0x1a1   : > { %v4119_v36 = vmul.f32 %v2691_v63, %v2691_v63  ;;  %v4646_v44 = vcombine.low %v6849_v23, %v4116_v42  ;;  %v1271_v25 = vrot.slane %v1257_v18, %v6086_v32  ;;  %v1272_v16 = vcombine.high %v1264_v49, %v1264_v49  ;;  %v5877_v42 = vpop.f32.mrf.mxu1 }
 0x1a2   : > { %v3559_v12 = vcombine.low %v6841_v54, %v3558_v33  ;;  %v3568_v59 = vrot.slane %v3560_v22, %v6086_v32  ;;  %v3575_v34 = vrot.slane %v3561_v4, %v6086_v32  ;;  %v4662_v29 = vcombine.low %v4117_v24, %v4118_v7 }
 0x1a3   : > { %v4660_v15 = vrot.slane %v4646_v44, %v6086_v32  ;;  %v4663_v5 = vcombine.low %v4119_v36, %v4120_v28  ;;  %v2003_v63 = vrot.slane %v1264_v49, %v6086_v32  ;;  %v589_v54 = vadd.f32 %v6602_v26, %v6373_v51 }
 0x1a4   : > { %v3576_v10 = vcombine.low %v3568_v59, %v3575_v34  ;;  %v4015_v23 = vadd.f32 %v6844_v52, %v3559_v12  ;;  %v4670_v47 = vrot.slane %v4662_v29, %v6086_v32  ;;  %v7498_v1 = vcombine.low %v6460_v45, %v6488_v39 }
 0x1a5   : > { %v4661_v28 = vcombine.low %v6853_v27, %v4660_v15  ;;  %v4677_v18 = vrot.slane %v4663_v5, %v6086_v32  ;;  %v2301_v52 = vsel %vm1461_vm3, %v2003_v63, 0.0  ;;  %v700_v22 = vmax.f32 %v589_v54, 0.0 }
 0x1a6   : > { %v6904_v7 = vrot.slane %v7498_v1, %v6086_v32  ;;  %v6912_v33 = vadd.f32 %v4015_v23, %v3576_v10  ;;  %v5703_v51 = vpack.c.bf16 %v2301_v52, %v2301_v52  ;;  %v637_v27 = vadd.f32 %v6602_v26, %v6382_v21 }
 0x1a7   : > { %v4678_v45 = vcombine.low %v4670_v47, %v4677_v18  ;;  %v5117_v39 = vadd.f32 %v6860_v53, %v4661_v28  ;;  %v2004_v24 = vcombine.low %v1272_v16, %v1271_v25  ;;  %v1070_v20 = vcombine.high %v700_v22, %v700_v22 }
 0x1a8   : > { %5422 = vst [vmem:[%s6173_s10 + $0x98] sm:$0x1] %v5703_v51  ;;  %v1077_v36 = vrot.slane %v700_v22, %v6086_v32  ;;  %v1273_v44 = vcombine.high %v1271_v25, %v1271_v25  ;;  %v712_v12 = vmax.f32 %v637_v27, 0.0  ;;  %v592_v59 = vadd.f32 %v6602_v26, %v6402_v56 }
 0x1a9   : > { %v6921_v49 = vadd.f32 %v5117_v39, %v4678_v45  ;;  %v640_v34 = vadd.f32 %v6602_v26, %v6430_v60  ;;  %v2903_v53 = vrot.slane %v2301_v52, %v6086_v32  ;;  %v1084_v15 = vrot.slane %v1070_v20, %v6086_v32 }
 0x1aa   : > { %v1085_v21 = vcombine.high %v1077_v36, %v1077_v36  ;;  %v597_v5 = vadd.f32 %v6602_v26, %v6474_v43  ;;  %v1274_v16 = vcombine.high %v712_v12, %v712_v12  ;;  %v1281_v25 = vrot.slane %v712_v12, %v6086_v32 }
 0x1ab   : > { %v701_v63 = vmax.f32 %v592_v59, 0.0  ;;  %v713_v10 = vmax.f32 %v640_v34, 0.0  ;;  %v2012_v23 = vrot.slane %v2004_v24, %v6086_v32  ;;  %v1086_v47 = vcombine.high %v1084_v15, %v1084_v15 }
 0x1ac   : > { %v1799_v56 = vcombine.low %v1077_v36, %v1085_v21  ;;  %v645_v60 = vadd.f32 %v6602_v26, %v6531_v40  ;;  %v1288_v54 = vrot.slane %v1274_v16, %v6086_v32  ;;  %v1289_v42 = vcombine.high %v1281_v25, %v1281_v25 }
 0x1ad   : > { %v2005_v1 = vcombine.low %v1273_v44, %v1281_v25  ;;  %v1087_v28 = vcombine.high %v701_v63, %v701_v63  ;;  %v4165_v18 = vmul.f32 %v2903_v53, %v2903_v53  ;;  %v1800_v52 = vcombine.low %v1084_v15, %v1086_v47 }
 0x1ae   : > { %v1094_v43 = vrot.slane %v701_v63, %v6086_v32  ;;  %v1291_v51 = vcombine.high %v713_v10, %v713_v10  ;;  %v6938_v45 = vcombine.low %v1289_v42, %v1288_v54  ;;  %v6941_v27 = vmax.f32 %v597_v5, 0.0 }
 0x1af   : > { %v2019_v22 = vrot.slane %v2005_v1, %v6086_v32  ;;  %v1101_v39 = vrot.slane %v1087_v28, %v6086_v32  ;;  %v1807_v40 = vrot.slane %v1799_v56, %v6086_v32  ;;  %v1814_v24 = vrot.slane %v1800_v52, %v6086_v32 }
 0x1b0   : > { %v1102_v20 = vcombine.high %v1094_v43, %v1094_v43  ;;  %v6946_v36 = vrot.slane %v1291_v51, %v6086_v32  ;;  %v6949_v59 = vrot.slane %v713_v10, %v6086_v32  ;;  %v6951_v34 = vmax.f32 %v645_v60, 0.0 }
 0x1b1   : > { %v2020_v44 = vcombine.low %v2012_v23, %v2019_v22  ;;  %v1103_v12 = vcombine.high %v1101_v39, %v1101_v39  ;;  %v1815_v15 = vcombine.low %v1807_v40, %v1814_v24  ;;  %v1290_v16 = vcombine.high %v1288_v54, %v1288_v54 }
 0x1b2   : > { %v1816_v5 = vcombine.low %v1094_v43, %v1102_v20  ;;  %v1306_v23 = vcombine.high %v6949_v59, %v6949_v59 }
 0x1b3   : > { %v2302_v25 = vsel %vm1456_vm4, %v2020_v44, 0.0  ;;  %v1817_v63 = vcombine.low %v1101_v39, %v1103_v12  ;;  %v2287_v47 = vsel %vm1456_vm4, %v1815_v15, 0.0  ;;  %v2022_v44 = vcombine.low %v1290_v16, %v6949_v59 }
 0x1b4   : > { %v2904_v56 = vcombine.high %v2302_v25, %v2302_v25  ;;  %v2911_v60 = vrot.slane %v2302_v25, %v6086_v32  ;;  %v5704_v42 = vpack.c.bf16 %v2302_v25, %v2302_v25  ;;  %v2699_v1 = vcombine.high %v2287_v47, %v2287_v47 }
 0x1b5   : > { %v2706_v54 = vrot.slane %v2287_v47, %v6086_v32  ;;  %v1824_v28 = vrot.slane %v1816_v5, %v6086_v32  ;;  %v1831_v52 = vrot.slane %v1817_v63, %v6086_v32 }
 0x1b6   : > { %v2918_v43 = vrot.slane %v2904_v56, %v6086_v32  ;;  %v2919_v51 = vcombine.high %v2911_v60, %v2911_v60  ;;  %v3764_v22 = vcombine.low %v2903_v53, %v2911_v60  ;;  %v4166_v39 = vmul.f32 %v2911_v60, %v2911_v60  ;;  %5423 = vst [vmem:[%s6173_s10 + $0x9c] sm:$0xf] %v5704_v42 }
 0x1b7   : > { %v2713_v40 = vrot.slane %v2699_v1, %v6086_v32  ;;  %v2714_v24 = vcombine.high %v2706_v54, %v2706_v54  ;;  %v1832_v20 = vcombine.low %v1824_v28, %v1831_v52  ;;  %v4121_v29 = vmul.f32 %v2706_v54, %v2706_v54 }
 0x1b8   : > { %v3765_v12 = vcombine.low %v2919_v51, %v2918_v43  ;;  %v6972_v15 = vrot.slane %v3764_v22, %v6086_v32  ;;  %v4167_v25 = vmul.f32 %v2919_v51, %v2919_v51  ;;  %v4168_v5 = vmul.f32 %v2918_v43, %v2918_v43 }
 0x1b9   : > { %v2715_v4 = vcombine.high %v2713_v40, %v2713_v40  ;;  %v3577_v63 = vcombine.low %v2706_v54, %v2714_v24  ;;  %v4122_v56 = vmul.f32 %v2714_v24, %v2714_v24  ;;  %v4866_v60 = vcombine.low %v4165_v18, %v4166_v39 }
 0x1ba   : > { %v6975_v53 = vrot.slane %v3765_v12, %v6086_v32  ;;  %v4867_v42 = vcombine.low %v4167_v25, %v4168_v5  ;;  %v5603_v1 = vcombine.low %v1831_v52, %v1831_v52  ;;  %v4123_v28 = vmul.f32 %v2713_v40, %v2713_v40 }
 0x1bb   : > { %v3578_v10 = vcombine.low %v2713_v40, %v2715_v4  ;;  %v4124_v21 = vmul.f32 %v2715_v4, %v2715_v4  ;;  %v4679_v59 = vcombine.low %v4121_v29, %v4122_v56  ;;  %v6980_v51 = vrot.slane %v4866_v60, %v6086_v32 }
 0x1bc   : > { %7499 = vst [vmem:[#allocation29_spill] sm:$0xff] %v6975_v53  ;;  %v6983_v22 = vrot.slane %v4867_v42, %v6086_v32  ;;  %v2723_v54 = vrot.slane %v1832_v20, %v6086_v32  ;;  %v3585_v18 = vrot.slane %v3577_v63, %v6086_v32  ;;  %v2730_v4 = vrot.slane %v5603_v1, %v6086_v32 }
 0x1bd   : > { %7500 = vst [vmem:[#allocation30_spill] sm:$0xff] %v6980_v51  ;;  %v3592_v52 = vrot.slane %v3578_v10, %v6086_v32  ;;  %v4680_v39 = vcombine.low %v4123_v28, %v4124_v21  ;;  %v4687_v29 = vrot.slane %v4679_v59, %v6086_v32  ;;  %v5734_v12 = vpack.c.bf16 %v1832_v20, %v2287_v47 }
 0x1be   : > { %7501 = vst [vmem:[#allocation31_spill] sm:$0xff] %v6983_v22  ;;  %v2731_v24 = vcombine.high %v2723_v54, %v2723_v54  ;;  %v2732_v56 = vcombine.high %v2730_v4, %v2730_v4  ;;  %v4125_v60 = vmul.f32 %v2723_v54, %v2723_v54  ;;  %v2036_v10 = vrot.slane %v2022_v44, %v6086_v32 }
 0x1bf   : > { %v3593_v25 = vcombine.low %v3585_v18, %v3592_v52  ;;  %v4694_v5 = vrot.slane %v4680_v39, %v6086_v32  ;;  %5759 = vst [vmem:[%s6173_s10 + $0x60] sm:$0xff] %v5734_v12   ;;  %v2044_v21 = vrot.slane %v1306_v23, %v6086_v32  ;;  %v4127_v1 = vmul.f32 %v2730_v4, %v2730_v4 }
 0x1c0   : > { %v3594_v42 = vcombine.low %v2723_v54, %v2731_v24  ;;  %v4126_v16 = vmul.f32 %v2731_v24, %v2731_v24  ;;  %v3595_v63 = vcombine.low %v2730_v4, %v2732_v56  ;;  %v4128_v28 = vmul.f32 %v2732_v56, %v2732_v56 }
 0x1c1   : > { %v1104_v59 = vcombine.high %v6941_v27, %v6941_v27  ;;  %v4695_v40 = vcombine.low %v4687_v29, %v4694_v5  ;;  %v7502_v20 = vrot.slane %v6938_v45, %v6086_v32  ;;  %v1111_v54 = vrot.slane %v6941_v27, %v6086_v32 }
 0x1c2   : > { %v4696_v47 = vcombine.low %v4125_v60, %v4126_v16  ;;  %v3602_v52 = vrot.slane %v3594_v42, %v6086_v32  ;;  %v3609_v44 = vrot.slane %v3595_v63, %v6086_v32  ;;  %v4697_v23 = vcombine.low %v4127_v1, %v4128_v28 }
 0x1c3   : > { %v2037_v18 = vcombine.low %v7502_v20, %v2036_v10  ;;  %v2304_v39 = vsel %vm1461_vm3, %v2044_v21, 0.0  ;;  %v4017_v4 = vadd.f32 %v6912_v33, %v3593_v25  ;;  %v7503_v16 = vcombine.high %v6946_v36, %v6946_v36 }
 0x1c4   : > { %v2920_v45 = vcombine.high %v2918_v43, %v2918_v43  ;;  %v5608_v24 = vcombine.low %v2036_v10, %v2036_v10  ;;  %v4704_v27 = vrot.slane %v4696_v47, %v6086_v32  ;;  %v4711_v12 = vrot.slane %v4697_v23, %v6086_v32 }
 0x1c5   : > { %v7012_v29 = vcombine.low %v6946_v36, %v7503_v16  ;;  %v2928_v5 = vrot.slane %v2037_v18, %v6086_v32  ;;  %v2944_v56 = vrot.slane %v2304_v39, %v6086_v32  ;;  %v5705_v60 = vpack.c.bf16 %v2037_v18, %v2037_v18 }
 0x1c6   : > { %v2935_v33 = vrot.slane %v5608_v24, %v6086_v32  ;;  %v4169_v25 = vmul.f32 %v2920_v45, %v2920_v45  ;;  %v5706_v42 = vpack.c.bf16 %v2304_v39, %v2304_v39  ;;  %v3610_v21 = vcombine.low %v3602_v52, %v3609_v44 }
 0x1c7   : > { %v5119_v36 = vadd.f32 %v6921_v49, %v4695_v40  ;;  %v2936_v43 = vcombine.high %v2928_v5, %v2928_v5  ;;  %v3781_v10 = vcombine.low %v2920_v45, %v2928_v5  ;;  %v4170_v1 = vmul.f32 %v2928_v5, %v2928_v5  ;;  %5424 = vst [vmem:[%s6173_s10 + $0xa0] sm:$0xf] %v5705_v60 }
 0x1c8   : > { %v2937_v63 = vcombine.high %v2935_v33, %v2935_v33  ;;  %v4172_v28 = vmul.f32 %v2935_v33, %v2935_v33  ;;  %v4174_v47 = vmul.f32 %v2944_v56, %v2944_v56  ;;  %5425 = vst [vmem:[%s6173_s10 + $0xa4] sm:$0x1] %v5706_v42  ;;  %v4712_v20 = vcombine.low %v4704_v27, %v4711_v12 }
 0x1c9   : > { %v3782_v23 = vcombine.low %v2936_v43, %v2935_v33  ;;  %v7023_v16 = vrot.slane %v3781_v10, %v6086_v32  ;;  %v4171_v24 = vmul.f32 %v2936_v43, %v2936_v43  ;;  %v4883_v39 = vcombine.low %v4169_v25, %v4170_v1 }
 0x1ca   : > { %v3798_v22 = vcombine.low %v2937_v63, %v2944_v56  ;;  %v4173_v18 = vmul.f32 %v2937_v63, %v2937_v63  ;;  %v1118_v52 = vrot.slane %v1104_v59, %v6086_v32  ;;  %v1119_v44 = vcombine.high %v1111_v54, %v1111_v54 }
 0x1cb   : > { %7504 = vst [vmem:[#allocation32_spill] sm:$0xff] %v7023_v16  ;;  %v7027_v49 = vrot.slane %v3782_v23, %v6086_v32  ;;  %v4884_v40 = vcombine.low %v4171_v24, %v4172_v28  ;;  %v1839_v45 = vrot.slane %v1111_v54, %v6086_v32  ;;  %v2053_v27 = vrot.slane %v7012_v29, %v6086_v32  ;;  %v7070_v24 = vld [vmem:[%s7424_s2] ss:$0 sm:$0xff] }
 0x1cc   : > { %v7033_v12 = vrot.slane %v4883_v39, %v6086_v32  ;;  %v4900_v5 = vcombine.low %v4173_v18, %v4174_v47  ;;  %v1308_v56 = vcombine.high %v6951_v34, %v6951_v34  ;;  %v7037_v33 = vadd.f32 %v4017_v4, %v3610_v21  ;;  %7508 = vst [vmem:[#allocation36_spill] sm:$0xff] %v7070_v24 }
 0x1cd   : > { %7505 = vst [vmem:[#allocation33_spill] sm:$0xff] %v7027_v49  ;;  %v7042_v25 = vrot.slane %v4884_v40, %v6086_v32  ;;  %v2289_v54 = vsel %vm1461_vm3, %v1839_v45, 0.0  ;;  %v1840_v29 = vcombine.low %v1119_v44, %v1118_v52  ;;  %v1315_v43 = vrot.slane %v6951_v34, %v6086_v32 }
 0x1ce   : > { %7506 = vst [vmem:[#allocation34_spill] sm:$0xff] %v7033_v12  ;;  %v7047_v60 = vrot.slane %v2289_v54, %v6086_v32  ;;  %v5691_v42 = vpack.c.bf16 %v2289_v54, %v2289_v54  ;;  %v7051_v10 = vadd.f32 %v5119_v36, %v4712_v20  ;;  %v1322_v21 = vrot.slane %v1308_v56, %v6086_v32 }
 0x1cf   : > { %7507 = vst [vmem:[#allocation35_spill] sm:$0xff] %v7042_v25  ;;  %v600_v63 = vadd.f32 %v6602_v26, %v6564_v41  ;;  %v7059_v1 = vrot.slane %v3798_v22, %v6086_v32  ;;  %v7062_v28 = vrot.slane %v4900_v5, %v6086_v32  ;;  %v1323_v47 = vcombine.high %v1315_v43, %v1315_v43 }
 0x1d0   : > { %5410 = vst [vmem:[%s6173_s10 + $0x68] sm:$0x1] %v5691_v42  ;;  %v648_v34 = vadd.f32 %v6602_v26, %v6632_v58  ;;  %v1324_v36 = vcombine.high %v1322_v21, %v1322_v21  ;;  %v1120_v23 = vcombine.high %v1118_v52, %v1118_v52  ;;  %v653_v41 = vadd.f32 %v7070_v24, %v6654_v62 }
 0x1d1   : > { %v703_v20 = vmax.f32 %v600_v63, 0.0  ;;  %v1848_v22 = vrot.slane %v1840_v29, %v6086_v32  ;;  %v7077_v18 = vmul.f32 %v7047_v60, %v7047_v60  ;;  %v2046_v39 = vcombine.low %v1315_v43, %v1323_v47 }
 0x1d2   : > { %v715_v40 = vmax.f32 %v648_v34, 0.0  ;;  %v2062_v26 = vcombine.low %v1322_v21, %v1324_v36  ;;  %v716_v44 = vmax.f32 %v653_v41, 0.0  ;;  %v656_v62 = vadd.f32 %v7070_v24, %v6718_v9 }
 0x1d3   : > { %v1121_v58 = vcombine.high %v703_v20, %v703_v20  ;;  %v1128_v52 = vrot.slane %v703_v20, %v6086_v32  ;;  %v2060_v45 = vrot.slane %v2046_v39, %v6086_v32  ;;  %v7087_v43 = vadd.f32 %v7070_v24, %v6768_v31 }
 0x1d4   : > { %v1325_v5 = vcombine.high %v715_v40, %v715_v40  ;;  %v1332_v56 = vrot.slane %v715_v40, %v6086_v32  ;;  %v7094_v34 = vadd.f32 %v7070_v24, %v6799_v13  ;;  %v2070_v36 = vrot.slane %v2062_v26, %v6086_v32 }
 0x1d5   : > { %v1135_v54 = vrot.slane %v1121_v58, %v6086_v32  ;;  %v1136_v29 = vcombine.high %v1128_v52, %v1128_v52  ;;  %v1841_v42 = vcombine.low %v1120_v23, %v1128_v52  ;;  %v2061_v21 = vcombine.low %v2053_v27, %v2060_v45 }
 0x1d6   : > { %v7090_v63 = vrot.slane %v1325_v5, %v6086_v32  ;;  %v1340_v47 = vcombine.high %v1332_v56, %v1332_v56  ;;  %v1342_v41 = vcombine.high %v716_v44, %v716_v44  ;;  %v7115_v5 = vrot.slane %v716_v44, %v6086_v32 }
 0x1d7   : > { %v1137_v9 = vcombine.high %v1135_v54, %v1135_v54  ;;  %v1855_v20 = vrot.slane %v1841_v42, %v6086_v32  ;;  %v7100_v23 = vsel %vm1456_vm4, %v2061_v21, 0.0  ;;  %v1857_v31 = vcombine.low %v1136_v29, %v1135_v54 }
 0x1d8   : > { %v2063_v27 = vcombine.low %v1332_v56, %v1340_v47  ;;  %v2085_v39 = vrot.slane %v7090_v63, %v6086_v32  ;;  %v2945_v40 = vcombine.high %v7100_v23, %v7100_v23  ;;  %v2952_v13 = vrot.slane %v7100_v23, %v6086_v32 }
 0x1d9   : > { %v1856_v26 = vcombine.low %v1848_v22, %v1855_v20  ;;  %v1858_v58 = vcombine.low %v1137_v9, %v6140_v61  ;;  %v7117_v56 = vmax.f32 %v656_v62, 0.0  ;;  %v1865_v61 = vrot.slane %v1857_v31, %v6086_v32 }
 0x1da   : > { %v7110_v52 = vrot.slane %v2063_v27, %v6086_v32  ;;  %v7120_v54 = vrot.slane %v2945_v40, %v6086_v32  ;;  %v2960_v29 = vcombine.high %v2952_v13, %v2952_v13  ;;  %v4175_v42 = vmul.f32 %v2952_v13, %v2952_v13 }
 0x1db   : > { %v1872_v22 = vrot.slane %v1858_v58, %v6086_v32  ;;  %v7126_v21 = vsel %vm1456_vm4, %v1856_v26, 0.0  ;;  %v7130_v47 = vsel %vm1461_vm3, %v2085_v39, 0.0  ;;  %v7133_v44 = vrot.slane %v1342_v41, %v6086_v32 }
 0x1dc   : > { %v7137_v62 = vcombine.high %v7120_v54, %v7120_v54  ;;  %v3799_v9 = vcombine.low %v2952_v13, %v2960_v29  ;;  %v4176_v20 = vmul.f32 %v2960_v29, %v2960_v29  ;;  %v7140_v27 = vcombine.low %v2070_v36, %v7110_v52 }
 0x1dd   : > { %v1873_v31 = vcombine.low %v1865_v61, %v1872_v22  ;;  %v2740_v40 = vcombine.high %v7126_v21, %v7126_v21  ;;  %v2747_v39 = vrot.slane %v7126_v21, %v6086_v32  ;;  %v5604_v26 = vcombine.low %v1872_v22, %v1872_v22 }
 0x1de   : > { %v7148_v41 = vmul.f32 %v7120_v54, %v7120_v54  ;;  %v4901_v58 = vcombine.low %v4175_v42, %v4176_v20  ;;  %v5609_v13 = vcombine.low %v7110_v52, %v7110_v52  ;;  %v7154_v36 = vrot.slane %v7130_v47, %v6086_v32 }
 0x1df   : > { %v2754_v29 = vrot.slane %v2740_v40, %v6086_v32  ;;  %v2755_v61 = vcombine.high %v2747_v39, %v2747_v39  ;;  %v2764_v4 = vrot.slane %v1873_v31, %v6086_v32  ;;  %v2771_v59 = vrot.slane %v5604_v26, %v6086_v32 }
 0x1e0   : > { %v7160_v22 = vrot.slane %v3799_v9, %v6086_v32  ;;  %v3815_v42 = vcombine.low %v7120_v54, %v7137_v62  ;;  %v7166_v52 = vmul.f32 %v7137_v62, %v7137_v62  ;;  %v3611_v20 = vcombine.low %v7047_v60, %v2747_v39 }
 0x1e1   : > { %v2756_v45 = vcombine.high %v2754_v29, %v2754_v29  ;;  %v2772_v25 = vcombine.high %v2764_v4, %v2764_v4  ;;  %v2773_v40 = vcombine.high %v2771_v59, %v2771_v59  ;;  %v3612_v12 = vcombine.low %v2755_v61, %v2754_v29 }
 0x1e2   : > { %v7170_v55 = vrot.slane %v4901_v58, %v6086_v32  ;;  %v3619_v26 = vrot.slane %v3611_v20, %v6086_v32  ;;  %v4130_v9 = vmul.f32 %v2747_v39, %v2747_v39  ;;  %v4131_v51 = vmul.f32 %v2755_v61, %v2755_v61 }
 0x1e3   : > { %v3626_v2 = vrot.slane %v3612_v12, %v6086_v32  ;;  %v3628_v54 = vcombine.low %v2756_v45, %v2764_v4  ;;  %v3629_v48 = vcombine.low %v2772_v25, %v2771_v59  ;;  %v3645_v62 = vcombine.low %v2773_v40, %v6187_v6 }
 0x1e4   : > { %v4132_v24 = vmul.f32 %v2754_v29, %v2754_v29  ;;  %v4133_v14 = vmul.f32 %v2756_v45, %v2756_v45  ;;  %v4134_v60 = vmul.f32 %v2764_v4, %v2764_v4  ;;  %v4135_v49 = vmul.f32 %v2772_v25, %v2772_v25 }
 0x1e5   : > { %v3627_v16 = vcombine.low %v3619_v26, %v3626_v2  ;;  %v3636_v17 = vrot.slane %v3628_v54, %v6086_v32  ;;  %v3643_v58 = vrot.slane %v3629_v48, %v6086_v32  ;;  %v3653_v19 = vrot.slane %v3645_v62, %v6086_v32 }
 0x1e6   : > { %v4136_v20 = vmul.f32 %v2771_v59, %v2771_v59  ;;  %v4137_v39 = vmul.f32 %v2773_v40, %v2773_v40  ;;  %v4713_v61 = vcombine.low %v7077_v18, %v4130_v9  ;;  %v4714_v12 = vcombine.low %v4131_v51, %v4132_v24 }
 0x1e7   : > { %v3644_v30 = vcombine.low %v3636_v17, %v3643_v58  ;;  %v3661_v53 = vcombine.low %v3653_v19, %v6505_v57  ;;  %v4019_v6 = vadd.f32 %v7037_v33, %v3627_v16  ;;  %v4730_v45 = vcombine.low %v4133_v14, %v4134_v60 }
 0x1e8   : > { %v4721_v2 = vrot.slane %v4713_v61, %v6086_v32  ;;  %v4728_v25 = vrot.slane %v4714_v12, %v6086_v32  ;;  %v4731_v48 = vcombine.low %v4135_v49, %v4136_v20  ;;  %v4747_v4 = vcombine.low %v4137_v39, %v6428_v3  ;;  %v7511_v12 = vld [vmem:[#allocation16_spill] sm:$0xff] }
 0x1e9   : > { %v4020_v59 = vadd.f32 %v4019_v6, %v3644_v30  ;;  %v4738_v29 = vrot.slane %v4730_v45, %v6086_v32  ;;  %v5692_v17 = vpack.c.bf16 %v7126_v21, %v7126_v21  ;;  %v5693_v51 = vpack.c.bf16 %v1873_v31, %v1873_v31  ;;  %v7512_v6 = vld [vmem:[#allocation17_spill] sm:$0xff] }
 0x1ea   : > { %v4729_v57 = vcombine.low %v4721_v2, %v4728_v25  ;;  %v4745_v19 = vrot.slane %v4731_v48, %v6086_v32  ;;  %v4755_v14 = vrot.slane %v4747_v4, %v6086_v32  ;;  %v2969_v16 = vrot.slane %v7140_v27, %v6086_v32  ;;  %v7515_v25 = vld [vmem:[#allocation13_spill] sm:$0xff] }
 0x1eb   : > { %v3814_v49 = vcombine.low %v7059_v1, %v7160_v22  ;;  %v4917_v30 = vcombine.low %v7148_v41, %v7166_v52  ;;  %v4021_v3 = vadd.f32 %v4020_v59, %v3661_v53  ;;  %5411 = vst [vmem:[%s6173_s10 + $0x6c] sm:$0xf] %v5692_v17  ;;  %5412 = vst [vmem:[%s6173_s10 + $0x70] sm:$0xf] %v5693_v51  ;;  %v7518_v17 = vld [vmem:[#allocation18_spill] sm:$0xff]  ;;  %v7519_v51 = vld [vmem:[#allocation19_spill] sm:$0xff] }
 0x1ec   : > { %v2976_v33 = vrot.slane %v5609_v13, %v6086_v32  ;;  %v4746_v24 = vcombine.low %v4738_v29, %v4745_v19  ;;  %v4763_v18 = vcombine.low %v4755_v14, %v6904_v7  ;;  %v5121_v21 = vadd.f32 %v7051_v10, %v4729_v57  ;;  %v7551_v1 = vld [vmem:[#allocation35_spill] sm:$0xff] }
 0x1ed   : > { %v2977_v31 = vcombine.high %v2969_v16, %v2969_v16  ;;  %v4916_v40 = vcombine.low %v7062_v28, %v7170_v55  ;;  %v7509_v26 = vcombine.low %v6517_v38, %v6568_v8  ;;  %v4179_v41 = vmul.f32 %v2969_v16, %v2969_v16 }
 0x1ee   : > { %v2978_v54 = vcombine.high %v2976_v33, %v2976_v33  ;;  %v5122_v53 = vadd.f32 %v5121_v21, %v4746_v24  ;;  %v4181_v13 = vmul.f32 %v2976_v33, %v2976_v33  ;;  %v7510_v7 = vcombine.low %v6573_v0, %v6659_v37 }
 0x1ef   : > { %v4022_v9 = vadd.f32 %v4021_v3, %v7509_v26  ;;  %v3816_v52 = vcombine.low %v2969_v16, %v2977_v31  ;;  %v4180_v62 = vmul.f32 %v2977_v31, %v2977_v31  ;;  %v7209_v10 = vrot.slane %v3815_v42, %v6086_v32  ;;  %v7514_v42 = vld [vmem:[#allocation12_spill] sm:$0xff]  ;;  %v7521_v3 = vld [vmem:[#allocation14_spill] sm:$0xff] }
 0x1f0   : > { %v4182_v58 = vmul.f32 %v2978_v54, %v2978_v54  ;;  %v5709_v38 = vpack.c.bf16 %v7130_v47, %v7130_v47  ;;  %v5123_v8 = vadd.f32 %v5122_v53, %v4763_v18  ;;  %v3832_v20 = vcombine.low %v2976_v33, %v2978_v54  ;;  %v7522_v33 = vld [vmem:[#allocation15_spill] sm:$0xff]  ;;  %v7526_v53 = vld [vmem:[#allocation21_spill] sm:$0xff] }
 0x1f1   : > { %v4023_v60 = vadd.f32 %v4022_v9, %v7510_v7  ;;  %v4918_v39 = vcombine.low %v4179_v41, %v4180_v62  ;;  %v5749_v61 = vpack.c.bf16 %v7140_v27, %v7100_v23  ;;  %v7513_v45 = vcombine.low %v7511_v12, %v7512_v6  ;;  %v7525_v41 = vld [vmem:[#allocation20_spill] sm:$0xff] }
 0x1f2   : > { %v7219_v0 = vrot.slane %v3816_v52, %v6086_v32  ;;  %v7222_v37 = vrot.slane %v4917_v30, %v6086_v32  ;;  %5428 = vst [vmem:[%s6173_s10 + $0xb0] sm:$0x1] %v5709_v38  ;;  %v1357_v47 = vcombine.high %v7115_v5, %v7115_v5  ;;  %v7516_v48 = vcombine.low %v7514_v42, %v7515_v25  ;;  %v7535_v42 = vld [vmem:[#allocation24_spill] sm:$0xff]  ;;  %v7536_v25 = vld [vmem:[#allocation25_spill] sm:$0xff] }
 0x1f3   : > { %v4024_v2 = vadd.f32 %v4023_v60, %v7513_v45  ;;  %v7231_v23 = vrot.slane %v4918_v39, %v6086_v32  ;;  %v4934_v27 = vcombine.low %v4181_v13, %v4182_v58  ;;  %5762 = vst [vmem:[%s6173_s10 + $0xa8] sm:$0xff] %v5749_v61   ;;  %v7517_v59 = vcombine.high %v7090_v63, %v7090_v63  ;;  %v7532_v45 = vld [vmem:[#allocation29_spill] sm:$0xff] }
 0x1f4   : > { %v5124_v4 = vadd.f32 %v5123_v8, %v7516_v48  ;;  %v7520_v57 = vcombine.low %v7518_v17, %v7519_v51  ;;  %v4183_v14 = vmul.f32 %v7154_v36, %v7154_v36  ;;  %v2087_v16 = vcombine.low %v1357_v47, %v7133_v44  ;;  %v7530_v8 = vld [vmem:[#allocation23_spill] sm:$0xff] }
 0x1f5   : > { %v2086_v29 = vcombine.low %v7517_v59, %v7115_v5  ;;  %v1358_v30 = vcombine.high %v7133_v44, %v7133_v44  ;;  %v7523_v24 = vcombine.low %v7521_v3, %v7522_v33  ;;  %v7250_v21 = vrot.slane %v3832_v20, %v6086_v32  ;;  %v7539_v59 = vld [vmem:[#allocation33_spill] sm:$0xff]  ;;  %v7544_v3 = vld [vmem:[#allocation28_spill] sm:$0xff] }
 0x1f6   : > { %v4025_v19 = vadd.f32 %v4024_v2, %v7520_v57  ;;  %v1359_v5 = vcombine.high %v7117_v56, %v7117_v56  ;;  %v3831_v31 = vcombine.low %v7209_v10, %v7219_v0  ;;  %v7524_v26 = vcombine.low %v6823_v46, %v6826_v50  ;;  %v7541_v57 = vld [vmem:[#allocation26_spill] sm:$0xff] }
 0x1f7   : > { %v5125_v18 = vadd.f32 %v5124_v4, %v7523_v24  ;;  %v2094_v63 = vrot.slane %v2086_v29, %v6086_v32  ;;  %v2101_v44 = vrot.slane %v2087_v16, %v6086_v32  ;;  %v1366_v54 = vrot.slane %v7117_v56, %v6086_v32  ;;  %v7529_v56 = vld [vmem:[#allocation22_spill] sm:$0xff] }
 0x1f8   : > { %v4026_v9 = vadd.f32 %v4025_v19, %v7524_v26  ;;  %v7527_v52 = vcombine.low %v7525_v41, %v7526_v53  ;;  %v4933_v13 = vcombine.low %v7222_v37, %v7231_v23  ;;  %v7269_v7 = vrot.slane %v4934_v27, %v6086_v32  ;;  %v7538_v27 = vld [vmem:[#allocation32_spill] sm:$0xff]  ;;  %v7546_v41 = vld [vmem:[#allocation30_spill] sm:$0xff]  ;;  %v7547_v53 = vld [vmem:[#allocation31_spill] sm:$0xff] }
 0x1f9   : > { %v1373_v60 = vrot.slane %v1359_v5, %v6086_v32  ;;  %v7528_v46 = vcombine.low %v6867_v11, %v6870_v35  ;;  %v2102_v10 = vcombine.low %v2094_v63, %v2101_v44  ;;  %v1374_v58 = vcombine.high %v1366_v54, %v1366_v54  ;;  %v7542_v19 = vld [vmem:[#allocation36_spill] sm:$0xff] }
 0x1fa   : > { %v5126_v62 = vadd.f32 %v5125_v18, %v7527_v52  ;;  %v2103_v38 = vcombine.low %v1358_v30, %v1366_v54  ;;  %v7531_v20 = vcombine.low %v7529_v56, %v7530_v8  ;;  %v718_v12 = vmax.f32 %v7087_v43, 0.0  ;;  %v7543_v30 = vld [vmem:[#allocation27_spill] sm:$0xff]  ;;  %v7550_v8 = vld [vmem:[#allocation34_spill] sm:$0xff] }
 0x1fb   : > { %v4027_v50 = vadd.f32 %v4026_v9, %v7528_v46  ;;  %v1375_v61 = vcombine.high %v1373_v60, %v1373_v60  ;;  %v7280_v6 = vmax.f32 %v7094_v34, 0.0  ;;  %v7533_v2 = vcombine.low %v6972_v15, %v7532_v45 }
 0x1fc   : > { %v5127_v39 = vadd.f32 %v5126_v62, %v7531_v20  ;;  %v2308_v11 = vsel %vm1456_vm4, %v2102_v10, 0.0  ;;  %v2104_v35 = vcombine.low %v1374_v58, %v1373_v60  ;;  %v2111_v47 = vrot.slane %v2103_v38, %v6086_v32 }
 0x1fd   : > { %v4028_v0 = vadd.f32 %v4027_v50, %v7533_v2  ;;  %v7537_v48 = vcombine.low %v7535_v42, %v7536_v25  ;;  %v2986_v23 = vcombine.high %v2308_v11, %v2308_v11  ;;  %v2993_v43 = vrot.slane %v2308_v11, %v6086_v32  ;;  %v7557_v50 = vld [vmem:[#allocation9_spill] sm:$0xff] }
 0x1fe   : > { %v5710_v34 = vpack.c.bf16 %v2308_v11, %v2308_v11  ;;  %v7540_v29 = vcombine.low %v7538_v27, %v7539_v59  ;;  %v2118_v17 = vrot.slane %v2104_v35, %v6086_v32  ;;  %v2126_v51 = vrot.slane %v1375_v61, %v6086_v32 }
 0x1ff   : > { %v5128_v4 = vadd.f32 %v5127_v39, %v7537_v48  ;;  %v7299_v16 = vadd.f32 %v7542_v19, %v7541_v57  ;;  %v7545_v33 = vcombine.low %v7543_v30, %v7544_v3  ;;  %v3000_v18 = vrot.slane %v2986_v23, %v6086_v32 }
 0x200   : > { %v4029_v15 = vadd.f32 %v4028_v0, %v7540_v29  ;;  %v3001_v63 = vcombine.high %v2993_v43, %v2993_v43  ;;  %v3833_v5 = vcombine.low %v7154_v36, %v2993_v43  ;;  %5429 = vst [vmem:[%s6173_s10 + $0xb4] sm:$0xf] %v5710_v34  ;;  %v4184_v9 = vmul.f32 %v2993_v43, %v2993_v43 }
 0x201   : > { %v5129_v24 = vadd.f32 %v5128_v4, %v7545_v33  ;;  %v2119_v44 = vcombine.low %v2111_v47, %v2118_v17  ;;  %v1376_v54 = vcombine.high %v718_v12, %v718_v12  ;;  %v7548_v52 = vcombine.low %v7546_v41, %v7547_v53 }
 0x202   : > { %v4030_v26 = vadd.f32 %v4029_v15, %v3814_v49  ;;  %v3847_v60 = vrot.slane %v3833_v5, %v6086_v32  ;;  %v3849_v46 = vcombine.low %v3001_v63, %v3000_v18  ;;  %v2310_v10 = vsel %vm1461_vm3, %v2126_v51, 0.0 }
 0x203   : > { %v5130_v62 = vadd.f32 %v5129_v24, %v7548_v52  ;;  %v4185_v58 = vmul.f32 %v3001_v63, %v3001_v63  ;;  %v4186_v36 = vmul.f32 %v3000_v18, %v3000_v18  ;;  %v4935_v38 = vcombine.low %v4183_v14, %v4184_v9 }
 0x204   : > { %v3002_v56 = vcombine.high %v3000_v18, %v3000_v18  ;;  %v7552_v22 = vcombine.low %v7550_v8, %v7551_v1  ;;  %v5610_v20 = vcombine.low %v2118_v17, %v2118_v17  ;;  %v3010_v39 = vrot.slane %v2119_v44, %v6086_v32  ;;  %v7554_v8 = vld [vmem:[#allocation5_spill] sm:$0xff] }
 0x205   : > { %v1383_v61 = vrot.slane %v718_v12, %v6086_v32  ;;  %v4031_v45 = vadd.f32 %v4030_v26, %v3831_v31  ;;  %v3848_v2 = vcombine.low %v7250_v21, %v3847_v60  ;;  %v4949_v0 = vrot.slane %v4935_v38, %v6086_v32 }
 0x206   : > { %v5131_v49 = vadd.f32 %v5130_v62, %v7552_v22  ;;  %v3026_v11 = vrot.slane %v2310_v10, %v6086_v32  ;;  %v3017_v35 = vrot.slane %v5610_v20, %v6086_v32  ;;  %v3018_v47 = vcombine.high %v3010_v39, %v3010_v39 }
 0x207   : > { %v3850_v42 = vcombine.low %v3002_v56, %v3010_v39  ;;  %v4951_v25 = vcombine.low %v4185_v58, %v4186_v36  ;;  %v3857_v48 = vrot.slane %v3849_v46, %v6086_v32  ;;  %v4187_v4 = vmul.f32 %v3002_v56, %v3002_v56  ;;  %v7553_v56 = vld [vmem:[#allocation4_spill] sm:$0xff] }
 0x208   : > { %v5132_v14 = vadd.f32 %v5131_v49, %v4916_v40  ;;  %v4188_v12 = vmul.f32 %v3010_v39, %v3010_v39  ;;  %v3019_v23 = vcombine.high %v3017_v35, %v3017_v35  ;;  %v3866_v43 = vcombine.low %v3018_v47, %v3017_v35  ;;  %v7556_v39 = vld [vmem:[#allocation6_spill] sm:$0xff] }
 0x209   : > { %v3864_v21 = vrot.slane %v3850_v42, %v6086_v32  ;;  %v4189_v34 = vmul.f32 %v3018_v47, %v3018_v47  ;;  %v4190_v27 = vmul.f32 %v3017_v35, %v3017_v35  ;;  %v4192_v59 = vmul.f32 %v3026_v11, %v3026_v11 }
 0x20a   : > { %v5133_v31 = vadd.f32 %v5132_v14, %v4933_v13  ;;  %v4952_v29 = vcombine.low %v4187_v4, %v4188_v12  ;;  %v4950_v55 = vcombine.low %v7269_v7, %v4949_v0  ;;  %v3867_v28 = vcombine.low %v3019_v23, %v3026_v11 }
 0x20b   : > { %v4191_v40 = vmul.f32 %v3019_v23, %v3019_v23  ;;  %v1390_v15 = vrot.slane %v1376_v54, %v6086_v32  ;;  %v4032_v17 = vadd.f32 %v4031_v45, %v3848_v2  ;;  %v4959_v51 = vrot.slane %v4951_v25, %v6086_v32 }
 0x20c   : > { %v4966_v13 = vrot.slane %v4952_v29, %v6086_v32  ;;  %v4968_v57 = vcombine.low %v4189_v34, %v4190_v27  ;;  %v3865_v19 = vcombine.low %v3857_v48, %v3864_v21  ;;  %v5134_v3 = vadd.f32 %v5133_v31, %v4950_v55  ;;  %v7559_v27 = vld [vmem:[#allocation7_spill] sm:$0xff] }
 0x20d   : > { %v4969_v30 = vcombine.low %v4191_v40, %v4192_v59  ;;  %v5711_v33 = vpack.c.bf16 %v2119_v44, %v2119_v44  ;;  %v3874_v24 = vrot.slane %v3866_v43, %v6086_v32  ;;  %v3881_v7 = vrot.slane %v3867_v28, %v6086_v32  ;;  %v7558_v43 = vld [vmem:[#allocation8_spill] sm:$0xff]  ;;  %v7560_v59 = vld [vmem:[#allocation10_spill] sm:$0xff] }
 0x20e   : > { %v5712_v18 = vpack.c.bf16 %v2310_v10, %v2310_v10  ;;  %v1391_v63 = vcombine.high %v1383_v61, %v1383_v61  ;;  %v4967_v5 = vcombine.low %v4959_v51, %v4966_v13  ;;  %v4976_v26 = vrot.slane %v4968_v57, %v6086_v32 }
 0x20f   : > { %5430 = vst [vmem:[%s6173_s10 + $0xb8] sm:$0xf] %v5711_v33  ;;  %v1392_v9 = vcombine.high %v1390_v15, %v1390_v15  ;;  %v1393_v54 = vcombine.high %v7280_v6, %v7280_v6  ;;  %v4983_v41 = vrot.slane %v4969_v30, %v6086_v32  ;;  %v1400_v44 = vrot.slane %v7280_v6, %v6086_v32  ;;  %v7555_v6 = vld [vmem:[#allocation3_spill] sm:$0xff] }
 0x210   : > { %5431 = vst [vmem:[%s6173_s10 + $0xbc] sm:$0x1] %v5712_v18  ;;  %v2127_v53 = vcombine.low %v1383_v61, %v1391_v63  ;;  %v720_v52 = vmax.f32 %v7299_v16, 0.0  ;;  %v4033_v62 = vadd.f32 %v4032_v17, %v3865_v19  ;;  %v5135_v60 = vadd.f32 %v5134_v3, %v4967_v5 }
 0x211   : > { %v2128_v46 = vcombine.low %v1390_v15, %v1392_v9  ;;  %v1407_v10 = vrot.slane %v1393_v54, %v6086_v32  ;;  %v1408_v36 = vcombine.high %v1400_v44, %v1400_v44  ;;  %v3918_v1 = vcombine.low %v7554_v8, %v7553_v56 }
 0x212   : > { %v2135_v58 = vrot.slane %v2127_v53, %v6086_v32  ;;  %v1417_v38 = vrot.slane %v720_v52, %v6086_v32  ;;  %v3882_v22 = vcombine.low %v3874_v24, %v3881_v7  ;;  %v3934_v16 = vcombine.low %v7556_v39, %v7555_v6 }
 0x213   : > { %v2142_v49 = vrot.slane %v2128_v46, %v6086_v32  ;;  %v1409_v20 = vcombine.high %v1407_v10, %v1407_v10  ;;  %v4984_v61 = vcombine.low %v4976_v26, %v4983_v41  ;;  %v2144_v45 = vcombine.low %v1400_v44, %v1408_v36 }
 0x214   : > { %v2167_v2 = vrot.slane %v1417_v38, %v6086_v32  ;;  %v4034_v0 = vadd.f32 %v4033_v62, %v3882_v22  ;;  %v7362_v25 = vrot.slane %v3918_v1, %v6086_v32  ;;  %v7370_v31 = vrot.slane %v3934_v16, %v6086_v32 }
 0x215   : > { %v2143_v11 = vcombine.low %v2135_v58, %v2142_v49  ;;  %v2145_v14 = vcombine.low %v1407_v10, %v1409_v20  ;;  %v7354_v35 = vadd.f32 %v5135_v60, %v4984_v61  ;;  %v2152_v47 = vrot.slane %v2144_v45, %v6086_v32 }
 0x216   : > { %v7359_v42 = vsel %vm1461_vm3, %v2167_v2, 0.0  ;;  %v5020_v34 = vcombine.low %v7558_v43, %v7557_v50  ;;  %v5036_v29 = vcombine.low %v7560_v59, %v7559_v27 }
 0x217   : > { %v2311_v48 = vsel %vm1456_vm4, %v2143_v11, 0.0  ;;  %v2159_v4 = vrot.slane %v2145_v14, %v6086_v32  ;;  %v3067_v12 = vrot.slane %v7359_v42, %v6086_v32 }
 0x218   : > { %v3027_v23 = vcombine.high %v2311_v48, %v2311_v48  ;;  %v3034_v21 = vrot.slane %v2311_v48, %v6086_v32  ;;  %v5034_v36 = vrot.slane %v5020_v34, %v6086_v32 }
 0x219   : > { %v2160_v55 = vcombine.low %v2152_v47, %v2159_v4  ;;  %v5611_v37 = vcombine.low %v2159_v4, %v2159_v4  ;;  %v3917_v28 = vcombine.low %v3067_v12, %v7555_v6  ;;  %v4201_v51 = vmul.f32 %v3067_v12, %v3067_v12 }
 0x21a   : > { %v3041_v40 = vrot.slane %v3027_v23, %v6086_v32  ;;  %v3042_v15 = vcombine.high %v3034_v21, %v3034_v21  ;;  %v4193_v17 = vmul.f32 %v3034_v21, %v3034_v21  ;;  %v5044_v6 = vrot.slane %v5036_v29, %v6086_v32 }
 0x21b   : > { %v3051_v13 = vrot.slane %v2160_v55, %v6086_v32  ;;  %v3058_v57 = vrot.slane %v5611_v37, %v6086_v32  ;;  %v5754_v19 = vpack.c.bf16 %v2160_v55, %v2311_v48  ;;  %v3925_v30 = vrot.slane %v3917_v28, %v6086_v32 }
 0x21c   : > { %v3043_v3 = vcombine.high %v3041_v40, %v3041_v40  ;;  %v3883_v33 = vcombine.low %v3034_v21, %v3042_v15  ;;  %v4194_v24 = vmul.f32 %v3042_v15, %v3042_v15  ;;  %v4195_v7 = vmul.f32 %v3041_v40, %v3041_v40 }
 0x21d   : > { %v3059_v18 = vcombine.high %v3051_v13, %v3051_v13  ;;  %v3060_v63 = vcombine.high %v3058_v57, %v3058_v57  ;;  %v4197_v5 = vmul.f32 %v3051_v13, %v3051_v13  ;;  %v4199_v26 = vmul.f32 %v3058_v57, %v3058_v57  ;;  %5763 = vst [vmem:[%s6173_s10 + $0xc0] sm:$0xff] %v5754_v19  }
 0x21e   : > { %v3884_v9 = vcombine.low %v3041_v40, %v3043_v3  ;;  %v3891_v54 = vrot.slane %v3883_v33, %v6086_v32  ;;  %v4196_v41 = vmul.f32 %v3043_v3, %v3043_v3  ;;  %v4985_v53 = vcombine.low %v4193_v17, %v4194_v24 }
 0x21f   : > { %v3900_v44 = vcombine.low %v3051_v13, %v3059_v18  ;;  %v3901_v52 = vcombine.low %v3058_v57, %v3060_v63  ;;  %v4198_v62 = vmul.f32 %v3059_v18, %v3059_v18  ;;  %v4200_v60 = vmul.f32 %v3060_v63, %v3060_v63 }
 0x220   : > { %v3898_v46 = vrot.slane %v3884_v9, %v6086_v32  ;;  %v4986_v10 = vcombine.low %v4195_v7, %v4196_v41  ;;  %v4993_v58 = vrot.slane %v4985_v53, %v6086_v32  ;;  %v5019_v20 = vcombine.low %v4201_v51, %v7559_v27 }
 0x221   : > { %v3908_v38 = vrot.slane %v3900_v44, %v6086_v32  ;;  %v3915_v56 = vrot.slane %v3901_v52, %v6086_v32  ;;  %v5002_v8 = vcombine.low %v4197_v5, %v4198_v62  ;;  %v5003_v1 = vcombine.low %v4199_v26, %v4200_v60 }
 0x222   : > { %v3899_v22 = vcombine.low %v3891_v54, %v3898_v46  ;;  %v5000_v49 = vrot.slane %v4986_v10, %v6086_v32  ;;  %v3933_v45 = vcombine.low %v3925_v30, %v7362_v25  ;;  %v5027_v14 = vrot.slane %v5019_v20, %v6086_v32 }
 0x223   : > { %v3916_v39 = vcombine.low %v3908_v38, %v3915_v56  ;;  %v5010_v16 = vrot.slane %v5002_v8, %v6086_v32  ;;  %v5017_v61 = vrot.slane %v5003_v1, %v6086_v32  ;;  %v5715_v47 = vpack.c.bf16 %v7359_v42, %v7359_v42 }
 0x224   : > { %v5001_v2 = vcombine.low %v4993_v58, %v5000_v49  ;;  %v4035_v11 = vadd.f32 %v4034_v0, %v3899_v22  ;;  %v3950_v48 = vcombine.low %v7370_v31, %v7362_v25  ;;  %v5935_v4 = vmov 0.0|0.0  }
 0x225   : > { %v5612_v12 = vcombine.low %v5935_v4, %v5935_v4  ;;  %v5613_v23 = vcombine.high %v5935_v4, %v5935_v4  ;;  %v5018_v21 = vcombine.low %v5010_v16, %v5017_v61  ;;  %v5035_v43 = vcombine.low %v5027_v14, %v5034_v36  ;;  %5434 = vst [vmem:[%s6173_s10 + $0xc8] sm:$0x1] %v5715_v47 }
 0x226   : > { %v4036_v50 = vadd.f32 %v4035_v11, %v3916_v39  ;;  %v5137_v0 = vadd.f32 %v7354_v35, %v5001_v2  ;;  %v5052_v42 = vcombine.low %v5044_v6, %v5034_v36  ;;  %v4040_v25 = vsel %vm4039_vm5, %v7370_v31, 0.0 }
 0x227   : > { %5384 = vst [vmem:[%s6173_s10] sm:$0xf] %v5612_v12  ;;  %5385 = vst [vmem:[%s6173_s10 + $0x4] sm:$0xf] %v5613_v23  ;;  %v5141_v29 = vsel %vm4039_vm5, %v5044_v6, 0.0 }
 0x228   : > { %5386 = vst [vmem:[%s6173_s10 + $0x8] sm:$0x1] %v5612_v12  ;;  %5435 = vst [vmem:[%s6173_s10 + $0xcc] sm:$0xf] %v5612_v12  ;;  %v4037_v32 = vadd.f32 %v4036_v50, %v3933_v45  ;;  %v5138_v34 = vadd.f32 %v5137_v0, %v5018_v21 }
 0x229   : > { %5436 = vst [vmem:[%s6173_s10 + $0xd0] sm:$0xf] %v5613_v23  ;;  %5437 = vst [vmem:[%s6173_s10 + $0xd4] sm:$0x1] %v5612_v12 }
 0x22a   : > { %v4038_v27 = vadd.f32 %v4037_v32, %v3950_v48  ;;  %v5139_v59 = vadd.f32 %v5138_v34, %v5035_v43 }
 0x22c   : > { %v4041_v35 = vadd.f32 %v4040_v25, %v4038_v27  ;;  %v5140_v55 = vadd.f32 %v5139_v59, %v5052_v42 }
 0x22e   : > { %v4042_v37 = vrot.slane %v4041_v35, 4  ;;  %v5142_v28 = vadd.f32 %v5141_v29, %v5140_v55 }
 0x230   : > { %v4043_v40 = vadd.f32 %v4042_v37, %v4041_v35  ;;  %v5143_v15 = vrot.slane %v5142_v28, 4 }
 0x232   : > { %v4044_v17 = vrot.slane %v4043_v40, 2  ;;  %v5144_v51 = vadd.f32 %v5143_v15, %v5142_v28 }
 0x234   : > { %v4045_v13 = vadd.f32 %v4044_v17, %v4043_v40  ;;  %v5145_v57 = vrot.slane %v5144_v51, 2 }
 0x236   : > { %v4046_v19 = vrot.slane %v4045_v13, 1  ;;  %v5146_v30 = vadd.f32 %v5145_v57, %v5144_v51 }
 0x238   : > { %v4047_v31 = vadd.f32 %v4046_v19, %v4045_v13  ;;  %v5147_v3 = vrot.slane %v5146_v30, 1 }
 0x23a   : > { %4048 = vst [vmem:[%s238_s17] sm:$0x1] %v4047_v31  ;;  %v5148_v33 = vadd.f32 %v5147_v3, %v5146_v30 }
 0x23c   : > { %5149 = vst [vmem:[%s241_s22] sm:$0x1] %v5148_v33 }
 0x23d PF: > { %s16_s18 = sadd.s32 1, %s5930_s18  }
 0x23e   : > { %p13_p4 = scmp.ge.s32.totalorder %s16_s18, 4  }
 0x240   :  { %15 = sbr.rel (!%p13_p4) target bundleno = 1 (0x1), region = 86 }

// kernel: conv_block_forward.5
= control target key start
LH: loop header
LB: loop body
LE: loop exit
PB: predicated region body
PF: predicated region fallthrough
CT: control target
= control target key end

     0   :  { %s531_s12 = smov 0   ;;  %s706_s0 = inlined_call_operand.vmem [shape: bf16[2,16,16,128], index: 0, kind: input, shape index: {}]   ;;  %s707_s1 = inlined_call_operand.vmem [shape: f32[1,8], index: 1, kind: input, shape index: {}]   ;;  %s708_s2 = inlined_call_operand.vmem [shape: f32[1,8], index: 2, kind: input, shape index: {}]   ;;  %s709_s3 = inlined_call_operand.vmem [shape: f32[2,16,16,8], index: 3, kind: output, shape index: {}]  }
   0x1 LB: > { %s401_s13 = sadd.s32 4294967295, %s509_s12   ;;  %p405_p0 = scmp.ge.s32.totalorder %s509_s12, 1  ;;  %s509_s12 = sphi %s531_s12, %s13_s12  }
   0x2   : > { %p137_p1 = scmp.lt.s32.totalorder %s509_s12, 3 }
   0x4   : > { %p138_p2 = pnand %p405_p0, %p137_p1 }
   0x5   : > { %p161_p3 = scmp.lt.s32.totalorder (!%p138_p2), %s401_s13, 1 }
   0x6   : > { %141 = sbr.rel (%p138_p2) target bundleno = 43 (0x2b), region = 32 }
   0xb   : > { %s711_s13 = smov (!%p161_p3, %s401_s13), 1  ;;  %v547_v0 = vld [vmem:[%s707_s1] ss:$0 sm:$0xff]  ;;  %vm313_vm0 = vcmask 64512  }
   0xc   : > { %s414_s14 = sshll.u32 %s711_s13, 7  ;;  %s415_s20 = sshll.u32 %s711_s13, 8  ;;  %v556_v9 = vld [vmem:[%s708_s2] ss:$0 sm:$0xff] }
   0xd   : > { %s542_s17 = scalar_lea.vmem %s706_s0, %s414_s14  ;;  %s565_s25 = scalar_lea.vmem %s709_s3, %s415_s20 }
   0xe   : > { %v417_v1 = vld [vmem:[%s542_s17] sm:$0xff]   ;;  %v480_v2 = vld [vmem:[%s542_s17 + $0x8] sm:$0xff]   ;;  %v481_v3 = vld [vmem:[%s542_s17 + $0x10] sm:$0xff]  }
   0xf   : > { %v418_v4 = vunpack.c.l.bf16 %v417_v1  ;;  %v419_v5 = vunpack.c.h.bf16 %v417_v1  ;;  %v422_v6 = vunpack.c.l.bf16 %v480_v2  ;;  %v423_v7 = vunpack.c.h.bf16 %v480_v2  ;;  %v482_v8 = vld [vmem:[%s542_s17 + $0x18] sm:$0xff]   ;;  %v483_v22 = vld [vmem:[%s542_s17 + $0x20] sm:$0xff]   ;;  %v484_v23 = vld [vmem:[%s542_s17 + $0x28] sm:$0xff]  }
  0x10   : > { %v426_v10 = vunpack.c.l.bf16 %v481_v3  ;;  %v427_v11 = vunpack.c.h.bf16 %v481_v3  ;;  %v430_v12 = vunpack.c.l.bf16 %v482_v8  ;;  %v431_v13 = vunpack.c.h.bf16 %v482_v8  ;;  %v485_v28 = vld [vmem:[%s542_s17 + $0x30] sm:$0xff]   ;;  %v486_v29 = vld [vmem:[%s542_s17 + $0x38] sm:$0xff]   ;;  %v487_v50 = vld [vmem:[%s542_s17 + $0x40] sm:$0xff]  }
  0x11   : > { %v242_v14 = vmul.f32 %v418_v4, %v547_v0  ;;  %v243_v15 = vmul.f32 %v419_v5, %v547_v0  ;;  %v244_v16 = vmul.f32 %v422_v6, %v547_v0  ;;  %v245_v17 = vmul.f32 %v423_v7, %v547_v0  ;;  %v488_v51 = vld [vmem:[%s542_s17 + $0x48] sm:$0xff]   ;;  %v489_v56 = vld [vmem:[%s542_s17 + $0x50] sm:$0xff]   ;;  %v490_v57 = vld [vmem:[%s542_s17 + $0x58] sm:$0xff]  }
  0x12   : > { %v246_v18 = vmul.f32 %v426_v10, %v547_v0  ;;  %v247_v19 = vmul.f32 %v427_v11, %v547_v0  ;;  %v248_v20 = vmul.f32 %v430_v12, %v547_v0  ;;  %v249_v21 = vmul.f32 %v431_v13, %v547_v0 }
  0x13   : > { %v281_v24 = vadd.f32 %v556_v9, %v242_v14  ;;  %v282_v25 = vadd.f32 %v556_v9, %v243_v15  ;;  %v283_v26 = vadd.f32 %v556_v9, %v244_v16  ;;  %v284_v27 = vadd.f32 %v556_v9, %v245_v17  ;;  %v491_v16 = vld [vmem:[%s542_s17 + $0x60] sm:$0xff]   ;;  %v492_v17 = vld [vmem:[%s542_s17 + $0x68] sm:$0xff]  }
  0x14   : > { %v285_v30 = vadd.f32 %v556_v9, %v246_v18  ;;  %v286_v31 = vadd.f32 %v556_v9, %v247_v19  ;;  %v287_v32 = vadd.f32 %v556_v9, %v248_v20  ;;  %v288_v33 = vadd.f32 %v556_v9, %v249_v21 }
  0x15   : > { %314 = vst.msk [vmem:[%s565_s25] sm:$0xff] %vm313_vm0, %v281_v24  ;;  %315 = vst.msk [vmem:[%s565_s25 + $0x8] sm:$0xff] %vm313_vm0, %v282_v25  ;;  %v434_v34 = vunpack.c.l.bf16 %v483_v22  ;;  %v435_v35 = vunpack.c.h.bf16 %v483_v22  ;;  %v438_v36 = vunpack.c.l.bf16 %v484_v23  ;;  %v439_v37 = vunpack.c.h.bf16 %v484_v23  ;;  %v493_v22 = vld [vmem:[%s542_s17 + $0x70] sm:$0xff]   ;;  %v494_v23 = vld [vmem:[%s542_s17 + $0x78] sm:$0xff]  }
  0x16   : > { %316 = vst.msk [vmem:[%s565_s25 + $0x10] sm:$0xff] %vm313_vm0, %v283_v26  ;;  %317 = vst.msk [vmem:[%s565_s25 + $0x18] sm:$0xff] %vm313_vm0, %v284_v27  ;;  %v442_v38 = vunpack.c.l.bf16 %v485_v28  ;;  %v443_v39 = vunpack.c.h.bf16 %v485_v28  ;;  %v446_v40 = vunpack.c.l.bf16 %v486_v29  ;;  %v447_v41 = vunpack.c.h.bf16 %v486_v29 }
  0x17   : > { %318 = vst.msk [vmem:[%s565_s25 + $0x20] sm:$0xff] %vm313_vm0, %v285_v30  ;;  %319 = vst.msk [vmem:[%s565_s25 + $0x28] sm:$0xff] %vm313_vm0, %v286_v31  ;;  %v250_v42 = vmul.f32 %v434_v34, %v547_v0  ;;  %v251_v43 = vmul.f32 %v435_v35, %v547_v0  ;;  %v252_v44 = vmul.f32 %v438_v36, %v547_v0  ;;  %v450_v62 = vunpack.c.l.bf16 %v487_v50 }
  0x18   : > { %320 = vst.msk [vmem:[%s565_s25 + $0x30] sm:$0xff] %vm313_vm0, %v287_v32  ;;  %321 = vst.msk [vmem:[%s565_s25 + $0x38] sm:$0xff] %vm313_vm0, %v288_v33  ;;  %v253_v45 = vmul.f32 %v439_v37, %v547_v0  ;;  %v254_v46 = vmul.f32 %v442_v38, %v547_v0  ;;  %v255_v47 = vmul.f32 %v443_v39, %v547_v0  ;;  %v451_v63 = vunpack.c.h.bf16 %v487_v50 }
  0x19   : > { %v256_v48 = vmul.f32 %v446_v40, %v547_v0  ;;  %v257_v49 = vmul.f32 %v447_v41, %v547_v0  ;;  %v289_v52 = vadd.f32 %v556_v9, %v250_v42  ;;  %v290_v53 = vadd.f32 %v556_v9, %v251_v43 }
  0x1a   : > { %v291_v54 = vadd.f32 %v556_v9, %v252_v44  ;;  %v292_v55 = vadd.f32 %v556_v9, %v253_v45  ;;  %v293_v58 = vadd.f32 %v556_v9, %v254_v46  ;;  %v294_v59 = vadd.f32 %v556_v9, %v255_v47 }
  0x1b   : > { %v295_v60 = vadd.f32 %v556_v9, %v256_v48  ;;  %v296_v61 = vadd.f32 %v556_v9, %v257_v49  ;;  %322 = vst.msk [vmem:[%s565_s25 + $0x40] sm:$0xff] %vm313_vm0, %v289_v52  ;;  %323 = vst.msk [vmem:[%s565_s25 + $0x48] sm:$0xff] %vm313_vm0, %v290_v53  ;;  %v454_v1 = vunpack.c.l.bf16 %v488_v51  ;;  %v455_v2 = vunpack.c.h.bf16 %v488_v51 }
  0x1c   : > { %324 = vst.msk [vmem:[%s565_s25 + $0x50] sm:$0xff] %vm313_vm0, %v291_v54  ;;  %325 = vst.msk [vmem:[%s565_s25 + $0x58] sm:$0xff] %vm313_vm0, %v292_v55  ;;  %v458_v3 = vunpack.c.l.bf16 %v489_v56  ;;  %v459_v4 = vunpack.c.h.bf16 %v489_v56  ;;  %v462_v5 = vunpack.c.l.bf16 %v490_v57  ;;  %v463_v6 = vunpack.c.h.bf16 %v490_v57 }
  0x1d   : > { %326 = vst.msk [vmem:[%s565_s25 + $0x60] sm:$0xff] %vm313_vm0, %v293_v58  ;;  %327 = vst.msk [vmem:[%s565_s25 + $0x68] sm:$0xff] %vm313_vm0, %v294_v59  ;;  %v258_v7 = vmul.f32 %v450_v62, %v547_v0  ;;  %v259_v8 = vmul.f32 %v451_v63, %v547_v0  ;;  %v260_v10 = vmul.f32 %v454_v1, %v547_v0  ;;  %v466_v28 = vunpack.c.l.bf16 %v491_v16 }
  0x1e   : > { %328 = vst.msk [vmem:[%s565_s25 + $0x70] sm:$0xff] %vm313_vm0, %v295_v60  ;;  %329 = vst.msk [vmem:[%s565_s25 + $0x78] sm:$0xff] %vm313_vm0, %v296_v61  ;;  %v261_v11 = vmul.f32 %v455_v2, %v547_v0  ;;  %v262_v12 = vmul.f32 %v458_v3, %v547_v0  ;;  %v263_v13 = vmul.f32 %v459_v4, %v547_v0  ;;  %v467_v29 = vunpack.c.h.bf16 %v491_v16 }
  0x1f   : > { %v264_v14 = vmul.f32 %v462_v5, %v547_v0  ;;  %v265_v15 = vmul.f32 %v463_v6, %v547_v0  ;;  %v297_v18 = vadd.f32 %v556_v9, %v258_v7  ;;  %v298_v19 = vadd.f32 %v556_v9, %v259_v8 }
  0x20   : > { %v299_v20 = vadd.f32 %v556_v9, %v260_v10  ;;  %v300_v21 = vadd.f32 %v556_v9, %v261_v11  ;;  %v301_v24 = vadd.f32 %v556_v9, %v262_v12  ;;  %v302_v25 = vadd.f32 %v556_v9, %v263_v13 }
  0x21   : > { %v303_v26 = vadd.f32 %v556_v9, %v264_v14  ;;  %v304_v27 = vadd.f32 %v556_v9, %v265_v15  ;;  %330 = vst.msk [vmem:[%s565_s25 + $0x80] sm:$0xff] %vm313_vm0, %v297_v18  ;;  %331 = vst.msk [vmem:[%s565_s25 + $0x88] sm:$0xff] %vm313_vm0, %v298_v19  ;;  %v470_v30 = vunpack.c.l.bf16 %v492_v17  ;;  %v471_v31 = vunpack.c.h.bf16 %v492_v17 }
  0x22   : > { %332 = vst.msk [vmem:[%s565_s25 + $0x90] sm:$0xff] %vm313_vm0, %v299_v20  ;;  %333 = vst.msk [vmem:[%s565_s25 + $0x98] sm:$0xff] %vm313_vm0, %v300_v21  ;;  %v474_v32 = vunpack.c.l.bf16 %v493_v22  ;;  %v475_v33 = vunpack.c.h.bf16 %v493_v22  ;;  %v478_v34 = vunpack.c.l.bf16 %v494_v23  ;;  %v479_v35 = vunpack.c.h.bf16 %v494_v23 }
  0x23   : > { %334 = vst.msk [vmem:[%s565_s25 + $0xa0] sm:$0xff] %vm313_vm0, %v301_v24  ;;  %335 = vst.msk [vmem:[%s565_s25 + $0xa8] sm:$0xff] %vm313_vm0, %v302_v25  ;;  %v266_v36 = vmul.f32 %v466_v28, %v547_v0  ;;  %v267_v37 = vmul.f32 %v467_v29, %v547_v0  ;;  %v268_v38 = vmul.f32 %v470_v30, %v547_v0 }
  0x24   : > { %336 = vst.msk [vmem:[%s565_s25 + $0xb0] sm:$0xff] %vm313_vm0, %v303_v26  ;;  %337 = vst.msk [vmem:[%s565_s25 + $0xb8] sm:$0xff] %vm313_vm0, %v304_v27  ;;  %v269_v39 = vmul.f32 %v471_v31, %v547_v0  ;;  %v270_v40 = vmul.f32 %v474_v32, %v547_v0  ;;  %v271_v41 = vmul.f32 %v475_v33, %v547_v0 }
  0x25   : > { %v272_v42 = vmul.f32 %v478_v34, %v547_v0  ;;  %v273_v43 = vmul.f32 %v479_v35, %v547_v0  ;;  %v305_v44 = vadd.f32 %v556_v9, %v266_v36  ;;  %v306_v45 = vadd.f32 %v556_v9, %v267_v37 }
  0x26   : > { %v307_v46 = vadd.f32 %v556_v9, %v268_v38  ;;  %v308_v47 = vadd.f32 %v556_v9, %v269_v39  ;;  %v309_v48 = vadd.f32 %v556_v9, %v270_v40  ;;  %v310_v49 = vadd.f32 %v556_v9, %v271_v41 }
  0x27   : > { %v311_v50 = vadd.f32 %v556_v9, %v272_v42  ;;  %v312_v51 = vadd.f32 %v556_v9, %v273_v43  ;;  %338 = vst.msk [vmem:[%s565_s25 + $0xc0] sm:$0xff] %vm313_vm0, %v305_v44  ;;  %339 = vst.msk [vmem:[%s565_s25 + $0xc8] sm:$0xff] %vm313_vm0, %v306_v45 }
  0x28   : > { %340 = vst.msk [vmem:[%s565_s25 + $0xd0] sm:$0xff] %vm313_vm0, %v307_v46  ;;  %341 = vst.msk [vmem:[%s565_s25 + $0xd8] sm:$0xff] %vm313_vm0, %v308_v47 }
  0x29   : > { %342 = vst.msk [vmem:[%s565_s25 + $0xe0] sm:$0xff] %vm313_vm0, %v309_v48  ;;  %343 = vst.msk [vmem:[%s565_s25 + $0xe8] sm:$0xff] %vm313_vm0, %v310_v49 }
  0x2a   : > { %344 = vst.msk [vmem:[%s565_s25 + $0xf0] sm:$0xff] %vm313_vm0, %v311_v50  ;;  %345 = vst.msk [vmem:[%s565_s25 + $0xf8] sm:$0xff] %vm313_vm0, %v312_v51 }
  0x2b PF: > { %s13_s12 = sadd.s32 1, %s509_s12  }
  0x2c   : > { %p10_p4 = scmp.ge.s32.totalorder %s13_s12, 4  }
  0x2e   :  { %12 = sbr.rel (!%p10_p4) target bundleno = 1 (0x1), region = 62 }

// kernel: conv_block_forward.4
= control target key start
LH: loop header
LB: loop body
LE: loop exit
PB: predicated region body
PF: predicated region fallthrough
CT: control target
= control target key end

     0   :  { %s3482_s18 = smov 0   ;;  %s4891_s0 = inlined_call_operand.vmem [shape: bf16[2,18,18,128], index: 0, kind: input, shape index: {}]   ;;  %s4892_s1 = inlined_call_operand.vmem [shape: bf16[1152,128], index: 1, kind: input, shape index: {}]   ;;  %s4893_s2 = inlined_call_operand.vmem [shape: f32[256,128], index: 2, kind: input, shape index: {}]   ;;  %s4894_s3 = inlined_call_operand.vmem [shape: bf16[2,16,16,128], index: 3, kind: output, shape index: {0}]   ;;  %s4895_s4 = inlined_call_operand.vmem [shape: f32[2,1,128], index: 4, kind: output, shape index: {1}]   ;;  %s4896_s5 = inlined_call_operand.vmem [shape: f32[2,1,128], index: 5, kind: output, shape index: {2}]  }
   0x1 LB: > { %s2531_s19 = sadd.s32 4294967295, %s3450_s18   ;;  %p2535_p0 = scmp.ge.s32.totalorder %s3450_s18, 1  ;;  %s3450_s18 = sphi %s3482_s18, %s16_s18  }
   0x2   : > { %p192_p1 = scmp.lt.s32.totalorder %s3450_s18, 3 }
   0x4   : > { %p193_p2 = pnand %p2535_p0, %p192_p1 }
   0x6   : > { %196 = sbr.rel (%p193_p2) target bundleno = 549 (0x225), region = 32 }
   0xb   : > { %v3336_v0 = vld [vmem:[%s4892_s1 + $0x78] sm:$0xff]   ;;  %p226_p3 = scmp.lt.s32.totalorder %s2531_s19, 1  ;;  %v3338_v2 = vld [vmem:[%s4892_s1 + $0x70] sm:$0xff]   ;;  %v3340_v4 = vld [vmem:[%s4892_s1 + $0x68] sm:$0xff]   ;;  %vm415_vm0 = vcmask 1046528   ;;  %vm544_vm1 = vcmask 1045504  }
   0xc   : > { %v3337_v1 = vld [vmem:[%s4892_s1 + $0x38] sm:$0xff]   ;;  %2791 = vmatprep.subr.bf16.mxu0 %v3336_v0  ;;  %3311 = vmatprep.subr.bf16.mxu1 %v3336_v0  ;;  %v3339_v3 = vld [vmem:[%s4892_s1 + $0x30] sm:$0xff]   ;;  %v3341_v5 = vld [vmem:[%s4892_s1 + $0x28] sm:$0xff]  }
   0xd   : > { %2792 = vmatpush3.bf16.msra.mxu0 %v3337_v1  ;;  %3319 = vmatpush3.bf16.msra.mxu1 %v3337_v1  ;;  %s4966_s19 = smov (!%p226_p3, %s2531_s19), 1  ;;  %v3342_v6 = vld [vmem:[%s4892_s1 + $0x60] sm:$0xff]   ;;  %v3344_v8 = vld [vmem:[%s4892_s1 + $0x58] sm:$0xff]   ;;  %v3346_v10 = vld [vmem:[%s4892_s1 + $0x50] sm:$0xff]  }
   0xe   : > { %2793 = vmatprep.subr.bf16.mxu0 %v3338_v2  ;;  %3312 = vmatprep.subr.bf16.mxu1 %v3338_v2  ;;  %s3327_s9 = smul.u32 216, %s4966_s19  ;;  %v3343_v7 = vld [vmem:[%s4892_s1 + $0x20] sm:$0xff]   ;;  %v3345_v9 = vld [vmem:[%s4892_s1 + $0x18] sm:$0xff]   ;;  %v3347_v21 = vld [vmem:[%s4892_s1 + $0x10] sm:$0xff]   ;;  %s238_s11 = scalar_lea.vmem %s4895_s4, %s4966_s19 }
   0xf   : > { %v3348_v25 = vld [vmem:[%s4892_s1 + $0x48] sm:$0xff]   ;;  %v3350_v35 = vld [vmem:[%s4892_s1 + $0x40] sm:$0xff]   ;;  %v3354_v48 = vld [vmem:[%s4892_s1 + $0xf8] sm:$0xff]   ;;  %s241_s14 = scalar_lea.vmem %s4896_s5, %s4966_s19 }
  0x10   : > { %s3523_s16 = scalar_lea.vmem %s4891_s0, %s3327_s9  ;;  %v3349_v33 = vld [vmem:[%s4892_s1 + $0x8] sm:$0xff]   ;;  %v3351_v44 = vld [vmem:[%s4892_s1] sm:$0xff]   ;;  %v3355_v52 = vld [vmem:[%s4892_s1 + $0x178] sm:$0xff]  }
  0x11   : > { %2794 = vmatpush3.bf16.msra.mxu0 %v3339_v3  ;;  %3320 = vmatpush3.bf16.msra.mxu1 %v3339_v3  ;;  %v3532_v11 = vld [vmem:[%s3523_s16] sm:$0xff]   ;;  %v3535_v12 = vld [vmem:[%s3523_s16 + $0x8] sm:$0x1]  ;;  %v3538_v13 = vld [vmem:[%s3523_s16 + $0x90] sm:$0xff]  }
  0x12   : > { %2795 = vmatprep.subr.bf16.mxu0 %v3340_v4  ;;  %3313 = vmatprep.subr.bf16.mxu1 %v3340_v4  ;;  %v297_v14 = vunpack.c.l.bf16 %v3532_v11  ;;  %v298_v15 = vunpack.c.h.bf16 %v3532_v11  ;;  %v299_v16 = vunpack.c.l.bf16 %v3535_v12  ;;  %v3544_v17 = vld [vmem:[%s3523_s16 + $0x98] sm:$0x1]  ;;  %v333_v18 = vunpack.c.l.bf16 %v3538_v13  ;;  %v3580_v37 = vld [vmem:[%s3523_s16 + $0xc] sm:$0xff]   ;;  %v3583_v38 = vld [vmem:[%s3523_s16 + $0x14] sm:$0x1] }
  0x13   : > { %v334_v19 = vunpack.c.h.bf16 %v3538_v13  ;;  %v335_v20 = vunpack.c.l.bf16 %v3544_v17  ;;  %v300_v39 = vunpack.c.l.bf16 %v3580_v37  ;;  %v301_v40 = vunpack.c.h.bf16 %v3580_v37  ;;  %v3589_v42 = vld [vmem:[%s3523_s16 + $0x9c] sm:$0xff]   ;;  %v3592_v43 = vld [vmem:[%s3523_s16 + $0xa4] sm:$0x1]  ;;  %v3358_v62 = vld [vmem:[%s4892_s1 + $0xf0] sm:$0xff]  }
  0x14   : > { %v416_v22 = vrot.slane %v297_v14, 1  ;;  %v417_v23 = vrot.slane %v298_v15, 1  ;;  %v419_v24 = vrot.slane %v299_v16, 1  ;;  %v476_v26 = vrot.slane %v333_v18, 1  ;;  %v3356_v56 = vld [vmem:[%s4892_s1 + $0xb8] sm:$0xff]   ;;  %v3365_v0 = vld [vmem:[%s4892_s1 + $0x170] sm:$0xff]  }
  0x15   : > { %2796 = vmatpush3.bf16.msra.mxu0 %v3341_v5  ;;  %3321 = vmatpush3.bf16.msra.mxu1 %v3341_v5  ;;  %v477_v27 = vrot.slane %v334_v19, 1  ;;  %v479_v30 = vrot.slane %v335_v20, 1  ;;  %v302_v41 = vunpack.c.l.bf16 %v3583_v38  ;;  %v336_v45 = vunpack.c.l.bf16 %v3589_v42  ;;  %v3357_v59 = vld [vmem:[%s4892_s1 + $0x138] sm:$0xff]   ;;  %v3641_v2 = vld [vmem:[%s3523_s16 + $0x20] sm:$0x1]  ;;  %v3390_v38 = vld [vmem:[%s4892_s1 + $0x1f0] sm:$0xff]  }
  0x16   : > { %2797 = vmatprep.subr.bf16.mxu0 %v3342_v6  ;;  %3314 = vmatprep.subr.bf16.mxu1 %v3342_v6  ;;  %v418_v28 = vsel %vm415_vm0, %v416_v22, %v417_v23  ;;  %v420_v29 = vsel %vm415_vm0, %v417_v23, %v419_v24  ;;  %v337_v46 = vunpack.c.h.bf16 %v3589_v42  ;;  %v4906_v47 = vunpack.c.l.bf16 %v3592_v43  ;;  %v3638_v1 = vld [vmem:[%s3523_s16 + $0x18] sm:$0xff]   ;;  %v3367_v23 = vld [vmem:[%s4892_s1 + $0x130] sm:$0xff]  }
  0x17   : > { %v528_v31 = vpack.c.bf16 %v420_v29, %v418_v28  ;;  %v478_v32 = vsel %vm415_vm0, %v476_v26, %v477_v27  ;;  %v480_v34 = vsel %vm415_vm0, %v477_v27, %v479_v30  ;;  %v421_v49 = vrot.slane %v300_v39, 1  ;;  %v3362_v27 = vld [vmem:[%s4892_s1 + $0xe8] sm:$0xff]   ;;  %v3413_v17 = vld [vmem:[%s4892_s1 + $0x190] sm:$0xff]  }
  0x18   : > { %v3577_v36 = vpack.c.bf16 %v480_v34, %v478_v32  ;;  %v422_v50 = vrot.slane %v301_v40, 1  ;;  %v424_v51 = vrot.slane %v302_v41, 1  ;;  %v481_v53 = vrot.slane %v336_v45, 1 }
  0x19   : > { %2798 = vmatpush3.bf16.msra.mxu0 %v3343_v7  ;;  %3322 = vmatpush3.bf16.msra.mxu1 %v3343_v7  ;;  %v482_v54 = vrot.slane %v337_v46, 1  ;;  %v484_v55 = vrot.slane %v4906_v47, 1  ;;  %v303_v4 = vunpack.c.l.bf16 %v3638_v1  ;;  %v304_v5 = vunpack.c.h.bf16 %v3638_v1  ;;  %v3649_v7 = vld [vmem:[%s3523_s16 + $0xa8] sm:$0xff]  }
  0x1a   : > { %2799 = vmatprep.subr.bf16.mxu0 %v3344_v8  ;;  %3315 = vmatprep.subr.bf16.mxu1 %v3344_v8  ;;  %v423_v57 = vsel %vm415_vm0, %v421_v49, %v422_v50  ;;  %v425_v58 = vsel %vm415_vm0, %v422_v50, %v424_v51  ;;  %v305_v6 = vunpack.c.l.bf16 %v3641_v2  ;;  %v3652_v8 = vld [vmem:[%s3523_s16 + $0xb0] sm:$0x1]  ;;  %v553_v47 = vrot.slane %v302_v41, 2  ;;  %v3877_v41 = vld [vmem:[%s3523_s16 + $0x5c] sm:$0x1]  ;;  %v3398_v2 = vld [vmem:[%s4892_s1 + $0x1a8] sm:$0xff]  }
  0x1b   : > { %1353 = vmatprep.mubr.bf16.mxu0 %v528_v31  ;;  %1449 = vmatprep.mubr.bf16.mxu1 %v3577_v36  ;;  %v483_v60 = vsel %vm415_vm0, %v481_v53, %v482_v54  ;;  %v485_v61 = vsel %vm415_vm0, %v482_v54, %v484_v55  ;;  %v3632_v63 = vpack.c.bf16 %v425_v58, %v423_v57  ;;  %v4900_v22 = vunpack.c.l.bf16 %v3652_v8  ;;  %v3701_v53 = vld [vmem:[%s3523_s16 + $0xb4] sm:$0xff]   ;;  %v3704_v54 = vld [vmem:[%s3523_s16 + $0xbc] sm:$0x1]  ;;  %v3364_v55 = vld [vmem:[%s4892_s1 + $0xe0] sm:$0xff]  }
  0x1c   : > { %v3643_v3 = vpack.c.bf16 %v485_v61, %v483_v60  ;;  %v426_v24 = vrot.slane %v303_v4, 1  ;;  %v429_v26 = vrot.slane %v305_v6, 1  ;;  %v4899_v57 = vunpack.c.l.bf16 %v3701_v53  ;;  %v3366_v60 = vld [vmem:[%s4892_s1 + $0xa0] sm:$0xff]  }
  0x1d   : > { %2800 = vmatpush3.bf16.msra.mxu0 %v3345_v9  ;;  %3323 = vmatpush3.bf16.msra.mxu1 %v3345_v9  ;;  %v3359_v9 = vld [vmem:[%s4892_s1 + $0xb0] sm:$0xff]   ;;  %v489_v30 = vrot.slane %v4900_v22, 1  ;;  %v4898_v58 = vunpack.c.h.bf16 %v3701_v53  ;;  %v3389_v22 = vld [vmem:[%s4892_s1 + $0x158] sm:$0xff]  }
  0x1e   : > { %2801 = vmatprep.subr.bf16.mxu0 %v3346_v10  ;;  %3316 = vmatprep.subr.bf16.mxu1 %v3346_v10  ;;  %v4905_v10 = vunpack.c.l.bf16 %v3649_v7 }
  0x20   : > { %v486_v28 = vrot.slane %v4905_v10, 1  ;;  %v551_v10 = vrot.slane %v301_v40, 2  ;;  %v3874_v40 = vld [vmem:[%s3523_s16 + $0x54] sm:$0xff]  }
  0x21   : > { %2802 = vmatpush3.bf16.msra.mxu0 %v3347_v21  ;;  %3324 = vmatpush3.bf16.msra.mxu1 %v3347_v21  ;;  %v4901_v21 = vunpack.c.h.bf16 %v3649_v7 }
  0x22   : > { %2803 = vmatprep.subr.bf16.mxu0 %v3348_v25  ;;  %3317 = vmatprep.subr.bf16.mxu1 %v3348_v25  ;;  %v427_v25 = vrot.slane %v304_v5, 1 }
  0x23   : > { %v487_v29 = vrot.slane %v4901_v21, 1  ;;  %v3814_v21 = vld [vmem:[%s3523_s16 + $0x50] sm:$0x1] }
  0x24   : > { %v428_v31 = vsel %vm415_vm0, %v426_v24, %v427_v25  ;;  %v430_v32 = vsel %vm415_vm0, %v427_v25, %v429_v26  ;;  %v491_v24 = vrot.slane %v4899_v57, 1  ;;  %v492_v25 = vrot.slane %v4898_v58, 1 }
  0x25   : > { %2804 = vmatpush3.bf16.msra.mxu0 %v3349_v33  ;;  %3325 = vmatpush3.bf16.msra.mxu1 %v3349_v33  ;;  %v3363_v33 = vld [vmem:[%s4892_s1 + $0xa8] sm:$0xff]   ;;  %v488_v34 = vsel %vm415_vm0, %v486_v28, %v487_v29  ;;  %v3695_v49 = vpack.c.bf16 %v430_v32, %v428_v31  ;;  %v3747_v32 = vld [vmem:[%s3523_s16 + $0x30] sm:$0xff]   ;;  %v546_v57 = vrot.slane %v298_v15, 2 }
  0x26   : > { %2805 = vmatprep.subr.bf16.mxu0 %v3350_v35  ;;  %3318 = vmatprep.subr.bf16.mxu1 %v3350_v35  ;;  %v490_v35 = vsel %vm415_vm0, %v487_v29, %v489_v30  ;;  %v3379_v29 = vld [vmem:[%s4892_s1 + $0x128] sm:$0xff]   ;;  %v493_v30 = vsel %vm415_vm0, %v491_v24, %v492_v25 }
  0x29   : > { %2806 = vmatpush3.bf16.msra.mxu0 %v3351_v44  ;;  %3326 = vmatpush3.bf16.msra.mxu1 %v3351_v44  ;;  %v3690_v44 = vld [vmem:[%s3523_s16 + $0x24] sm:$0xff]  }
  0x2a   : > { %2903 = vmatprep.subr.bf16.mxu1 %v3354_v48  ;;  %3015 = vmatprep.subr.bf16.mxu0 %v3355_v52  ;;  %v3693_v48 = vld [vmem:[%s3523_s16 + $0x2c] sm:$0x1]  ;;  %v306_v50 = vunpack.c.l.bf16 %v3690_v44  ;;  %v307_v51 = vunpack.c.h.bf16 %v3690_v44 }
  0x2b   : > { %v308_v52 = vunpack.c.l.bf16 %v3693_v48 }
  0x2c   : > { %1354 = vmatmul.mubr.bf16.vlgmr.msra.gmra.mxu0 %v3532_v11  ;;  %1450 = vmatmul.mubr.bf16.vlgmr.msra.gmra.mxu1 %v3538_v13  ;;  %v431_v61 = vrot.slane %v306_v50, 1 }
  0x2d   : > { %2904 = vmatpush3.bf16.msra.mxu1 %v3356_v56  ;;  %3016 = vmatpush3.bf16.msra.mxu0 %v3357_v59  ;;  %v3709_v56 = vpack.c.bf16 %v490_v35, %v488_v34  ;;  %v4897_v59 = vunpack.c.l.bf16 %v3704_v54  ;;  %v3371_v34 = vld [vmem:[%s4892_s1 + $0x98] sm:$0xff]  }
  0x2e   : > { %2905 = vmatprep.subr.bf16.mxu1 %v3358_v62  ;;  %1361 = vmatprep.mubr.bf16.mxu0 %v3632_v63  ;;  %v432_v62 = vrot.slane %v307_v51, 1 }
  0x2f   : > { %1457 = vmatprep.mubr.bf16.mxu1 %v3643_v3  ;;  %3017 = vmatprep.subr.bf16.mxu0 %v3365_v0  ;;  %v434_v0 = vrot.slane %v308_v52, 1  ;;  %v494_v26 = vrot.slane %v4897_v59, 1 }
  0x31   : > { %2906 = vmatpush3.bf16.msra.mxu1 %v3359_v9  ;;  %3018 = vmatpush3.bf16.msra.mxu0 %v3367_v23  ;;  %v3377_v9 = vld [vmem:[%s4892_s1 + $0x168] sm:$0xff]   ;;  %v3370_v23 = vld [vmem:[%s4892_s1 + $0xd8] sm:$0xff]   ;;  %v435_v28 = vsel %vm415_vm0, %v432_v62, %v434_v0  ;;  %v495_v31 = vsel %vm415_vm0, %v492_v25, %v494_v26  ;;  %v3372_v0 = vld [vmem:[%s4892_s1 + $0xd0] sm:$0xff]  }
  0x32   : > { %2907 = vmatprep.subr.bf16.mxu1 %v3362_v27  ;;  %v433_v27 = vsel %vm415_vm0, %v431_v61, %v432_v62  ;;  %3019 = vmatprep.subr.bf16.mxu0 %v3377_v9  ;;  %v310_v61 = vunpack.c.h.bf16 %v3747_v32  ;;  %v3373_v9 = vld [vmem:[%s4892_s1 + $0x90] sm:$0xff]   ;;  %v3385_v26 = vld [vmem:[%s4892_s1 + $0x160] sm:$0xff]  }
  0x33   : > { %v3755_v35 = vpack.c.bf16 %v435_v28, %v433_v27  ;;  %v545_v27 = vrot.slane %v297_v14, 2  ;;  %v3376_v14 = vld [vmem:[%s4892_s1 + $0xc8] sm:$0xff]  }
  0x34   : > { %1362 = vmatmul.mubr.bf16.gmra.mxu0 %v3580_v37  ;;  %1458 = vmatmul.mubr.bf16.gmra.mxu1 %v3589_v42  ;;  %v437_v25 = vrot.slane %v310_v61, 1 }
  0x35   : > { %2908 = vmatpush3.bf16.msra.mxu1 %v3363_v33  ;;  %1369 = vmatprep.mubr.bf16.mxu0 %v3695_v49  ;;  %v3750_v33 = vld [vmem:[%s3523_s16 + $0x38] sm:$0x1] }
  0x36   : > { %2909 = vmatprep.subr.bf16.mxu1 %v3364_v55  ;;  %1465 = vmatprep.mubr.bf16.mxu1 %v3709_v56  ;;  %v309_v55 = vunpack.c.l.bf16 %v3747_v32  ;;  %v311_v62 = vunpack.c.l.bf16 %v3750_v33 }
  0x37   : > { %3020 = vmatpush3.bf16.msra.mxu0 %v3379_v29  ;;  %v3386_v29 = vld [vmem:[%s4892_s1 + $0x120] sm:$0xff]  }
  0x38   : > { %v436_v24 = vrot.slane %v309_v55, 1  ;;  %3021 = vmatprep.subr.bf16.mxu0 %v3385_v26 }
  0x39   : > { %2910 = vmatpush3.bf16.msra.mxu1 %v3366_v60  ;;  %v3763_v60 = vpack.c.bf16 %v495_v31, %v493_v30  ;;  %v3787_v30 = vld [vmem:[%s3523_s16 + $0x3c] sm:$0xff]   ;;  %v3790_v31 = vld [vmem:[%s3523_s16 + $0x44] sm:$0x1] }
  0x3a   : > { %2911 = vmatprep.subr.bf16.mxu1 %v3370_v23  ;;  %v439_v23 = vrot.slane %v311_v62, 1  ;;  %v438_v28 = vsel %vm415_vm0, %v436_v24, %v437_v25  ;;  %v4904_v24 = vunpack.c.l.bf16 %v3787_v30  ;;  %v4903_v59 = vunpack.c.h.bf16 %v3787_v30 }
  0x3b   : > { %v4902_v58 = vunpack.c.l.bf16 %v3790_v31  ;;  %3022 = vmatpush3.bf16.msra.mxu0 %v3386_v29  ;;  %v3391_v29 = vld [vmem:[%s4892_s1 + $0x118] sm:$0xff]  }
  0x3c   : > { %1370 = vmatmul.mubr.bf16.gmra.mxu0 %v3638_v1  ;;  %1466 = vmatmul.mubr.bf16.gmra.mxu1 %v3649_v7  ;;  %v441_v15 = vrot.slane %v4904_v24, 1  ;;  %v442_v26 = vrot.slane %v4903_v59, 1  ;;  %v4907_v59 = vunpack.c.l.bf16 %v3814_v21 }
  0x3d   : > { %2912 = vmatpush3.bf16.msra.mxu1 %v3371_v34  ;;  %1377 = vmatprep.mubr.bf16.mxu0 %v3755_v35  ;;  %v440_v34 = vsel %vm415_vm0, %v437_v25, %v439_v23  ;;  %v548_v25 = vrot.slane %v299_v16, 2  ;;  %v3380_v23 = vld [vmem:[%s4892_s1 + $0xc0] sm:$0xff]   ;;  %v444_v12 = vrot.slane %v4902_v58, 1  ;;  %v3825_v16 = vld [vmem:[%s3523_s16 + $0x48] sm:$0xff]  }
  0x3e   : > { %2913 = vmatprep.subr.bf16.mxu1 %v3372_v0  ;;  %1473 = vmatprep.mubr.bf16.mxu1 %v3763_v60  ;;  %v3378_v0 = vld [vmem:[%s4892_s1 + $0x88] sm:$0xff]   ;;  %v3816_v11 = vpack.c.bf16 %v440_v34, %v438_v28  ;;  %v3394_v28 = vld [vmem:[%s4892_s1 + $0x150] sm:$0xff]   ;;  %v315_v34 = vunpack.c.l.bf16 %v3825_v16  ;;  %v4911_v58 = vunpack.c.h.bf16 %v3825_v16 }
  0x3f   : > { %3023 = vmatprep.subr.bf16.mxu0 %v3389_v22  ;;  %v3381_v22 = vld [vmem:[%s4892_s1 + $0x80] sm:$0xff]   ;;  %v445_v24 = vsel %vm415_vm0, %v442_v26, %v444_v12 }
  0x40   : > { %3024 = vmatpush3.bf16.msra.mxu0 %v3391_v29  ;;  %v447_v12 = vrot.slane %v4911_v58, 1  ;;  %v3964_v58 = vld [vmem:[%s3523_s16 + $0x6c] sm:$0xff]  }
  0x41   : > { %2914 = vmatpush3.bf16.msra.mxu1 %v3373_v9  ;;  %v547_v9 = vsel %vm544_vm1, %v545_v27, %v546_v57  ;;  %v3383_v27 = vld [vmem:[%s4892_s1 + $0x1f8] sm:$0xff]   ;;  %3025 = vmatprep.subr.bf16.mxu0 %v3394_v28  ;;  %v3392_v28 = vld [vmem:[%s4892_s1 + $0x1b0] sm:$0xff]  }
  0x42   : > { %2915 = vmatprep.subr.bf16.mxu1 %v3376_v14  ;;  %v549_v14 = vsel %vm544_vm1, %v546_v57, %v548_v25  ;;  %v550_v57 = vrot.slane %v300_v39, 2  ;;  %v3395_v25 = vld [vmem:[%s4892_s1 + $0x110] sm:$0xff]  }
  0x44   : > { %1378 = vmatmul.mubr.bf16.gmra.mxu0 %v3690_v44  ;;  %1474 = vmatmul.mubr.bf16.gmra.mxu1 %v3701_v53  ;;  %v552_v29 = vsel %vm544_vm1, %v550_v57, %v551_v10  ;;  %v4908_v57 = vunpack.c.l.bf16 %v3877_v41 }
  0x45   : > { %2916 = vmatpush3.bf16.msra.mxu1 %v3378_v0  ;;  %1385 = vmatprep.mubr.bf16.mxu0 %v3816_v11  ;;  %v443_v0 = vsel %vm415_vm0, %v441_v15, %v442_v26  ;;  %v3384_v15 = vld [vmem:[%s4892_s1 + $0x1b8] sm:$0xff]   ;;  %v446_v26 = vrot.slane %v315_v34, 1 }
  0x46   : > { %2917 = vmatprep.subr.bf16.mxu1 %v3380_v23  ;;  %1514 = vmatprep.mubr.bf16.mxu1 %v3580_v37  ;;  %v657_v23 = vpack.c.bf16 %v549_v14, %v547_v9  ;;  %v3862_v39 = vpack.c.bf16 %v445_v24, %v443_v0  ;;  %v449_v37 = vrot.slane %v4907_v59, 1  ;;  %v3400_v24 = vld [vmem:[%s4892_s1 + $0x148] sm:$0xff]   ;;  %v554_v9 = vsel %vm544_vm1, %v551_v10, %v553_v47  ;;  %v3895_v0 = vld [vmem:[%s3523_s16 + $0x60] sm:$0xff]  }
  0x47   : > { %3026 = vmatpush3.bf16.msra.mxu0 %v3395_v25  ;;  %v4910_v14 = vunpack.c.l.bf16 %v3874_v40  ;;  %v448_v47 = vsel %vm415_vm0, %v446_v26, %v447_v12  ;;  %v3397_v25 = vld [vmem:[%s4892_s1 + $0x1e8] sm:$0xff]   ;;  %v555_v59 = vrot.slane %v303_v4, 2  ;;  %v556_v26 = vrot.slane %v304_v5, 2 }
  0x48   : > { %v450_v10 = vsel %vm415_vm0, %v447_v12, %v449_v37  ;;  %3027 = vmatprep.subr.bf16.mxu0 %v3400_v24  ;;  %v558_v12 = vrot.slane %v305_v6, 2  ;;  %v3405_v37 = vld [vmem:[%s4892_s1 + $0x140] sm:$0xff]   ;;  %v454_v5 = vrot.slane %v4908_v57, 1  ;;  %v322_v6 = vunpack.c.h.bf16 %v3895_v0 }
  0x49   : > { %2918 = vmatpush3.bf16.msra.mxu1 %v3381_v22  ;;  %v3401_v22 = vld [vmem:[%s4892_s1 + $0x108] sm:$0xff]   ;;  %v451_v24 = vrot.slane %v4910_v14, 1  ;;  %v557_v57 = vsel %vm544_vm1, %v555_v59, %v556_v26  ;;  %v3404_v59 = vld [vmem:[%s4892_s1 + $0x1a0] sm:$0xff]  }
  0x4a   : > { %3127 = vmatprep.subr.bf16.mxu1 %v3383_v27  ;;  %v4909_v27 = vunpack.c.h.bf16 %v3874_v40 }
  0x4b   : > { %3028 = vmatpush3.bf16.msra.mxu0 %v3401_v22  ;;  %v3403_v22 = vld [vmem:[%s4892_s1 + $0x1e0] sm:$0xff]  }
  0x4c   : > { %1386 = vmatmul.mubr.bf16.gmra.mxu0 %v3747_v32  ;;  %1515 = vmatmul.mubr.bf16.vlgmr.msra.gmra.mxu1 %v657_v23  ;;  %v3904_v23 = vpack.c.bf16 %v554_v9, %v552_v29  ;;  %v452_v4 = vrot.slane %v4909_v27, 1  ;;  %v321_v29 = vunpack.c.l.bf16 %v3895_v0  ;;  %v559_v27 = vsel %vm544_vm1, %v556_v26, %v558_v12  ;;  %v3408_v26 = vld [vmem:[%s4892_s1 + $0x1d8] sm:$0xff]  }
  0x4d   : > { %3128 = vmatpush3.bf16.msra.mxu1 %v3384_v15  ;;  %1393 = vmatprep.mubr.bf16.mxu0 %v3862_v39  ;;  %v3907_v15 = vld [vmem:[%s3523_s16 + $0x68] sm:$0x1]  ;;  %v3973_v12 = vpack.c.bf16 %v559_v27, %v557_v57  ;;  %v566_v27 = vrot.slane %v310_v61, 2  ;;  %v3988_v57 = vld [vmem:[%s3523_s16 + $0x74] sm:$0x1]  ;;  %v568_v61 = vrot.slane %v311_v62, 2 }
  0x4e   : > { %1522 = vmatprep.mubr.bf16.mxu1 %v3638_v1  ;;  %3129 = vmatprep.subr.bf16.mxu1 %v3390_v38  ;;  %v3918_v38 = vpack.c.bf16 %v450_v10, %v448_v47  ;;  %v4912_v9 = vunpack.c.l.bf16 %v3907_v15  ;;  %v560_v47 = vrot.slane %v306_v50, 2  ;;  %v561_v10 = vrot.slane %v307_v51, 2 }
  0x4f   : > { %3029 = vmatprep.subr.bf16.mxu0 %v3405_v37  ;;  %v3949_v37 = vld [vmem:[%s4892_s1 + $0x238] sm:$0xff]   ;;  %v456_v50 = vrot.slane %v321_v29, 1  ;;  %v453_v51 = vsel %vm415_vm0, %v451_v24, %v452_v4  ;;  %v455_v48 = vsel %vm415_vm0, %v452_v4, %v454_v5  ;;  %v565_v5 = vrot.slane %v309_v55, 2 }
  0x50   : > { %v459_v14 = vrot.slane %v4912_v9, 1  ;;  %v562_v24 = vsel %vm544_vm1, %v560_v47, %v561_v10  ;;  %v324_v47 = vunpack.c.l.bf16 %v3964_v58  ;;  %v611_v62 = vrot.slane %v337_v46, 2 }
  0x51   : > { %3130 = vmatpush3.bf16.msra.mxu1 %v3392_v28  ;;  %v3406_v28 = vld [vmem:[%s4892_s1 + $0x100] sm:$0xff]  }
  0x52   : > { %3131 = vmatprep.subr.bf16.mxu1 %v3397_v25  ;;  %v563_v25 = vrot.slane %v308_v52, 2  ;;  %v457_v52 = vrot.slane %v322_v6, 1  ;;  %3030 = vmatpush3.bf16.msra.mxu0 %v3406_v28  ;;  %v605_v28 = vrot.slane %v333_v18, 2  ;;  %v3411_v18 = vld [vmem:[%s4892_s1 + $0x1d0] sm:$0xff]   ;;  %v461_v33 = vrot.slane %v324_v47, 1 }
  0x53   : > { %3263 = vmatprep.subr.bf16.mxu0 %v3949_v37 }
  0x54   : > { %1394 = vmatmul.mubr.bf16.gmra.mxu0 %v3787_v30  ;;  %1523 = vmatmul.mubr.bf16.gmra.mxu1 %v3904_v23  ;;  %v564_v4 = vsel %vm544_vm1, %v561_v10, %v563_v25  ;;  %v460_v9 = vsel %vm415_vm0, %v457_v52, %v459_v14  ;;  %v3410_v10 = vld [vmem:[%s4892_s1 + $0x198] sm:$0xff]   ;;  %v606_v14 = vrot.slane %v334_v19, 2  ;;  %v4920_v25 = vunpack.c.h.bf16 %v3964_v58 }
  0x55   : > { %1401 = vmatprep.mubr.bf16.mxu0 %v3918_v38  ;;  %1530 = vmatprep.mubr.bf16.mxu1 %v3690_v44  ;;  %v3994_v55 = vpack.c.bf16 %v564_v4, %v562_v24  ;;  %v4913_v19 = vunpack.c.l.bf16 %v3988_v57  ;;  %v4922_v24 = vunpack.c.l.bf16 %v3649_v7 }
  0x56   : > { %3132 = vmatpush3.bf16.msra.mxu1 %v3398_v2  ;;  %v3977_v2 = vpack.c.bf16 %v455_v48, %v453_v51  ;;  %v607_v48 = vsel %vm544_vm1, %v605_v28, %v606_v14  ;;  %v4923_v28 = vunpack.c.h.bf16 %v3649_v7 }
  0x57   : > { %3133 = vmatprep.subr.bf16.mxu1 %v3403_v22  ;;  %v458_v22 = vsel %vm415_vm0, %v456_v50, %v457_v52  ;;  %v608_v50 = vrot.slane %v335_v20, 2  ;;  %v610_v52 = vrot.slane %v336_v45, 2  ;;  %v3414_v45 = vld [vmem:[%s4892_s1 + $0x1c8] sm:$0xff]   ;;  %v615_v4 = vrot.slane %v4922_v24, 2 }
  0x58   : > { %v4010_v51 = vpack.c.bf16 %v460_v9, %v458_v22  ;;  %v4921_v9 = vunpack.c.l.bf16 %v3592_v43  ;;  %v616_v22 = vrot.slane %v4923_v28, 2  ;;  %v462_v43 = vrot.slane %v4920_v25, 1 }
  0x59   : > { %v609_v20 = vsel %vm544_vm1, %v606_v14, %v608_v50  ;;  %v4925_v50 = vunpack.c.l.bf16 %v3701_v53 }
  0x5a   : > { %3134 = vmatpush3.bf16.msra.mxu1 %v3404_v59  ;;  %v613_v59 = vrot.slane %v4921_v9, 2  ;;  %v4046_v9 = vld [vmem:[%s3523_s16 + $0x78] sm:$0xff]  }
  0x5b   : > { %3135 = vmatprep.subr.bf16.mxu1 %v3408_v26  ;;  %v4026_v26 = vpack.c.bf16 %v609_v20, %v607_v48  ;;  %v620_v48 = vrot.slane %v4925_v50, 2  ;;  %v464_v20 = vrot.slane %v4913_v19, 1  ;;  %v4060_v50 = vld [vmem:[%s3523_s16 + $0x80] sm:$0x1] }
  0x5c   : > { %1402 = vmatmul.mubr.bf16.gmra.mxu0 %v3825_v16  ;;  %1531 = vmatmul.mubr.bf16.gmra.mxu1 %v3973_v12  ;;  %v614_v14 = vsel %vm544_vm1, %v611_v62, %v613_v59  ;;  %v4926_v59 = vunpack.c.h.bf16 %v3701_v53 }
  0x5d   : > { %1409 = vmatprep.mubr.bf16.mxu0 %v3977_v2  ;;  %1538 = vmatprep.mubr.bf16.mxu1 %v3747_v32 }
  0x5e   : > { %3136 = vmatpush3.bf16.msra.mxu1 %v3410_v10  ;;  %v4924_v10 = vunpack.c.l.bf16 %v3652_v8  ;;  %v617_v8 = vsel %vm544_vm1, %v615_v4, %v616_v22  ;;  %v4927_v4 = vunpack.c.l.bf16 %v3704_v54 }
  0x5f   : > { %3137 = vmatprep.subr.bf16.mxu1 %v3411_v18  ;;  %v612_v18 = vsel %vm544_vm1, %v610_v52, %v611_v62  ;;  %v3416_v52 = vld [vmem:[%s4892_s1 + $0x188] sm:$0xff]  }
  0x60   : > { %v618_v46 = vrot.slane %v4924_v10, 2  ;;  %v4048_v24 = vpack.c.bf16 %v614_v14, %v612_v18  ;;  %v621_v10 = vrot.slane %v4926_v59, 2  ;;  %v3417_v18 = vld [vmem:[%s4892_s1 + $0x1c0] sm:$0xff]   ;;  %v4919_v14 = vunpack.c.l.bf16 %v4046_v9 }
  0x61   : > { %v465_v59 = vsel %vm415_vm0, %v462_v43, %v464_v20  ;;  %v4930_v20 = vunpack.c.l.bf16 %v3790_v31 }
  0x62   : > { %v619_v28 = vsel %vm544_vm1, %v616_v22, %v618_v46  ;;  %3138 = vmatpush3.bf16.msra.mxu1 %v3413_v17  ;;  %v623_v22 = vrot.slane %v4927_v4, 2  ;;  %v567_v17 = vsel %vm544_vm1, %v565_v5, %v566_v27  ;;  %v622_v46 = vsel %vm544_vm1, %v620_v48, %v621_v10  ;;  %v3419_v48 = vld [vmem:[%s4892_s1 + $0x180] sm:$0xff]  }
  0x63   : > { %v4055_v62 = vpack.c.bf16 %v619_v28, %v617_v8  ;;  %3139 = vmatprep.subr.bf16.mxu1 %v3414_v45  ;;  %v569_v45 = vsel %vm544_vm1, %v566_v27, %v568_v61  ;;  %v4915_v8 = vunpack.c.h.bf16 %v4046_v9  ;;  %v463_v28 = vsel %vm415_vm0, %v461_v33, %v462_v43 }
  0x64   : > { %1410 = vmatmul.mubr.bf16.gmra.mxu0 %v3874_v40  ;;  %1539 = vmatmul.mubr.bf16.gmra.mxu1 %v3994_v55  ;;  %v624_v54 = vsel %vm544_vm1, %v621_v10, %v623_v22  ;;  %v4914_v5 = vunpack.c.l.bf16 %v4060_v50  ;;  %v4085_v61 = vpack.c.bf16 %v569_v45, %v567_v17  ;;  %v4928_v10 = vunpack.c.l.bf16 %v3787_v30  ;;  %v4102_v17 = vld [vmem:[%s3523_s16 + $0x84] sm:$0xff]   ;;  %v4105_v45 = vld [vmem:[%s3523_s16 + $0x8c] sm:$0x1] }
  0x65   : > { %1417 = vmatprep.mubr.bf16.mxu0 %v4010_v51  ;;  %1546 = vmatprep.mubr.bf16.mxu1 %v3787_v30  ;;  %v4083_v27 = vpack.c.bf16 %v624_v54, %v622_v46  ;;  %v4929_v33 = vunpack.c.h.bf16 %v3787_v30  ;;  %v4091_v43 = vpack.c.bf16 %v465_v59, %v463_v28  ;;  %v466_v19 = vrot.slane %v4919_v14, 1 }
  0x66   : > { %3140 = vmatpush3.bf16.msra.mxu1 %v3416_v52  ;;  %v570_v4 = vrot.slane %v4928_v10, 2  ;;  %v573_v52 = vrot.slane %v4930_v20, 2  ;;  %v467_v46 = vrot.slane %v4915_v8, 1  ;;  %v4917_v10 = vunpack.c.h.bf16 %v4102_v17 }
  0x67   : > { %3141 = vmatprep.subr.bf16.mxu1 %v3417_v18  ;;  %v571_v22 = vrot.slane %v4929_v33, 2  ;;  %v469_v18 = vrot.slane %v4914_v5, 1  ;;  %v4916_v33 = vunpack.c.l.bf16 %v4105_v45  ;;  %v575_v8 = vrot.slane %v315_v34, 2 }
  0x68   : > { %v468_v28 = vsel %vm415_vm0, %v466_v19, %v467_v46  ;;  %v4932_v19 = vunpack.c.l.bf16 %v3814_v21  ;;  %v4935_v14 = vunpack.c.l.bf16 %v3877_v41  ;;  %v586_v41 = vrot.slane %v322_v6, 2 }
  0x69   : > { %v572_v31 = vsel %vm544_vm1, %v570_v4, %v571_v22  ;;  %v574_v54 = vsel %vm544_vm1, %v571_v22, %v573_v52  ;;  %v470_v59 = vsel %vm415_vm0, %v467_v46, %v469_v18  ;;  %v4931_v4 = vunpack.c.h.bf16 %v3825_v16 }
  0x6a   : > { %3142 = vmatpush3.bf16.msra.mxu1 %v3419_v48  ;;  %v4918_v48 = vunpack.c.l.bf16 %v4102_v17  ;;  %v4118_v20 = vpack.c.bf16 %v574_v54, %v572_v31  ;;  %v4120_v5 = vpack.c.bf16 %v470_v59, %v468_v28  ;;  %v578_v52 = vrot.slane %v4932_v19, 2 }
  0x6b   : > { %v576_v22 = vrot.slane %v4931_v4, 2  ;;  %v472_v18 = vrot.slane %v4917_v10, 1  ;;  %v474_v31 = vrot.slane %v4916_v33, 1  ;;  %v4933_v19 = vunpack.c.l.bf16 %v3874_v40 }
  0x6c   : > { %1418 = vmatmul.mubr.bf16.gmra.mxu0 %v3895_v0  ;;  %1547 = vmatmul.mubr.bf16.gmra.mxu1 %v4085_v61  ;;  %v471_v46 = vrot.slane %v4918_v48, 1  ;;  %v4934_v10 = vunpack.c.h.bf16 %v3874_v40  ;;  %v583_v25 = vrot.slane %v4935_v14, 2  ;;  %v4936_v14 = vunpack.c.l.bf16 %v3907_v15 }
  0x6d   : > { %1425 = vmatprep.mubr.bf16.mxu0 %v4091_v43  ;;  %1554 = vmatprep.mubr.bf16.mxu1 %v3825_v16  ;;  %v577_v21 = vsel %vm544_vm1, %v575_v8, %v576_v22  ;;  %v579_v34 = vsel %vm544_vm1, %v576_v22, %v578_v52  ;;  %v475_v28 = vsel %vm415_vm0, %v472_v18, %v474_v31  ;;  %v580_v33 = vrot.slane %v4933_v19, 2 }
  0x6e   : > { %v473_v54 = vsel %vm415_vm0, %v471_v46, %v472_v18  ;;  %v4142_v59 = vpack.c.bf16 %v579_v34, %v577_v21  ;;  %v581_v48 = vrot.slane %v4934_v10, 2  ;;  %v585_v10 = vrot.slane %v321_v29, 2  ;;  %v3412_v21 = vld [vmem:[%s4892_s1 + $0x230] sm:$0xff]  }
  0x6f   : > { %v4144_v4 = vpack.c.bf16 %v475_v28, %v473_v54  ;;  %v588_v46 = vrot.slane %v4936_v14, 2  ;;  %v590_v29 = vrot.slane %v324_v47, 2  ;;  %v4937_v15 = vunpack.c.h.bf16 %v3964_v58 }
  0x70   : > { %v582_v8 = vsel %vm544_vm1, %v580_v33, %v581_v48  ;;  %v584_v22 = vsel %vm544_vm1, %v581_v48, %v583_v25  ;;  %v587_v25 = vsel %vm544_vm1, %v585_v10, %v586_v41  ;;  %v4938_v18 = vunpack.c.l.bf16 %v3988_v57  ;;  %v3415_v57 = vld [vmem:[%s4892_s1 + $0x228] sm:$0xff]  }
  0x71   : > { %v4158_v52 = vpack.c.bf16 %v584_v22, %v582_v8  ;;  %v589_v48 = vsel %vm544_vm1, %v586_v41, %v588_v46  ;;  %v591_v6 = vrot.slane %v4937_v15, 2  ;;  %v4939_v54 = vunpack.c.l.bf16 %v4046_v9  ;;  %v3418_v22 = vld [vmem:[%s4892_s1 + $0x220] sm:$0xff]  }
  0x72   : > { %v4172_v33 = vpack.c.bf16 %v589_v48, %v587_v25  ;;  %v593_v31 = vrot.slane %v4938_v18, 2  ;;  %v4941_v19 = vunpack.c.l.bf16 %v4060_v50  ;;  %v3421_v50 = vld [vmem:[%s4892_s1 + $0x218] sm:$0xff]   ;;  %v4942_v46 = vunpack.c.l.bf16 %v4102_v17  ;;  %v3422_v18 = vld [vmem:[%s4892_s1 + $0x210] sm:$0xff]  }
  0x73   : > { %v4943_v48 = vunpack.c.h.bf16 %v4102_v17  ;;  %v4944_v15 = vunpack.c.l.bf16 %v4105_v45  ;;  %v3423_v45 = vld [vmem:[%s4892_s1 + $0x208] sm:$0xff]  }
  0x74   : > { %1426 = vmatmul.mubr.bf16.gmra.mxu0 %v3964_v58  ;;  %1555 = vmatmul.mubr.bf16.gmra.mxu1 %v4118_v20  ;;  %v594_v47 = vsel %vm544_vm1, %v591_v6, %v593_v31  ;;  %v598_v8 = vrot.slane %v4941_v19, 2  ;;  %v600_v25 = vrot.slane %v4942_v46, 2 }
  0x75   : > { %1433 = vmatprep.mubr.bf16.mxu0 %v4120_v5  ;;  %1562 = vmatprep.mubr.bf16.mxu1 %v3874_v40 }
  0x7c   : > { %1434 = vmatmul.mubr.bf16.gmra.mxu0 %v4046_v9  ;;  %1563 = vmatmul.mubr.bf16.gmra.mxu1 %v4142_v59 }
  0x7d   : > { %1441 = vmatprep.mubr.bf16.mxu0 %v4144_v4  ;;  %1570 = vmatprep.mubr.bf16.mxu1 %v3895_v0 }
  0x84   : > { %1442 = vmatmul.mubr.bf16.gmra.mxu0 %v4102_v17  ;;  %1571 = vmatmul.mubr.bf16.gmra.mxu1 %v4158_v52 }
  0x85   : > { %1578 = vmatprep.mubr.bf16.mxu1 %v3964_v58  ;;  %1675 = vmatprep.mubr.bf16.mxu0 %v3904_v23  ;;  %v592_v23 = vsel %vm544_vm1, %v590_v29, %v591_v6  ;;  %v601_v29 = vrot.slane %v4943_v48, 2  ;;  %v603_v6 = vrot.slane %v4944_v15, 2 }
  0x86   : > { %v4193_v34 = vpack.c.bf16 %v594_v47, %v592_v23  ;;  %v3424_v47 = vld [vmem:[%s4892_s1 + $0x200] sm:$0xff]  }
  0x87   : > { %v602_v31 = vsel %vm544_vm1, %v600_v25, %v601_v29 }
  0x8c   : > { %1579 = vmatmul.mubr.bf16.gmra.mxu1 %v4172_v33  ;;  %1676 = vmatmul.mubr.bf16.vlgmr.msra.gmra.mxu0 %v3632_v63  ;;  %v595_v63 = vrot.slane %v4939_v54, 2 }
  0x8d   : > { %3264 = vmatpush3.bf16.msra.mxu0 %v3949_v37  ;;  %1586 = vmatprep.mubr.bf16.mxu1 %v4046_v9  ;;  %v4940_v37 = vunpack.c.h.bf16 %v4046_v9 }
  0x8e   : > { %1683 = vmatprep.mubr.bf16.mxu0 %v3973_v12  ;;  %3265 = vmatprep.subr.bf16.mxu0 %v3412_v21 }
  0x8f   : > { %v596_v28 = vrot.slane %v4940_v37, 2 }
  0x91   : > { %3266 = vmatpush3.bf16.msra.mxu0 %v3412_v21  ;;  %v597_v10 = vsel %vm544_vm1, %v595_v63, %v596_v28  ;;  %v599_v41 = vsel %vm544_vm1, %v596_v28, %v598_v8  ;;  %v604_v21 = vsel %vm544_vm1, %v601_v29, %v603_v6 }
  0x92   : > { %3267 = vmatprep.subr.bf16.mxu0 %v3415_v57  ;;  %v4213_v14 = vpack.c.bf16 %v599_v41, %v597_v10  ;;  %v4233_v23 = vpack.c.bf16 %v604_v21, %v602_v31 }
  0x94   : > { %1587 = vmatmul.mubr.bf16.gmra.mxu1 %v4193_v34  ;;  %1684 = vmatmul.mubr.bf16.gmra.mxu0 %v3695_v49 }
  0x95   : > { %1594 = vmatprep.mubr.bf16.mxu1 %v4102_v17  ;;  %1691 = vmatprep.mubr.bf16.mxu0 %v3994_v55 }
  0x96   : > { %3268 = vmatpush3.bf16.msra.mxu0 %v3415_v57  ;;  %v4251_v57 = vld [vmem:[%s3523_s16 + $0xc0] sm:$0xff]  }
  0x97   : > { %3269 = vmatprep.subr.bf16.mxu0 %v3418_v22 }
  0x9a   : > { %3270 = vmatpush3.bf16.msra.mxu0 %v3418_v22 }
  0x9b   : > { %3271 = vmatprep.subr.bf16.mxu0 %v3421_v50 }
  0x9c   : > { %1595 = vmatmul.mubr.bf16.gmra.mxu1 %v4213_v14  ;;  %1692 = vmatmul.mubr.bf16.gmra.mxu0 %v3755_v35 }
  0x9d   : > { %1602 = vmatprep.mubr.bf16.mxu1 %v3538_v13  ;;  %1699 = vmatprep.mubr.bf16.mxu0 %v4085_v61 }
  0x9e   : > { %3272 = vmatpush3.bf16.msra.mxu0 %v3421_v50 }
  0x9f   : > { %3273 = vmatprep.subr.bf16.mxu0 %v3422_v18 }
  0xa2   : > { %3274 = vmatpush3.bf16.msra.mxu0 %v3422_v18 }
  0xa3   : > { %3275 = vmatprep.subr.bf16.mxu0 %v3423_v45 }
  0xa4   : > { %1603 = vmatmul.mubr.bf16.gmra.mxu1 %v4233_v23  ;;  %1700 = vmatmul.mubr.bf16.gmra.mxu0 %v3816_v11 }
  0xa5   : > { %1610 = vmatprep.mubr.bf16.mxu1 %v3589_v42  ;;  %1707 = vmatprep.mubr.bf16.mxu0 %v4118_v20 }
  0xa6   : > { %3276 = vmatpush3.bf16.msra.mxu0 %v3423_v45 }
  0xa7   : > { %3277 = vmatprep.subr.bf16.mxu0 %v3424_v47 }
  0xaa   : > { %3278 = vmatpush3.bf16.msra.mxu0 %v3424_v47 }
  0xac   : > { %1611 = vmatmul.mubr.bf16.gmra.mxu1 %v4026_v26  ;;  %1708 = vmatmul.mubr.bf16.gmra.mxu0 %v3862_v39 }
  0xad   : > { %1618 = vmatprep.mubr.bf16.mxu1 %v3649_v7  ;;  %1715 = vmatprep.mubr.bf16.mxu0 %v4142_v59 }
  0xb4   : > { %1619 = vmatmul.mubr.bf16.gmra.mxu1 %v4048_v24  ;;  %1716 = vmatmul.mubr.bf16.gmra.mxu0 %v3918_v38 }
  0xb5   : > { %1626 = vmatprep.mubr.bf16.mxu1 %v3701_v53  ;;  %1723 = vmatprep.mubr.bf16.mxu0 %v4158_v52 }
  0xbc   : > { %1627 = vmatmul.mubr.bf16.gmra.mxu1 %v4055_v62  ;;  %1724 = vmatmul.mubr.bf16.gmra.mxu0 %v3977_v2 }
  0xbd   : > { %1634 = vmatprep.mubr.bf16.mxu1 %v4251_v57  ;;  %1731 = vmatprep.mubr.bf16.mxu0 %v4172_v33 }
  0xc4   : > { %1635 = vmatmul.mubr.bf16.gmra.mxu1 %v4083_v27  ;;  %1732 = vmatmul.mubr.bf16.gmra.mxu0 %v4010_v51 }
  0xc5   : > { %1739 = vmatprep.mubr.bf16.mxu0 %v4193_v34  ;;  %1836 = vmatprep.mubr.bf16.mxu1 %v3695_v49 }
  0xcc   : > { %1740 = vmatmul.mubr.bf16.gmra.mxu0 %v4091_v43  ;;  %1837 = vmatmul.mubr.bf16.vlgmr.msra.gmra.mxu1 %v3638_v1  ;;  %v293_v1 = vld [vmem:[%s3523_s16 + $0xc8] sm:$0x1] }
  0xcd   : > { %1747 = vmatprep.mubr.bf16.mxu0 %v4213_v14  ;;  %1844 = vmatprep.mubr.bf16.mxu1 %v3755_v35  ;;  %v346_v35 = vunpack.c.h.bf16 %v4251_v57 }
  0xcf   : > { %v686_v19 = vrot.slane %v346_v35, 2  ;;  %v678_v45 = vrot.slane %v346_v35, 1 }
  0xd4   : > { %1748 = vmatmul.mubr.bf16.gmra.mxu0 %v4120_v5  ;;  %1845 = vmatmul.mubr.bf16.gmra.mxu1 %v3690_v44 }
  0xd5   : > { %1755 = vmatprep.mubr.bf16.mxu0 %v4233_v23  ;;  %1852 = vmatprep.mubr.bf16.mxu1 %v3816_v11 }
  0xdc   : > { %1756 = vmatmul.mubr.bf16.gmra.mxu0 %v4144_v4  ;;  %1853 = vmatmul.mubr.bf16.gmra.mxu1 %v3747_v32  ;;  %v345_v32 = vunpack.c.l.bf16 %v4251_v57 }
  0xdd   : > { %1763 = vmatprep.mubr.bf16.mxu0 %v4026_v26  ;;  %1860 = vmatprep.mubr.bf16.mxu1 %v3862_v39  ;;  %v347_v39 = vunpack.c.l.bf16 %v293_v1 }
  0xde   : > { %v685_v28 = vrot.slane %v345_v32, 2  ;;  %v677_v21 = vrot.slane %v345_v32, 1 }
  0xdf   : > { %v688_v22 = vrot.slane %v347_v39, 2 }
  0xe0   : > { %v687_v48 = vsel %vm544_vm1, %v685_v28, %v686_v19  ;;  %v679_v32 = vsel %vm415_vm0, %v677_v21, %v678_v45 }
  0xe1   : > { %v689_v29 = vsel %vm544_vm1, %v686_v19, %v688_v22 }
  0xe2   : > { %v4302_v47 = vpack.c.bf16 %v689_v29, %v687_v48 }
  0xe4   : > { %1764 = vmatmul.mubr.bf16.gmra.mxu0 %v3577_v36  ;;  %1861 = vmatmul.mubr.bf16.gmra.mxu1 %v3787_v30 }
  0xe5   : > { %1771 = vmatprep.mubr.bf16.mxu0 %v4048_v24  ;;  %1868 = vmatprep.mubr.bf16.mxu1 %v3918_v38 }
  0xec   : > { %v2807_v44 = vpop.f32.mrf.mxu0  ;;  %v2879_v49 = vpop.f32.mrf.mxu1  ;;  %1772 = vmatmul.mubr.bf16.gmra.mxu0 %v3643_v3  ;;  %1869 = vmatmul.mubr.bf16.gmra.mxu1 %v3825_v16 }
  0xed   : > { %1779 = vmatprep.mubr.bf16.mxu0 %v4055_v62  ;;  %1876 = vmatprep.mubr.bf16.mxu1 %v3977_v2 }
  0xee   : > { %v2808_v30 = vpop.f32.mrf.mxu0  ;;  %v2880_v11 = vpop.f32.mrf.mxu1 }
  0xef   : > { %v4284_v54 = vadd.f32 %v2808_v30, %v2807_v44  ;;  %v4286_v38 = vadd.f32 %v2880_v11, %v2879_v49 }
  0xf0   : > { %v2810_v63 = vpop.f32.mrf.mxu0  ;;  %v2882_v37 = vpop.f32.mrf.mxu1 }
  0xf2   : > { %v2811_v16 = vpop.f32.mrf.mxu0  ;;  %v2883_v8 = vpop.f32.mrf.mxu1 }
  0xf3   : > { %v4288_v10 = vadd.f32 %v2811_v16, %v2810_v63  ;;  %v4290_v2 = vadd.f32 %v2883_v8, %v2882_v37 }
  0xf4   : > { %v2813_v41 = vpop.f32.mrf.mxu0  ;;  %v2885_v50 = vpop.f32.mrf.mxu1  ;;  %1780 = vmatmul.mubr.bf16.gmra.mxu0 %v3709_v56  ;;  %1877 = vmatmul.mubr.bf16.gmra.mxu1 %v3874_v40  ;;  %v680_v40 = vrot.slane %v347_v39, 1 }
  0xf5   : > { %1787 = vmatprep.mubr.bf16.mxu0 %v4083_v27  ;;  %1884 = vmatprep.mubr.bf16.mxu1 %v4010_v51 }
  0xf6   : > { %v2814_v46 = vpop.f32.mrf.mxu0  ;;  %v2886_v25 = vpop.f32.mrf.mxu1  ;;  %v681_v35 = vsel %vm415_vm0, %v678_v45, %v680_v40 }
  0xf7   : > { %v4298_v15 = vadd.f32 %v2814_v46, %v2813_v41  ;;  %v4300_v6 = vadd.f32 %v2886_v25, %v2885_v50  ;;  %v4318_v8 = vpack.c.bf16 %v681_v35, %v679_v32 }
  0xf8   : > { %v2816_v18 = vpop.f32.mrf.mxu0  ;;  %v2888_v31 = vpop.f32.mrf.mxu1 }
  0xfa   : > { %v2817_v1 = vpop.f32.mrf.mxu0  ;;  %v2889_v44 = vpop.f32.mrf.mxu1 }
  0xfb   : > { %v4304_v51 = vadd.f32 %v2817_v1, %v2816_v18  ;;  %v4306_v49 = vadd.f32 %v2889_v44, %v2888_v31 }
  0xfc   : > { %v2819_v30 = vpop.f32.mrf.mxu0  ;;  %v2891_v11 = vpop.f32.mrf.mxu1  ;;  %1788 = vmatmul.mubr.bf16.gmra.mxu0 %v3763_v60  ;;  %1885 = vmatmul.mubr.bf16.gmra.mxu1 %v3895_v0 }
  0xfd   : > { %1795 = vmatprep.mubr.bf16.mxu0 %v4302_v47  ;;  %1892 = vmatprep.mubr.bf16.mxu1 %v4091_v43 }
  0xfe   : > { %v2820_v39 = vpop.f32.mrf.mxu0  ;;  %v2892_v63 = vpop.f32.mrf.mxu1 }
  0xff   : > { %v4314_v37 = vadd.f32 %v2820_v39, %v2819_v30  ;;  %v4316_v28 = vadd.f32 %v2892_v63, %v2891_v11  ;;  %v858_v63 = vld [vmem:[%s4893_s2 + $0x8] sm:$0xff] }
 0x100   : > { %v2822_v19 = vpop.f32.mrf.mxu0  ;;  %v2894_v16 = vpop.f32.mrf.mxu1 }
 0x102   : > { %v2823_v22 = vpop.f32.mrf.mxu0  ;;  %v2895_v0 = vpop.f32.mrf.mxu1 }
 0x103   : > { %v4320_v41 = vadd.f32 %v2823_v22, %v2822_v19  ;;  %v4322_v50 = vadd.f32 %v2895_v0, %v2894_v16 }
 0x104   : > { %v2825_v43 = vpop.f32.mrf.mxu0  ;;  %v2897_v46 = vpop.f32.mrf.mxu1  ;;  %1796 = vmatmul.mubr.bf16.gmra.mxu0 %v4318_v8  ;;  %1893 = vmatmul.mubr.bf16.gmra.mxu1 %v3964_v58  ;;  %v857_v58 = vld [vmem:[%s4893_s2] sm:$0xff] }
 0x105   : > { %1900 = vmatprep.mubr.bf16.mxu1 %v4120_v5  ;;  %3279 = vmatprep.mubr.bf16.mxu0 %v3973_v12  ;;  %v1356_v32 = vadd.f32 %v4284_v54, %v857_v58  ;;  %v859_v54 = vld [vmem:[%s4893_s2 + $0x10] sm:$0xff] }
 0x106   : > { %v2826_v25 = vpop.f32.mrf.mxu0  ;;  %v2898_v48 = vpop.f32.mrf.mxu1 }
 0x107   : > { %v4328_v29 = vadd.f32 %v2826_v25, %v2825_v43  ;;  %v4330_v18 = vadd.f32 %v2898_v48, %v2897_v46 }
 0x108   : > { %v2828_v31 = vpop.f32.mrf.mxu0  ;;  %v2900_v21 = vpop.f32.mrf.mxu1 }
 0x10a   : > { %v2829_v45 = vpop.f32.mrf.mxu0  ;;  %v2901_v40 = vpop.f32.mrf.mxu1 }
 0x10b   : > { %v4332_v1 = vadd.f32 %v2829_v45, %v2828_v31  ;;  %v4334_v44 = vadd.f32 %v2901_v40, %v2900_v21  ;;  %v1364_v31 = vadd.f32 %v4298_v15, %v859_v54  ;;  %v860_v40 = vld [vmem:[%s4893_s2 + $0x18] sm:$0xff]  ;;  %v861_v15 = vld [vmem:[%s4893_s2 + $0x20] sm:$0xff] }
 0x10c   : > { %v2831_v5 = vpop.f32.mrf.mxu0  ;;  %v2919_v12 = vpop.f32.mrf.mxu1  ;;  %1901 = vmatmul.mubr.bf16.gmra.mxu1 %v4046_v9  ;;  %3280 = vmatmul.mubr.bf16.vlgmr.msra.gmra.mxu0 %v3994_v55 }
 0x10d   : > { %1908 = vmatprep.mubr.bf16.mxu1 %v4144_v4  ;;  %3283 = vmatprep.mubr.bf16.mxu0 %v4085_v61  ;;  %v1359_v4 = vadd.f32 %v4288_v10, %v858_v63 }
 0x10e   : > { %v2832_v30 = vpop.f32.mrf.mxu0  ;;  %v2920_v11 = vpop.f32.mrf.mxu1 }
 0x10f   : > { %v4344_v35 = vadd.f32 %v2832_v30, %v2831_v5  ;;  %v2921_v39 = vadd.f32 %v2920_v11, %v2919_v12 }
 0x110   : > { %v2834_v19 = vpop.f32.mrf.mxu0  ;;  %v2922_v16 = vpop.f32.mrf.mxu1 }
 0x111   : > { %v4349_v9 = vadd.f32 %v2921_v39, %v1356_v32 }
 0x112   : > { %v2835_v55 = vpop.f32.mrf.mxu0  ;;  %v2923_v22 = vpop.f32.mrf.mxu1 }
 0x113   : > { %v4352_v61 = vadd.f32 %v2835_v55, %v2834_v19  ;;  %v2924_v0 = vadd.f32 %v2923_v22, %v2922_v16  ;;  %v1372_v19 = vadd.f32 %v4314_v37, %v861_v15  ;;  %v862_v22 = vld [vmem:[%s4893_s2 + $0x28] sm:$0xff]  ;;  %v863_v37 = vld [vmem:[%s4893_s2 + $0x30] sm:$0xff] }
 0x114   : > { %v2837_v43 = vpop.f32.mrf.mxu0  ;;  %v2925_v46 = vpop.f32.mrf.mxu1  ;;  %1909 = vmatmul.mubr.bf16.gmra.mxu1 %v4102_v17  ;;  %3284 = vmatmul.mubr.bf16.gmra.mxu0 %v4118_v20  ;;  %v4415_v15 = vld [vmem:[%s3523_s16 + $0xcc] sm:$0xff]  }
 0x115   : > { %v4359_v25 = vadd.f32 %v2924_v0, %v1359_v4  ;;  %1916 = vmatprep.mubr.bf16.mxu1 %v3577_v36  ;;  %3287 = vmatprep.mubr.bf16.mxu0 %v4142_v59  ;;  %v1367_v36 = vadd.f32 %v4304_v51, %v860_v40 }
 0x116   : > { %v2838_v10 = vpop.f32.mrf.mxu0  ;;  %v2926_v48 = vpop.f32.mrf.mxu1 }
 0x117   : > { %v4364_v21 = vadd.f32 %v2838_v10, %v2837_v43  ;;  %v2927_v45 = vadd.f32 %v2926_v48, %v2925_v46 }
 0x118   : > { %v2840_v17 = vpop.f32.mrf.mxu0  ;;  %v2928_v58 = vpop.f32.mrf.mxu1 }
 0x119   : > { %v4369_v20 = vadd.f32 %v2927_v45, %v1364_v31  ;;  %v1380_v45 = vadd.f32 %v4328_v29, %v863_v37  ;;  %v296_v29 = vld [vmem:[%s3523_s16 + $0xd4] sm:$0x1]  ;;  %s2663_s16 = sshll.u32 %s4966_s19, 7 }
 0x11a   : > { %v2841_v5 = vpop.f32.mrf.mxu0  ;;  %v2929_v12 = vpop.f32.mrf.mxu1  ;;  %s4785_s8 = scalar_lea.vmem %s4894_s3, %s2663_s16 }
 0x11b   : > { %v4372_v59 = vadd.f32 %v2841_v5, %v2840_v17  ;;  %v2930_v30 = vadd.f32 %v2929_v12, %v2928_v58 }
 0x11c   : > { %v2843_v11 = vpop.f32.mrf.mxu0  ;;  %v2931_v32 = vpop.f32.mrf.mxu1  ;;  %1917 = vmatmul.mubr.bf16.gmra.mxu1 %v3538_v13  ;;  %3288 = vmatmul.mubr.bf16.gmra.mxu0 %v4158_v52 }
 0x11d   : > { %v4379_v39 = vadd.f32 %v2930_v30, %v1367_v36  ;;  %1924 = vmatprep.mubr.bf16.mxu1 %v3643_v3  ;;  %3291 = vmatprep.mubr.bf16.mxu0 %v4172_v33  ;;  %v1375_v3 = vadd.f32 %v4320_v41, %v862_v22  ;;  %v349_v22 = vunpack.c.h.bf16 %v4415_v15 }
 0x11e   : > { %v2844_v51 = vpop.f32.mrf.mxu0  ;;  %v2932_v63 = vpop.f32.mrf.mxu1 }
 0x11f   : > { %v4384_v16 = vadd.f32 %v2844_v51, %v2843_v11  ;;  %v2933_v55 = vadd.f32 %v2932_v63, %v2931_v32  ;;  %v865_v11 = vld [vmem:[%s4893_s2 + $0x40] sm:$0xff] }
 0x120   : > { %v2846_v13 = vpop.f32.mrf.mxu0  ;;  %v2934_v4 = vpop.f32.mrf.mxu1 }
 0x121   : > { %v4389_v52 = vadd.f32 %v2933_v55, %v1372_v19  ;;  %v348_v55 = vunpack.c.l.bf16 %v4415_v15 }
 0x122   : > { %v2847_v0 = vpop.f32.mrf.mxu0  ;;  %v2935_v54 = vpop.f32.mrf.mxu1 }
 0x123   : > { %v4392_v33 = vadd.f32 %v2847_v0, %v2846_v13  ;;  %v2936_v43 = vadd.f32 %v2935_v54, %v2934_v4  ;;  %v350_v13 = vunpack.c.l.bf16 %v296_v29  ;;  %v1388_v4 = vadd.f32 %v4344_v35, %v865_v11 }
 0x124   : > { %v2849_v46 = vpop.f32.mrf.mxu0  ;;  %v2937_v10 = vpop.f32.mrf.mxu1  ;;  %1925 = vmatmul.mubr.bf16.gmra.mxu1 %v3589_v42  ;;  %3292 = vmatmul.mubr.bf16.gmra.mxu0 %v4193_v34  ;;  %v864_v42 = vld [vmem:[%s4893_s2 + $0x38] sm:$0xff]  ;;  %v697_v37 = vrot.slane %v348_v55, 1 }
 0x125   : > { %v4399_v48 = vadd.f32 %v2936_v43, %v1375_v3  ;;  %1932 = vmatprep.mubr.bf16.mxu1 %v3709_v56  ;;  %3295 = vmatprep.mubr.bf16.mxu0 %v4213_v14  ;;  %v1383_v14 = vadd.f32 %v4332_v1, %v864_v42 }
 0x126   : > { %v2850_v41 = vpop.f32.mrf.mxu0  ;;  %v2938_v31 = vpop.f32.mrf.mxu1 }
 0x127   : > { %v4404_v40 = vadd.f32 %v2850_v41, %v2849_v46  ;;  %v2939_v17 = vadd.f32 %v2938_v31, %v2937_v10  ;;  %v698_v46 = vrot.slane %v349_v22, 1  ;;  %v700_v10 = vrot.slane %v350_v13, 1 }
 0x128   : > { %v2852_v34 = vpop.f32.mrf.mxu0  ;;  %v2940_v58 = vpop.f32.mrf.mxu1 }
 0x129   : > { %v4409_v5 = vadd.f32 %v2939_v17, %v1380_v45  ;;  %v867_v45 = vld [vmem:[%s4893_s2 + $0x50] sm:$0xff] }
 0x12a   : > { %v2853_v56 = vpop.f32.mrf.mxu0  ;;  %v2941_v12 = vpop.f32.mrf.mxu1 }
 0x12b   : > { %v4412_v36 = vadd.f32 %v2853_v56, %v2852_v34  ;;  %v2942_v30 = vadd.f32 %v2941_v12, %v2940_v58  ;;  %v699_v56 = vsel %vm415_vm0, %v697_v37, %v698_v46  ;;  %v701_v12 = vsel %vm415_vm0, %v698_v46, %v700_v10 }
 0x12c   : > { %v2855_v32 = vpop.f32.mrf.mxu0  ;;  %v2943_v51 = vpop.f32.mrf.mxu1  ;;  %1933 = vmatmul.mubr.bf16.gmra.mxu1 %v3649_v7  ;;  %3296 = vmatmul.mubr.bf16.gmra.mxu0 %v4233_v23  ;;  %v866_v23 = vld [vmem:[%s4893_s2 + $0x48] sm:$0xff] }
 0x12d   : > { %v4423_v63 = vadd.f32 %v2942_v30, %v1383_v14  ;;  %1940 = vmatprep.mubr.bf16.mxu1 %v3763_v60  ;;  %3299 = vmatprep.mubr.bf16.mxu0 %v4026_v26  ;;  %v1391_v41 = vadd.f32 %v4352_v61, %v866_v23  ;;  %v1396_v14 = vadd.f32 %v4364_v21, %v867_v45 }
 0x12e   : > { %v2856_v1 = vpop.f32.mrf.mxu0  ;;  %v2944_v19 = vpop.f32.mrf.mxu1 }
 0x12f   : > { %v4430_v0 = vadd.f32 %v2856_v1, %v2855_v32  ;;  %v2945_v7 = vadd.f32 %v2944_v19, %v2943_v51  ;;  %v706_v51 = vrot.slane %v349_v22, 2  ;;  %v708_v1 = vrot.slane %v350_v13, 2 }
 0x130   : > { %v2858_v54 = vpop.f32.mrf.mxu0  ;;  %v2946_v60 = vpop.f32.mrf.mxu1 }
 0x131   : > { %v4435_v3 = vadd.f32 %v2945_v7, %v1388_v4  ;;  %v709_v22 = vsel %vm544_vm1, %v706_v51, %v708_v1 }
 0x132   : > { %v2859_v26 = vpop.f32.mrf.mxu0  ;;  %v2947_v43 = vpop.f32.mrf.mxu1 }
 0x133   : > { %v4438_v31 = vadd.f32 %v2859_v26, %v2858_v54  ;;  %v2948_v35 = vadd.f32 %v2947_v43, %v2946_v60  ;;  %v869_v54 = vld [vmem:[%s4893_s2 + $0x60] sm:$0xff] }
 0x134   : > { %v2861_v17 = vpop.f32.mrf.mxu0  ;;  %v2949_v42 = vpop.f32.mrf.mxu1  ;;  %1941 = vmatmul.mubr.bf16.gmra.mxu1 %v3701_v53  ;;  %3300 = vmatmul.mubr.bf16.gmra.mxu0 %v4048_v24  ;;  %v868_v53 = vld [vmem:[%s4893_s2 + $0x58] sm:$0xff]  ;;  %v1404_v37 = vadd.f32 %v4384_v16, %v869_v54  ;;  %v871_v16 = vld [vmem:[%s4893_s2 + $0x70] sm:$0xff] }
 0x135   : > { %v4445_v34 = vadd.f32 %v2948_v35, %v1391_v41  ;;  %1948 = vmatprep.mubr.bf16.mxu1 %v4318_v8  ;;  %3303 = vmatprep.mubr.bf16.mxu0 %v4055_v62  ;;  %v705_v8 = vrot.slane %v348_v55, 2  ;;  %v704_v62 = vpack.c.bf16 %v701_v12, %v699_v56  ;;  %v1399_v7 = vadd.f32 %v4372_v59, %v868_v53 }
 0x136   : > { %v2862_v61 = vpop.f32.mrf.mxu0  ;;  %v2950_v58 = vpop.f32.mrf.mxu1 }
 0x137   : > { %v4452_v30 = vadd.f32 %v2862_v61, %v2861_v17  ;;  %v2951_v29 = vadd.f32 %v2950_v58, %v2949_v42  ;;  %v707_v59 = vsel %vm544_vm1, %v705_v8, %v706_v51  ;;  %v872_v8 = vld [vmem:[%s4893_s2 + $0x78] sm:$0xff] }
 0x138   : > { %v2864_v24 = vpop.f32.mrf.mxu0  ;;  %v2952_v11 = vpop.f32.mrf.mxu1  ;;  %v712_v35 = vpack.c.bf16 %v709_v22, %v707_v59 }
 0x139   : > { %v4457_v32 = vadd.f32 %v2951_v29, %v1396_v14 }
 0x13a   : > { %v2865_v19 = vpop.f32.mrf.mxu0  ;;  %v2953_v4 = vpop.f32.mrf.mxu1 }
 0x13b   : > { %v4460_v21 = vadd.f32 %v2865_v19, %v2864_v24  ;;  %v2954_v23 = vadd.f32 %v2953_v4, %v2952_v11  ;;  %v1412_v24 = vadd.f32 %v4404_v40, %v871_v16  ;;  %v1415_v4 = vadd.f32 %v4412_v36, %v872_v8  ;;  %v873_v40 = vld [vmem:[%s4893_s2 + $0x80] sm:$0xff]  ;;  %v874_v36 = vld [vmem:[%s4893_s2 + $0x88] sm:$0xff] }
 0x13c   : > { %v2867_v60 = vpop.f32.mrf.mxu0  ;;  %v2955_v26 = vpop.f32.mrf.mxu1  ;;  %1949 = vmatmul.mubr.bf16.gmra.mxu1 %v4251_v57  ;;  %3304 = vmatmul.mubr.bf16.gmra.mxu0 %v4083_v27  ;;  %v870_v27 = vld [vmem:[%s4893_s2 + $0x68] sm:$0xff] }
 0x13d   : > { %v4467_v55 = vadd.f32 %v2954_v23, %v1399_v7  ;;  %1956 = vmatprep.mubr.bf16.mxu1 %v704_v62  ;;  %3307 = vmatprep.mubr.bf16.mxu0 %v4302_v47  ;;  %v1407_v42 = vadd.f32 %v4392_v33, %v870_v27 }
 0x13e   : > { %v2868_v13 = vpop.f32.mrf.mxu0  ;;  %v2956_v43 = vpop.f32.mrf.mxu1 }
 0x13f   : > { %v4473_v46 = vadd.f32 %v2868_v13, %v2867_v60  ;;  %v2957_v10 = vadd.f32 %v2956_v43, %v2955_v26  ;;  %v1420_v13 = vadd.f32 %v4430_v0, %v873_v40  ;;  %v875_v0 = vld [vmem:[%s4893_s2 + $0x90] sm:$0xff] }
 0x140   : > { %v2870_v57 = vpop.f32.mrf.mxu0  ;;  %v2958_v41 = vpop.f32.mrf.mxu1 }
 0x141   : > { %v4478_v45 = vadd.f32 %v2957_v10, %v1404_v37 }
 0x142   : > { %v2871_v47 = vpop.f32.mrf.mxu0  ;;  %v2959_v17 = vpop.f32.mrf.mxu1 }
 0x143   : > { %v4481_v61 = vadd.f32 %v2871_v47, %v2870_v57  ;;  %v2960_v58 = vadd.f32 %v2959_v17, %v2958_v41  ;;  %v1423_v17 = vadd.f32 %v4438_v31, %v874_v36  ;;  %v876_v31 = vld [vmem:[%s4893_s2 + $0x98] sm:$0xff] }
 0x144   : > { %v2873_v56 = vpop.f32.mrf.mxu0  ;;  %v2961_v12 = vpop.f32.mrf.mxu1  ;;  %1957 = vmatmul.mubr.bf16.gmra.mxu1 %v4415_v15  ;;  %3308 = vmatmul.mubr.bf16.gmra.mxu0 %v712_v35 }
 0x145   : > { %v4487_v14 = vadd.f32 %v2960_v58, %v1407_v42 }
 0x146   : > { %v2874_v29 = vpop.f32.mrf.mxu0  ;;  %v2962_v53 = vpop.f32.mrf.mxu1 }
 0x147   : > { %v4490_v11 = vadd.f32 %v2874_v29, %v2873_v56  ;;  %v2963_v33 = vadd.f32 %v2962_v53, %v2961_v12 }
 0x148   : > { %v2876_v62 = vpop.f32.mrf.mxu0  ;;  %v2964_v51 = vpop.f32.mrf.mxu1 }
 0x149   : > { %v4495_v1 = vadd.f32 %v2963_v33, %v1412_v24  ;;  %v1428_v24 = vadd.f32 %v4452_v30, %v875_v0  ;;  %v877_v30 = vld [vmem:[%s4893_s2 + $0xa0] sm:$0xff] }
 0x14a   : > { %v2877_v19 = vpop.f32.mrf.mxu0  ;;  %v2965_v15 = vpop.f32.mrf.mxu1 }
 0x14b   : > { %v4498_v7 = vadd.f32 %v2877_v19, %v2876_v62  ;;  %v2966_v23 = vadd.f32 %v2965_v15, %v2964_v51 }
 0x14c   : > { %v2967_v54 = vpop.f32.mrf.mxu1  ;;  %v3031_v60 = vpop.f32.mrf.mxu0 }
 0x14d   : > { %v4503_v26 = vadd.f32 %v2966_v23, %v1415_v4  ;;  %v1431_v23 = vadd.f32 %v4460_v21, %v876_v31  ;;  %v878_v21 = vld [vmem:[%s4893_s2 + $0xa8] sm:$0xff] }
 0x14e   : > { %v2968_v59 = vpop.f32.mrf.mxu1  ;;  %v3032_v22 = vpop.f32.mrf.mxu0 }
 0x14f   : > { %v2969_v43 = vadd.f32 %v2968_v59, %v2967_v54  ;;  %v3033_v37 = vadd.f32 %v3032_v22, %v3031_v60 }
 0x150   : > { %v2970_v10 = vpop.f32.mrf.mxu1  ;;  %v3034_v27 = vpop.f32.mrf.mxu0 }
 0x151   : > { %v4509_v57 = vadd.f32 %v2969_v43, %v1420_v13  ;;  %v4512_v41 = vadd.f32 %v3033_v37, %v4349_v9  ;;  %v1436_v37 = vadd.f32 %v4473_v46, %v877_v30  ;;  %v879_v46 = vld [vmem:[%s4893_s2 + $0xb0] sm:$0xff] }
 0x152   : > { %v2971_v35 = vpop.f32.mrf.mxu1  ;;  %v3035_v47 = vpop.f32.mrf.mxu0 }
 0x153   : > { %v2972_v42 = vadd.f32 %v2971_v35, %v2970_v10  ;;  %v3036_v58 = vadd.f32 %v3035_v47, %v3034_v27 }
 0x154   : > { %v2973_v16 = vpop.f32.mrf.mxu1  ;;  %v3037_v56 = vpop.f32.mrf.mxu0 }
 0x155   : > { %v4518_v12 = vadd.f32 %v2972_v42, %v1423_v17  ;;  %v4521_v29 = vadd.f32 %v3036_v58, %v4359_v25  ;;  %v1439_v58 = vadd.f32 %v4481_v61, %v878_v21  ;;  %v880_v61 = vld [vmem:[%s4893_s2 + $0xb8] sm:$0xff] }
 0x156   : > { %v2974_v53 = vpop.f32.mrf.mxu1  ;;  %v3038_v9 = vpop.f32.mrf.mxu0 }
 0x157   : > { %v2975_v33 = vadd.f32 %v2974_v53, %v2973_v16  ;;  %v3039_v8 = vadd.f32 %v3038_v9, %v3037_v56 }
 0x158   : > { %v2976_v62 = vpop.f32.mrf.mxu1  ;;  %v3040_v51 = vpop.f32.mrf.mxu0 }
 0x159   : > { %v4527_v19 = vadd.f32 %v2975_v33, %v1428_v24  ;;  %v4530_v15 = vadd.f32 %v3039_v8, %v4369_v20  ;;  %v1444_v8 = vadd.f32 %v4490_v11, %v879_v46  ;;  %v881_v11 = vld [vmem:[%s4893_s2 + $0xc0] sm:$0xff] }
 0x15a   : > { %v2977_v4 = vpop.f32.mrf.mxu1  ;;  %v3041_v25 = vpop.f32.mrf.mxu0 }
 0x15b   : > { %v2978_v40 = vadd.f32 %v2977_v4, %v2976_v62  ;;  %v3042_v54 = vadd.f32 %v3041_v25, %v3040_v51 }
 0x15c   : > { %v2979_v60 = vpop.f32.mrf.mxu1  ;;  %v3043_v59 = vpop.f32.mrf.mxu0 }
 0x15d   : > { %v4536_v22 = vadd.f32 %v2978_v40, %v1431_v23  ;;  %v4539_v13 = vadd.f32 %v3042_v54, %v4379_v39  ;;  %v1447_v54 = vadd.f32 %v4498_v7, %v880_v61  ;;  %v882_v7 = vld [vmem:[%s4893_s2 + $0xc8] sm:$0xff] }
 0x15e   : > { %v2980_v43 = vpop.f32.mrf.mxu1  ;;  %v3044_v20 = vpop.f32.mrf.mxu0 }
 0x15f   : > { %v2981_v36 = vadd.f32 %v2980_v43, %v2979_v60  ;;  %v3045_v10 = vadd.f32 %v3044_v20, %v3043_v59 }
 0x160   : > { %v2982_v27 = vpop.f32.mrf.mxu1  ;;  %v3046_v35 = vpop.f32.mrf.mxu0 }
 0x161   : > { %v4545_v47 = vadd.f32 %v2981_v36, %v1436_v37  ;;  %v4548_v17 = vadd.f32 %v3045_v10, %v4389_v52  ;;  %v1452_v10 = vadd.f32 %v4286_v38, %v881_v11  ;;  %v883_v38 = vld [vmem:[%s4893_s2 + $0xd0] sm:$0xff] }
 0x162   : > { %v2983_v42 = vpop.f32.mrf.mxu1  ;;  %v3047_v39 = vpop.f32.mrf.mxu0 }
 0x163   : > { %v2984_v0 = vadd.f32 %v2983_v42, %v2982_v27  ;;  %v3048_v16 = vadd.f32 %v3047_v39, %v3046_v35 }
 0x164   : > { %v2985_v56 = vpop.f32.mrf.mxu1  ;;  %v3049_v53 = vpop.f32.mrf.mxu0 }
 0x165   : > { %v4554_v9 = vadd.f32 %v2984_v0, %v1439_v58  ;;  %v4557_v24 = vadd.f32 %v3048_v16, %v4399_v48  ;;  %v1455_v16 = vadd.f32 %v4290_v2, %v882_v7  ;;  %v884_v2 = vld [vmem:[%s4893_s2 + $0xd8] sm:$0xff] }
 0x166   : > { %v2986_v33 = vpop.f32.mrf.mxu1  ;;  %v3050_v52 = vpop.f32.mrf.mxu0 }
 0x167   : > { %v2987_v31 = vadd.f32 %v2986_v33, %v2985_v56  ;;  %v3051_v62 = vadd.f32 %v3050_v52, %v3049_v53 }
 0x168   : > { %v2988_v51 = vpop.f32.mrf.mxu1  ;;  %v3052_v4 = vpop.f32.mrf.mxu0 }
 0x169   : > { %v4563_v25 = vadd.f32 %v2987_v31, %v1444_v8  ;;  %v4566_v23 = vadd.f32 %v3051_v62, %v4409_v5  ;;  %v1460_v62 = vadd.f32 %v4300_v6, %v883_v38  ;;  %v885_v6 = vld [vmem:[%s4893_s2 + $0xe0] sm:$0xff] }
 0x16a   : > { %v2989_v40 = vpop.f32.mrf.mxu1  ;;  %v3053_v48 = vpop.f32.mrf.mxu0 }
 0x16b   : > { %v2990_v30 = vadd.f32 %v2989_v40, %v2988_v51  ;;  %v3054_v60 = vadd.f32 %v3053_v48, %v3052_v4 }
 0x16c   : > { %v2991_v59 = vpop.f32.mrf.mxu1  ;;  %v3055_v43 = vpop.f32.mrf.mxu0 }
 0x16d   : > { %v4572_v20 = vadd.f32 %v2990_v30, %v1447_v54  ;;  %v4575_v37 = vadd.f32 %v3054_v60, %v4423_v63  ;;  %v1463_v60 = vadd.f32 %v4306_v49, %v884_v2  ;;  %v886_v49 = vld [vmem:[%s4893_s2 + $0xe8] sm:$0xff] }
 0x16e   : > { %v2992_v36 = vpop.f32.mrf.mxu1  ;;  %v3056_v5 = vpop.f32.mrf.mxu0 }
 0x16f   : > { %v2993_v21 = vadd.f32 %v2992_v36, %v2991_v59  ;;  %v3057_v27 = vadd.f32 %v3056_v5, %v3055_v43 }
 0x170   : > { %v2994_v35 = vpop.f32.mrf.mxu1  ;;  %v3058_v42 = vpop.f32.mrf.mxu0 }
 0x171   : > { %v4581_v39 = vadd.f32 %v2993_v21, %v1452_v10  ;;  %v4584_v58 = vadd.f32 %v3057_v27, %v4435_v3  ;;  %v1468_v27 = vadd.f32 %v4316_v28, %v885_v6  ;;  %v887_v28 = vld [vmem:[%s4893_s2 + $0xf0] sm:$0xff] }
 0x172   : > { %v2995_v0 = vpop.f32.mrf.mxu1  ;;  %v3059_v63 = vpop.f32.mrf.mxu0 }
 0x173   : > { %v2996_v46 = vadd.f32 %v2995_v0, %v2994_v35  ;;  %v3060_v56 = vadd.f32 %v3059_v63, %v3058_v42 }
 0x174   : > { %v2997_v53 = vpop.f32.mrf.mxu1  ;;  %v3061_v33 = vpop.f32.mrf.mxu0 }
 0x175   : > { %v4590_v52 = vadd.f32 %v2996_v46, %v1455_v16  ;;  %v4593_v8 = vadd.f32 %v3060_v56, %v4445_v34  ;;  %v1471_v56 = vadd.f32 %v4322_v50, %v886_v49  ;;  %v888_v50 = vld [vmem:[%s4893_s2 + $0xf8] sm:$0xff] }
 0x176   : > { %v2998_v31 = vpop.f32.mrf.mxu1  ;;  %v3062_v3 = vpop.f32.mrf.mxu0 }
 0x177   : > { %v2999_v61 = vadd.f32 %v2998_v31, %v2997_v53  ;;  %v3063_v51 = vadd.f32 %v3062_v3, %v3061_v33 }
 0x178   : > { %v3000_v4 = vpop.f32.mrf.mxu1  ;;  %v3064_v40 = vpop.f32.mrf.mxu0 }
 0x179   : > { %v4599_v48 = vadd.f32 %v2999_v61, %v1460_v62  ;;  %v4602_v54 = vadd.f32 %v3063_v51, %v4457_v32  ;;  %v1476_v51 = vadd.f32 %v4330_v18, %v887_v28 }
 0x17a   : > { %v3001_v30 = vpop.f32.mrf.mxu1  ;;  %v3065_v34 = vpop.f32.mrf.mxu0 }
 0x17b   : > { %v3002_v11 = vadd.f32 %v3001_v30, %v3000_v4  ;;  %v3066_v59 = vadd.f32 %v3065_v34, %v3064_v40 }
 0x17c   : > { %v3003_v43 = vpop.f32.mrf.mxu1  ;;  %v3067_v36 = vpop.f32.mrf.mxu0 }
 0x17d   : > { %v4608_v5 = vadd.f32 %v3002_v11, %v1463_v60  ;;  %v4611_v10 = vadd.f32 %v3066_v59, %v4467_v55  ;;  %v1479_v59 = vadd.f32 %v4334_v44, %v888_v50 }
 0x17e   : > { %v3004_v21 = vpop.f32.mrf.mxu1  ;;  %v3068_v32 = vpop.f32.mrf.mxu0 }
 0x17f   : > { %v3005_v7 = vadd.f32 %v3004_v21, %v3003_v43  ;;  %v3069_v35 = vadd.f32 %v3068_v32, %v3067_v36 }
 0x180   : > { %v3006_v42 = vpop.f32.mrf.mxu1  ;;  %v3070_v0 = vpop.f32.mrf.mxu0 }
 0x181   : > { %v4617_v63 = vadd.f32 %v3005_v7, %v1468_v27  ;;  %v4620_v16 = vadd.f32 %v3069_v35, %v4478_v45 }
 0x182   : > { %v3007_v46 = vpop.f32.mrf.mxu1  ;;  %v3071_v55 = vpop.f32.mrf.mxu0 }
 0x183   : > { %v3008_v38 = vadd.f32 %v3007_v46, %v3006_v42  ;;  %v3072_v53 = vadd.f32 %v3071_v55, %v3070_v0 }
 0x184   : > { %v3009_v33 = vpop.f32.mrf.mxu1  ;;  %v3073_v31 = vpop.f32.mrf.mxu0 }
 0x185   : > { %v4626_v3 = vadd.f32 %v3008_v38, %v1471_v56  ;;  %v4629_v62 = vadd.f32 %v3072_v53, %v4487_v14 }
 0x186   : > { %v3010_v61 = vpop.f32.mrf.mxu1  ;;  %v3074_v45 = vpop.f32.mrf.mxu0 }
 0x187   : > { %v3011_v2 = vadd.f32 %v3010_v61, %v3009_v33  ;;  %v3075_v4 = vadd.f32 %v3074_v45, %v3073_v31 }
 0x188   : > { %v3012_v40 = vpop.f32.mrf.mxu1  ;;  %v3076_v30 = vpop.f32.mrf.mxu0 }
 0x189   : > { %v4635_v34 = vadd.f32 %v3011_v2, %v1476_v51  ;;  %v4638_v60 = vadd.f32 %v3075_v4, %v4495_v1 }
 0x18a   : > { %v3013_v11 = vpop.f32.mrf.mxu1  ;;  %v3077_v14 = vpop.f32.mrf.mxu0 }
 0x18b   : > { %v3014_v6 = vadd.f32 %v3013_v11, %v3012_v40  ;;  %v3078_v43 = vadd.f32 %v3077_v14, %v3076_v30 }
 0x18c   : > { %v3079_v18 = vpop.f32.mrf.mxu0  ;;  %v3143_v36 = vpop.f32.mrf.mxu1 }
 0x18d   : > { %v4641_v21 = vadd.f32 %v3014_v6, %v1479_v59  ;;  %v4644_v32 = vadd.f32 %v3078_v43, %v4503_v26 }
 0x18e   : > { %v3080_v27 = vpop.f32.mrf.mxu0  ;;  %v3144_v7 = vpop.f32.mrf.mxu1 }
 0x18f   : > { %v3081_v35 = vadd.f32 %v3080_v27, %v3079_v18  ;;  %v3145_v49 = vadd.f32 %v3144_v7, %v3143_v36 }
 0x190   : > { %v3082_v42 = vpop.f32.mrf.mxu0  ;;  %v4646_v1 = vpop.f32.mrf.mxu1 }
 0x191   : > { %v4649_v0 = vadd.f32 %v3081_v35, %v4509_v57  ;;  %v4652_v44 = vadd.f32 %v3145_v49, %v4512_v41 }
 0x192   : > { %v3083_v46 = vpop.f32.mrf.mxu0  ;;  %v4654_v55 = vpop.f32.mrf.mxu1 }
 0x193   : > { %v3084_v56 = vadd.f32 %v3083_v46, %v3082_v42 }
 0x194   : > { %v3085_v38 = vpop.f32.mrf.mxu0  ;;  %v4656_v26 = vpop.f32.mrf.mxu1 }
 0x195   : > { %v4659_v53 = vadd.f32 %v3084_v56, %v4518_v12 }
 0x196   : > { %v3086_v28 = vpop.f32.mrf.mxu0  ;;  %v4661_v33 = vpop.f32.mrf.mxu1 }
 0x197   : > { %v3087_v31 = vadd.f32 %v3086_v28, %v3085_v38 }
 0x198   : > { %v3088_v61 = vpop.f32.mrf.mxu0  ;;  %v4663_v57 = vpop.f32.mrf.mxu1 }
 0x199   : > { %v4666_v41 = vadd.f32 %v3087_v31, %v4527_v19 }
 0x19a   : > { %v3089_v45 = vpop.f32.mrf.mxu0  ;;  %v4668_v51 = vpop.f32.mrf.mxu1 }
 0x19b   : > { %v3090_v2 = vadd.f32 %v3089_v45, %v3088_v61 }
 0x19c   : > { %v3091_v4 = vpop.f32.mrf.mxu0  ;;  %v4670_v50 = vpop.f32.mrf.mxu1 }
 0x19d   : > { %v4673_v12 = vadd.f32 %v3090_v2, %v4536_v22 }
 0x19e   : > { %v3092_v40 = vpop.f32.mrf.mxu0  ;;  %v4675_v30 = vpop.f32.mrf.mxu1 }
 0x19f   : > { %v3093_v11 = vadd.f32 %v3092_v40, %v3091_v4 }
 0x1a0   : > { %v3094_v14 = vpop.f32.mrf.mxu0  ;;  %v4677_v59 = vpop.f32.mrf.mxu1 }
 0x1a1   : > { %v4680_v19 = vadd.f32 %v3093_v11, %v4545_v47 }
 0x1a2   : > { %v3095_v6 = vpop.f32.mrf.mxu0  ;;  %v4682_v43 = vpop.f32.mrf.mxu1 }
 0x1a3   : > { %4945 = vst [vmem:[#allocation2_spill] sm:$0xff] %v4680_v19  ;;  %v3096_v18 = vadd.f32 %v3095_v6, %v3094_v14 }
 0x1a4   : > { %v3097_v36 = vpop.f32.mrf.mxu0  ;;  %v4684_v27 = vpop.f32.mrf.mxu1 }
 0x1a5   : > { %v4687_v22 = vadd.f32 %v3096_v18, %v4554_v9 }
 0x1a6   : > { %v3098_v7 = vpop.f32.mrf.mxu0  ;;  %v4689_v35 = vpop.f32.mrf.mxu1 }
 0x1a7   : > { %4946 = vst [vmem:[#allocation3_spill] sm:$0xff] %v4687_v22  ;;  %v3099_v49 = vadd.f32 %v3098_v7, %v3097_v36 }
 0x1a8   : > { %v3100_v42 = vpop.f32.mrf.mxu0  ;;  %v4691_v46 = vpop.f32.mrf.mxu1 }
 0x1a9   : > { %v4694_v47 = vadd.f32 %v3099_v49, %v4563_v25 }
 0x1aa   : > { %v3101_v56 = vpop.f32.mrf.mxu0  ;;  %v4696_v38 = vpop.f32.mrf.mxu1 }
 0x1ab   : > { %v3102_v28 = vadd.f32 %v3101_v56, %v3100_v42 }
 0x1ac   : > { %v3103_v31 = vpop.f32.mrf.mxu0  ;;  %v4698_v61 = vpop.f32.mrf.mxu1 }
 0x1ad   : > { %v4701_v9 = vadd.f32 %v3102_v28, %v4572_v20 }
 0x1ae   : > { %v3104_v45 = vpop.f32.mrf.mxu0  ;;  %v4703_v2 = vpop.f32.mrf.mxu1 }
 0x1af   : > { %4947 = vst [vmem:[#allocation4_spill] sm:$0xff] %v4701_v9  ;;  %v3105_v4 = vadd.f32 %v3104_v45, %v3103_v31 }
 0x1b0   : > { %v3106_v40 = vpop.f32.mrf.mxu0  ;;  %v4705_v11 = vpop.f32.mrf.mxu1 }
 0x1b1   : > { %v4708_v25 = vadd.f32 %v3105_v4, %v4581_v39 }
 0x1b2   : > { %v3107_v14 = vpop.f32.mrf.mxu0  ;;  %v4710_v6 = vpop.f32.mrf.mxu1 }
 0x1b3   : > { %4948 = vst [vmem:[#allocation5_spill] sm:$0xff] %v4708_v25  ;;  %v3108_v18 = vadd.f32 %v3107_v14, %v3106_v40 }
 0x1b4   : > { %v3109_v36 = vpop.f32.mrf.mxu0  ;;  %v4712_v7 = vpop.f32.mrf.mxu1 }
 0x1b5   : > { %v4715_v20 = vadd.f32 %v3108_v18, %v4590_v52 }
 0x1b6   : > { %v3110_v49 = vpop.f32.mrf.mxu0  ;;  %v4717_v42 = vpop.f32.mrf.mxu1 }
 0x1b7   : > { %4949 = vst [vmem:[#allocation6_spill] sm:$0xff] %v4715_v20  ;;  %v3111_v56 = vadd.f32 %v3110_v49, %v3109_v36 }
 0x1b8   : > { %v3112_v28 = vpop.f32.mrf.mxu0  ;;  %v4719_v31 = vpop.f32.mrf.mxu1 }
 0x1b9   : > { %v4722_v39 = vadd.f32 %v3111_v56, %v4599_v48 }
 0x1ba   : > { %v3113_v45 = vpop.f32.mrf.mxu0  ;;  %v4724_v4 = vpop.f32.mrf.mxu1 }
 0x1bb   : > { %4950 = vst [vmem:[#allocation7_spill] sm:$0xff] %v4722_v39  ;;  %v3114_v40 = vadd.f32 %v3113_v45, %v3112_v28 }
 0x1bc   : > { %v3115_v14 = vpop.f32.mrf.mxu0  ;;  %v4726_v25 = vpop.f32.mrf.mxu1 }
 0x1bd   : > { %v4729_v52 = vadd.f32 %v3114_v40, %v4608_v5 }
 0x1be   : > { %v3116_v18 = vpop.f32.mrf.mxu0  ;;  %v4731_v20 = vpop.f32.mrf.mxu1 }
 0x1bf   : > { %4951 = vst [vmem:[#allocation8_spill] sm:$0xff] %v4729_v52  ;;  %v3117_v36 = vadd.f32 %v3116_v18, %v3115_v14 }
 0x1c0   : > { %v3118_v49 = vpop.f32.mrf.mxu0  ;;  %v4733_v22 = vpop.f32.mrf.mxu1 }
 0x1c1   : > { %v4736_v48 = vadd.f32 %v3117_v36, %v4617_v63  ;;  %v3151_v63 = vadd.f32 %v4661_v33, %v4656_v26 }
 0x1c2   : > { %v3119_v56 = vpop.f32.mrf.mxu0  ;;  %v4738_v39 = vpop.f32.mrf.mxu1 }
 0x1c3   : > { %4952 = vst [vmem:[#allocation9_spill] sm:$0xff] %v4736_v48  ;;  %v3120_v28 = vadd.f32 %v3119_v56, %v3118_v49 }
 0x1c4   : > { %v3121_v45 = vpop.f32.mrf.mxu0  ;;  %v4740_v9 = vpop.f32.mrf.mxu1 }
 0x1c5   : > { %v4743_v5 = vadd.f32 %v3120_v28, %v4626_v3  ;;  %v3154_v3 = vadd.f32 %v4668_v51, %v4663_v57 }
 0x1c6   : > { %v3122_v40 = vpop.f32.mrf.mxu0  ;;  %v4745_v52 = vpop.f32.mrf.mxu1 }
 0x1c7   : > { %4953 = vst [vmem:[#allocation10_spill] sm:$0xff] %v4743_v5  ;;  %v3123_v14 = vadd.f32 %v3122_v40, %v3121_v45  ;;  %v3148_v40 = vadd.f32 %v4654_v55, %v4646_v1  ;;  %v1850_v57 = vadd.f32 %v3154_v3, %v4539_v13  ;;  %v3166_v55 = vadd.f32 %v4696_v38, %v4691_v46 }
 0x1c8   : > { %v3124_v18 = vpop.f32.mrf.mxu0  ;;  %v4747_v19 = vpop.f32.mrf.mxu1  ;;  %v3160_v46 = vadd.f32 %v4682_v43, %v4677_v59  ;;  %v3175_v59 = vadd.f32 %v4717_v42, %v4712_v7 }
 0x1c9   : > { %v4752_v36 = vadd.f32 %v3123_v14, %v4635_v34  ;;  %v1847_v34 = vadd.f32 %v3151_v63, %v4530_v15  ;;  %v3157_v15 = vadd.f32 %v4675_v30, %v4670_v50 }
 0x1ca   : > { %v3125_v49 = vpop.f32.mrf.mxu0  ;;  %v4754_v56 = vpop.f32.mrf.mxu1 }
 0x1cb   : > { %4954 = vst [vmem:[#allocation11_spill] sm:$0xff] %v4752_v36  ;;  %v3126_v28 = vadd.f32 %v3125_v49, %v3124_v18  ;;  %v3163_v49 = vadd.f32 %v4689_v35, %v4684_v27 }
 0x1cc   : > { %v4758_v5 = vpop.f32.mrf.mxu1  ;;  %v3281_v45 = vpop.f32.mrf.mxu0 }
 0x1cd   : > { %v4763_v48 = vadd.f32 %v3126_v28, %v4641_v21  ;;  %v2008_v14 = vadd.f32 %v3281_v45, %v1847_v34  ;;  %v1842_v21 = vadd.f32 %v3148_v40, %v4521_v29  ;;  %v1863_v35 = vadd.f32 %v3163_v49, %v4566_v23 }
 0x1ce   : > { %v4766_v26 = vpop.f32.mrf.mxu1  ;;  %v1999_v33 = vpop.f32.mrf.mxu0  ;;  %v1855_v40 = vadd.f32 %v3157_v15, %v4548_v17  ;;  %v3169_v23 = vadd.f32 %v4703_v2, %v4698_v61  ;;  %v1858_v61 = vadd.f32 %v3160_v46, %v4557_v24 }
 0x1cf   : > { %v2000_v36 = vadd.f32 %v1999_v33, %v4652_v44  ;;  %v2128_v3 = vmax.f32 %v2008_v14, 0.0  ;;  %v1866_v33 = vadd.f32 %v3166_v55, %v4575_v37  ;;  %v3178_v55 = vadd.f32 %v4724_v4, %v4719_v31 }
 0x1d0   : > { %v4770_v51 = vpop.f32.mrf.mxu1  ;;  %v3282_v18 = vpop.f32.mrf.mxu0  ;;  %v1879_v31 = vadd.f32 %v3175_v59, %v4602_v54 }
 0x1d1   : > { %v2011_v1 = vadd.f32 %v3282_v18, %v1850_v57  ;;  %v2126_v63 = vmax.f32 %v2000_v36, 0.0  ;;  %v2198_v17 = vmul.f32 %v2128_v3, %v2128_v3 }
 0x1d2   : > { %v4780_v44 = vpop.f32.mrf.mxu1  ;;  %v2002_v13 = vpop.f32.mrf.mxu0 }
 0x1d3   : > { %v2129_v28 = vmax.f32 %v2011_v1, 0.0  ;;  %v2003_v45 = vadd.f32 %v2002_v13, %v1842_v21  ;;  %v2196_v38 = vmul.f32 %v2126_v63, %v2126_v63 }
 0x1d4   : > { %v4787_v29 = vpop.f32.mrf.mxu1  ;;  %v3285_v27 = vpop.f32.mrf.mxu0 }
 0x1d5   : > { %v2704_v50 = vpack.c.bf16 %v2129_v28, %v2128_v3  ;;  %v2127_v30 = vmax.f32 %v2003_v45, 0.0  ;;  %v2024_v1 = vadd.f32 %v3285_v27, %v1863_v35 }
 0x1d6   : > { %v4792_v36 = vpop.f32.mrf.mxu1  ;;  %v2015_v34 = vpop.f32.mrf.mxu0 }
 0x1d7   : > { %2776 = vst [vmem:[%s4785_s8 + $0x8] sm:$0xff] %v2704_v50   ;;  %v2158_v14 = vadd.f32 %v2127_v30, %v2126_v63  ;;  %v2197_v57 = vmul.f32 %v2127_v30, %v2127_v30  ;;  %v2699_v18 = vpack.c.bf16 %v2127_v30, %v2126_v63  ;;  %v2016_v43 = vadd.f32 %v2015_v34, %v1855_v40 }
 0x1d8   : > { %v4801_v49 = vpop.f32.mrf.mxu1  ;;  %v3286_v21 = vpop.f32.mrf.mxu0  ;;  %v2199_v63 = vmul.f32 %v2129_v28, %v2129_v28  ;;  %v2132_v42 = vmax.f32 %v2024_v1, 0.0  ;;  %v1871_v40 = vadd.f32 %v3169_v23, %v4584_v58  ;;  %v1882_v1 = vadd.f32 %v3178_v55, %v4611_v10 }
 0x1d9   : > { %v2159_v15 = vadd.f32 %v2158_v14, %v2128_v3  ;;  %v2228_v13 = vadd.f32 %v2197_v57, %v2196_v38  ;;  %2700 = vst [vmem:[%s4785_s8] sm:$0xff] %v2699_v18   ;;  %v2027_v37 = vadd.f32 %v3286_v21, %v1866_v33  ;;  %v2130_v45 = vmax.f32 %v2016_v43, 0.0 }
 0x1da   : > { %v4806_v27 = vpop.f32.mrf.mxu1  ;;  %v2018_v2 = vpop.f32.mrf.mxu0  ;;  %v3172_v3 = vadd.f32 %v4710_v6, %v4705_v11  ;;  %v3181_v23 = vadd.f32 %v4731_v20, %v4726_v25 }
 0x1db   : > { %v2229_v7 = vadd.f32 %v2228_v13, %v2198_v17  ;;  %v2160_v50 = vadd.f32 %v2159_v15, %v2129_v28  ;;  %v2133_v30 = vmax.f32 %v2027_v37, 0.0  ;;  %v2019_v35 = vadd.f32 %v2018_v2, %v1858_v61 }
 0x1dc   : > { %v4811_v38 = vpop.f32.mrf.mxu1  ;;  %v3289_v4 = vpop.f32.mrf.mxu0  ;;  %v2200_v33 = vmul.f32 %v2130_v45, %v2130_v45  ;;  %v3187_v17 = vadd.f32 %v4745_v52, %v4740_v9  ;;  %v1874_v13 = vadd.f32 %v3172_v3, %v4593_v8  ;;  %v2202_v37 = vmul.f32 %v2132_v42, %v2132_v42 }
 0x1dd   : > { %v2161_v34 = vadd.f32 %v2160_v50, %v2130_v45  ;;  %v2230_v24 = vadd.f32 %v2229_v7, %v2199_v63  ;;  %v2714_v46 = vpack.c.bf16 %v2133_v30, %v2132_v42  ;;  %v2131_v14 = vmax.f32 %v2019_v35, 0.0 }
 0x1de   : > { %v4815_v57 = vpop.f32.mrf.mxu1  ;;  %v2031_v28 = vpop.f32.mrf.mxu0  ;;  %v2040_v11 = vadd.f32 %v3289_v4, %v1879_v31  ;;  %v3190_v2 = vadd.f32 %v4754_v56, %v4747_v19  ;;  %v2203_v20 = vmul.f32 %v2133_v30, %v2133_v30  ;;  %v1895_v4 = vadd.f32 %v3187_v17, %v4638_v60 }
 0x1df   : > { %v2231_v18 = vadd.f32 %v2230_v24, %v2200_v33  ;;  %2778 = vst [vmem:[%s4785_s8 + $0x18] sm:$0xff] %v2714_v46   ;;  %v2032_v6 = vadd.f32 %v2031_v28, %v1871_v40  ;;  %v2162_v43 = vadd.f32 %v2161_v34, %v2131_v14  ;;  %v2201_v54 = vmul.f32 %v2131_v14, %v2131_v14 }
 0x1e0   : > { %v2709_v59 = vpack.c.bf16 %v2131_v14, %v2130_v45  ;;  %v4819_v21 = vpop.f32.mrf.mxu1  ;;  %v3290_v58 = vpop.f32.mrf.mxu0  ;;  %v2136_v7 = vmax.f32 %v2040_v11, 0.0  ;;  %v1887_v33 = vadd.f32 %v3181_v23, %v4620_v16  ;;  %v1898_v28 = vadd.f32 %v3190_v2, %v4644_v32 }
 0x1e1   : > { %v2043_v15 = vadd.f32 %v3290_v58, %v1882_v1  ;;  %v2163_v63 = vadd.f32 %v2162_v43, %v2132_v42  ;;  %v2232_v61 = vadd.f32 %v2231_v18, %v2201_v54  ;;  %v2134_v10 = vmax.f32 %v2032_v6, 0.0 }
 0x1e2   : > { %2777 = vst [vmem:[%s4785_s8 + $0x10] sm:$0xff] %v2709_v59   ;;  %v4827_v55 = vpop.f32.mrf.mxu1  ;;  %v2034_v45 = vpop.f32.mrf.mxu0  ;;  %v3184_v42 = vadd.f32 %v4738_v39, %v4733_v22  ;;  %v3193_v60 = vadd.f32 %v4766_v26, %v4758_v5  ;;  %v3199_v1 = vadd.f32 %v4792_v36, %v4787_v29  ;;  %v2206_v54 = vmul.f32 %v2136_v7, %v2136_v7 }
 0x1e3   : > { %v2137_v50 = vmax.f32 %v2043_v15, 0.0  ;;  %v2035_v25 = vadd.f32 %v2034_v45, %v1874_v13  ;;  %v2233_v9 = vadd.f32 %v2232_v61, %v2202_v37  ;;  %v2164_v52 = vadd.f32 %v2163_v63, %v2133_v30 }
 0x1e4   : > { %v4831_v35 = vpop.f32.mrf.mxu1  ;;  %v3293_v8 = vpop.f32.mrf.mxu0  ;;  %v2204_v34 = vmul.f32 %v2134_v10, %v2134_v10  ;;  %v1890_v43 = vadd.f32 %v3184_v42, %v4629_v62  ;;  %v3202_v15 = vadd.f32 %v4806_v27, %v4801_v49  ;;  %v3196_v62 = vadd.f32 %v4780_v44, %v4770_v51 }
 0x1e5   : > { %v2724_v3 = vpack.c.bf16 %v2137_v50, %v2136_v7  ;;  %v2135_v31 = vmax.f32 %v2035_v25, 0.0  ;;  %v2165_v40 = vadd.f32 %v2164_v52, %v2134_v10  ;;  %v2234_v19 = vadd.f32 %v2233_v9, %v2203_v20 }
 0x1e6   : > { %v3210_v56 = vpop.f32.mrf.mxu1  ;;  %v2047_v24 = vpop.f32.mrf.mxu0  ;;  %v2056_v14 = vadd.f32 %v3293_v8, %v1895_v4  ;;  %v2207_v5 = vmul.f32 %v2137_v50, %v2137_v50  ;;  %v1911_v2 = vadd.f32 %v3199_v1, %v4666_v41  ;;  %v1903_v27 = vadd.f32 %v3193_v60, %v4649_v0 }
 0x1e7   : > { %2780 = vst [vmem:[%s4785_s8 + $0x28] sm:$0xff] %v2724_v3   ;;  %v2205_v30 = vmul.f32 %v2135_v31, %v2135_v31  ;;  %v2719_v46 = vpack.c.bf16 %v2135_v31, %v2134_v10  ;;  %v2235_v18 = vadd.f32 %v2234_v19, %v2204_v34  ;;  %v2166_v22 = vadd.f32 %v2165_v40, %v2135_v31 }
 0x1e8   : > { %v2048_v39 = vadd.f32 %v2047_v24, %v1887_v33  ;;  %v3212_v11 = vpop.f32.mrf.mxu1  ;;  %v3294_v6 = vpop.f32.mrf.mxu0  ;;  %v2140_v13 = vmax.f32 %v2056_v14, 0.0  ;;  %v1914_v42 = vadd.f32 %v3202_v15, %v4673_v12  ;;  %v3205_v41 = vadd.f32 %v4815_v57, %v4811_v38 }
 0x1e9   : > { %2779 = vst [vmem:[%s4785_s8 + $0x20] sm:$0xff] %v2719_v46   ;;  %v2059_v16 = vadd.f32 %v3294_v6, %v1898_v28  ;;  %v2167_v59 = vadd.f32 %v2166_v22, %v2136_v7  ;;  %v2236_v58 = vadd.f32 %v2235_v18, %v2205_v30  ;;  %v3211_v40 = vadd.f32 %v3210_v56, %v4831_v35 }
 0x1ea   : > { %v2138_v23 = vmax.f32 %v2048_v39, 0.0  ;;  %v3213_v32 = vpop.f32.mrf.mxu1  ;;  %v2050_v17 = vpop.f32.mrf.mxu0  ;;  %v1906_v0 = vadd.f32 %v3196_v62, %v4659_v53  ;;  %v2210_v19 = vmul.f32 %v2140_v13, %v2140_v13  ;;  %v3208_v56 = vadd.f32 %v4827_v55, %v4819_v21  ;;  %v4957_v62 = vld [vmem:[#allocation3_spill] sm:$0xff] }
 0x1eb   : > { %v2141_v37 = vmax.f32 %v2059_v16, 0.0  ;;  %v2051_v63 = vadd.f32 %v2050_v17, %v1890_v43  ;;  %v2237_v26 = vadd.f32 %v2236_v58, %v2206_v54  ;;  %v2168_v29 = vadd.f32 %v2167_v59, %v2137_v50  ;;  %v4955_v59 = vld [vmem:[#allocation2_spill] sm:$0xff] }
 0x1ec   : > { %v3215_v36 = vpop.f32.mrf.mxu1  ;;  %v3297_v61 = vpop.f32.mrf.mxu0  ;;  %v2208_v25 = vmul.f32 %v2138_v23, %v2138_v23  ;;  %v3214_v14 = vadd.f32 %v3213_v32, %v3212_v11  ;;  %v1927_v1 = vadd.f32 %v3211_v40, %v4694_v47  ;;  %v1919_v58 = vadd.f32 %v3205_v41, %v4955_v59  ;;  %v4958_v40 = vld [vmem:[#allocation7_spill] sm:$0xff] }
 0x1ed   : > { %v2734_v10 = vpack.c.bf16 %v2141_v37, %v2140_v13  ;;  %v2139_v45 = vmax.f32 %v2051_v63, 0.0  ;;  %v2169_v7 = vadd.f32 %v2168_v29, %v2138_v23  ;;  %v2238_v20 = vadd.f32 %v2237_v26, %v2207_v5 }
 0x1ee   : > { %v3216_v49 = vpop.f32.mrf.mxu1  ;;  %v2063_v9 = vpop.f32.mrf.mxu0  ;;  %v2072_v8 = vadd.f32 %v3297_v61, %v1911_v2  ;;  %v2211_v39 = vmul.f32 %v2141_v37, %v2141_v37 }
 0x1ef   : > { %2782 = vst [vmem:[%s4785_s8 + $0x38] sm:$0xff] %v2734_v10   ;;  %v2209_v52 = vmul.f32 %v2139_v45, %v2139_v45  ;;  %v2729_v50 = vpack.c.bf16 %v2139_v45, %v2138_v23  ;;  %v2239_v3 = vadd.f32 %v2238_v20, %v2208_v25  ;;  %v2170_v51 = vadd.f32 %v2169_v7, %v2139_v45 }
 0x1f0   : > { %v2064_v44 = vadd.f32 %v2063_v9, %v1903_v27  ;;  %v3218_v31 = vpop.f32.mrf.mxu1  ;;  %v3298_v4 = vpop.f32.mrf.mxu0  ;;  %v2144_v28 = vmax.f32 %v2072_v8, 0.0  ;;  %v3217_v47 = vadd.f32 %v3216_v49, %v3215_v36  ;;  %v1922_v10 = vadd.f32 %v3208_v56, %v4957_v62 }
 0x1f1   : > { %2781 = vst [vmem:[%s4785_s8 + $0x30] sm:$0xff] %v2729_v50   ;;  %v2075_v34 = vadd.f32 %v3298_v4, %v1914_v42  ;;  %v2171_v33 = vadd.f32 %v2170_v51, %v2140_v13  ;;  %v2240_v24 = vadd.f32 %v2239_v3, %v2209_v52  ;;  %v4956_v13 = vld [vmem:[#allocation4_spill] sm:$0xff] }
 0x1f2   : > { %v2142_v30 = vmax.f32 %v2064_v44, 0.0  ;;  %v3219_v46 = vpop.f32.mrf.mxu1  ;;  %v2066_v12 = vpop.f32.mrf.mxu0  ;;  %v2214_v45 = vmul.f32 %v2144_v28, %v2144_v28 }
 0x1f3   : > { %v2145_v18 = vmax.f32 %v2075_v34, 0.0  ;;  %v2067_v22 = vadd.f32 %v2066_v12, %v1906_v0  ;;  %v2241_v6 = vadd.f32 %v2240_v24, %v2210_v19  ;;  %v2172_v38 = vadd.f32 %v2171_v33, %v2141_v37 }
 0x1f4   : > { %v3221_v57 = vpop.f32.mrf.mxu1  ;;  %v3301_v35 = vpop.f32.mrf.mxu0  ;;  %v2212_v43 = vmul.f32 %v2142_v30, %v2142_v30  ;;  %v1930_v37 = vadd.f32 %v3214_v14, %v4956_v13  ;;  %v3220_v44 = vadd.f32 %v3219_v46, %v3218_v31 }
 0x1f5   : > { %v2744_v53 = vpack.c.bf16 %v2145_v18, %v2144_v28  ;;  %v2143_v60 = vmax.f32 %v2067_v22, 0.0  ;;  %v2173_v16 = vadd.f32 %v2172_v38, %v2142_v30  ;;  %v2242_v11 = vadd.f32 %v2241_v6, %v2211_v39 }
 0x1f6   : > { %v3222_v54 = vpop.f32.mrf.mxu1  ;;  %v2079_v23 = vpop.f32.mrf.mxu0  ;;  %v2088_v15 = vadd.f32 %v3301_v35, %v1927_v1  ;;  %v2215_v42 = vmul.f32 %v2145_v18, %v2145_v18 }
 0x1f7   : > { %2784 = vst [vmem:[%s4785_s8 + $0x48] sm:$0xff] %v2744_v53   ;;  %v2213_v32 = vmul.f32 %v2143_v60, %v2143_v60  ;;  %v2739_v17 = vpack.c.bf16 %v2143_v60, %v2142_v30  ;;  %v2243_v63 = vadd.f32 %v2242_v11, %v2212_v43  ;;  %v2174_v21 = vadd.f32 %v2173_v16, %v2143_v60  ;;  %v4959_v30 = vld [vmem:[#allocation5_spill] sm:$0xff]  ;;  %v4961_v60 = vld [vmem:[#allocation6_spill] sm:$0xff] }
 0x1f8   : > { %v2080_v55 = vadd.f32 %v2079_v23, %v1919_v58  ;;  %v3224_v5 = vpop.f32.mrf.mxu1  ;;  %v3302_v26 = vpop.f32.mrf.mxu0  ;;  %v3223_v29 = vadd.f32 %v3222_v54, %v3221_v57  ;;  %v2148_v9 = vmax.f32 %v2088_v15, 0.0  ;;  %v1935_v12 = vadd.f32 %v3217_v47, %v4959_v30  ;;  %v4962_v47 = vld [vmem:[#allocation9_spill] sm:$0xff] }
 0x1f9   : > { %2783 = vst [vmem:[%s4785_s8 + $0x40] sm:$0xff] %v2739_v17   ;;  %v2091_v61 = vadd.f32 %v3302_v26, %v1930_v37  ;;  %v2175_v2 = vadd.f32 %v2174_v21, %v2144_v28  ;;  %v2244_v7 = vadd.f32 %v2243_v63, %v2213_v32  ;;  %v1938_v1 = vadd.f32 %v3220_v44, %v4961_v60 }
 0x1fa   : > { %v2146_v25 = vmax.f32 %v2080_v55, 0.0  ;;  %v3225_v20 = vpop.f32.mrf.mxu1  ;;  %v2082_v27 = vpop.f32.mrf.mxu0  ;;  %v1943_v34 = vadd.f32 %v3223_v29, %v4958_v40  ;;  %v2218_v16 = vmul.f32 %v2148_v9, %v2148_v9 }
 0x1fb   : > { %v2149_v52 = vmax.f32 %v2091_v61, 0.0  ;;  %v3226_v50 = vadd.f32 %v3225_v20, %v3224_v5  ;;  %v2083_v8 = vadd.f32 %v2082_v27, %v1922_v10  ;;  %v2245_v3 = vadd.f32 %v2244_v7, %v2214_v45 }
 0x1fc   : > { %v2176_v51 = vadd.f32 %v2175_v2, %v2145_v18  ;;  %v3227_v36 = vpop.f32.mrf.mxu1  ;;  %v3305_v49 = vpop.f32.mrf.mxu0  ;;  %v2216_v19 = vmul.f32 %v2146_v25, %v2146_v25  ;;  %v4960_v18 = vld [vmem:[#allocation8_spill] sm:$0xff] }
 0x1fd   : > { %v2754_v4 = vpack.c.bf16 %v2149_v52, %v2148_v9  ;;  %v2147_v41 = vmax.f32 %v2083_v8, 0.0  ;;  %v2246_v33 = vadd.f32 %v2245_v3, %v2215_v42  ;;  %v2104_v39 = vadd.f32 %v3305_v49, %v1943_v34  ;;  %v4963_v42 = vld [vmem:[#allocation11_spill] sm:$0xff] }
 0x1fe   : > { %v2177_v0 = vadd.f32 %v2176_v51, %v2146_v25  ;;  %v3228_v24 = vpop.f32.mrf.mxu1  ;;  %v2095_v14 = vpop.f32.mrf.mxu0  ;;  %v1946_v6 = vadd.f32 %v3226_v50, %v4960_v18  ;;  %v2219_v15 = vmul.f32 %v2149_v52, %v2149_v52  ;;  %v4964_v51 = vld [vmem:[#allocation10_spill] sm:$0xff] }
 0x1ff   : > { %2786 = vst [vmem:[%s4785_s8 + $0x58] sm:$0xff] %v2754_v4   ;;  %v2217_v28 = vmul.f32 %v2147_v41, %v2147_v41  ;;  %v2749_v22 = vpack.c.bf16 %v2147_v41, %v2146_v25  ;;  %v2247_v38 = vadd.f32 %v2246_v33, %v2216_v19  ;;  %v2096_v46 = vadd.f32 %v2095_v14, %v1935_v12 }
 0x200   : > { %v2178_v31 = vadd.f32 %v2177_v0, %v2147_v41  ;;  %v3230_v57 = vpop.f32.mrf.mxu1  ;;  %v3306_v35 = vpop.f32.mrf.mxu0  ;;  %v3229_v56 = vadd.f32 %v3228_v24, %v3227_v36  ;;  %v2152_v23 = vmax.f32 %v2104_v39, 0.0 }
 0x201   : > { %2785 = vst [vmem:[%s4785_s8 + $0x50] sm:$0xff] %v2749_v22   ;;  %v2107_v53 = vadd.f32 %v3306_v35, %v1946_v6  ;;  %v2248_v11 = vadd.f32 %v2247_v38, %v2217_v28  ;;  %v2150_v54 = vmax.f32 %v2096_v46, 0.0 }
 0x202   : > { %v2179_v43 = vadd.f32 %v2178_v31, %v2148_v9  ;;  %v3231_v59 = vpop.f32.mrf.mxu1  ;;  %v2098_v58 = vpop.f32.mrf.mxu0  ;;  %v1951_v29 = vadd.f32 %v3229_v56, %v4962_v47  ;;  %v2222_v49 = vmul.f32 %v2152_v23, %v2152_v23 }
 0x203   : > { %v2153_v32 = vmax.f32 %v2107_v53, 0.0  ;;  %v2099_v17 = vadd.f32 %v2098_v58, %v1938_v1  ;;  %v2249_v13 = vadd.f32 %v2248_v11, %v2218_v16  ;;  %v3232_v5 = vadd.f32 %v3231_v59, %v3230_v57 }
 0x204   : > { %v2180_v37 = vadd.f32 %v2179_v43, %v2149_v52  ;;  %v3233_v63 = vpop.f32.mrf.mxu1  ;;  %v3309_v21 = vpop.f32.mrf.mxu0  ;;  %v2220_v62 = vmul.f32 %v2150_v54, %v2150_v54 }
 0x205   : > { %v2764_v55 = vpack.c.bf16 %v2153_v32, %v2152_v23  ;;  %v2151_v26 = vmax.f32 %v2099_v17, 0.0  ;;  %v2250_v10 = vadd.f32 %v2249_v13, %v2219_v15  ;;  %v1954_v36 = vadd.f32 %v3232_v5, %v4964_v51 }
 0x206   : > { %v2181_v61 = vadd.f32 %v2180_v37, %v2150_v54  ;;  %v3234_v45 = vpop.f32.mrf.mxu1  ;;  %v2111_v2 = vpop.f32.mrf.mxu0  ;;  %v2223_v24 = vmul.f32 %v2153_v32, %v2153_v32 }
 0x207   : > { %2788 = vst [vmem:[%s4785_s8 + $0x68] sm:$0xff] %v2764_v55   ;;  %v2221_v7 = vmul.f32 %v2151_v26, %v2151_v26  ;;  %v2759_v25 = vpack.c.bf16 %v2151_v26, %v2150_v54  ;;  %v3235_v20 = vadd.f32 %v3234_v45, %v3233_v63  ;;  %v2112_v27 = vadd.f32 %v2111_v2, %v1951_v29 }
 0x208   : > { %v2251_v9 = vadd.f32 %v2250_v10, %v2220_v62  ;;  %v2182_v52 = vadd.f32 %v2181_v61, %v2151_v26  ;;  %v3236_v50 = vpop.f32.mrf.mxu1  ;;  %v3310_v8 = vpop.f32.mrf.mxu0 }
 0x209   : > { %2787 = vst [vmem:[%s4785_s8 + $0x60] sm:$0xff] %v2759_v25   ;;  %v1959_v3 = vadd.f32 %v3235_v20, %v4963_v42  ;;  %v2154_v41 = vmax.f32 %v2112_v27, 0.0 }
 0x20a   : > { %v2183_v44 = vadd.f32 %v2182_v52, %v2152_v23  ;;  %v2252_v4 = vadd.f32 %v2251_v9, %v2221_v7  ;;  %v3237_v40 = vpop.f32.mrf.mxu1  ;;  %v2114_v34 = vpop.f32.mrf.mxu0 }
 0x20b   : > { %v2120_v0 = vadd.f32 %v3309_v21, %v1959_v3  ;;  %v3238_v19 = vadd.f32 %v3237_v40, %v3236_v50  ;;  %v2115_v33 = vadd.f32 %v2114_v34, %v1954_v36  ;;  %v2224_v18 = vmul.f32 %v2154_v41, %v2154_v41 }
 0x20c   : > { %v2253_v30 = vadd.f32 %v2252_v4, %v2222_v49  ;;  %v2184_v12 = vadd.f32 %v2183_v44, %v2153_v32 }
 0x20d   : > { %v1962_v14 = vadd.f32 %v3238_v19, %v4763_v48  ;;  %v2155_v28 = vmax.f32 %v2115_v33, 0.0  ;;  %v2156_v22 = vmax.f32 %v2120_v0, 0.0 }
 0x20e   : > { %v2185_v39 = vadd.f32 %v2184_v12, %v2154_v41  ;;  %v2254_v6 = vadd.f32 %v2253_v30, %v2223_v24 }
 0x20f   : > { %v2123_v38 = vadd.f32 %v3310_v8, %v1962_v14  ;;  %v2225_v31 = vmul.f32 %v2155_v28, %v2155_v28  ;;  %v2769_v46 = vpack.c.bf16 %v2155_v28, %v2154_v41  ;;  %v2226_v53 = vmul.f32 %v2156_v22, %v2156_v22 }
 0x210   : > { %v2255_v57 = vadd.f32 %v2254_v6, %v2224_v18  ;;  %v2186_v35 = vadd.f32 %v2185_v39, %v2155_v28 }
 0x211   : > { %v2157_v56 = vmax.f32 %v2123_v38, 0.0  ;;  %2789 = vst [vmem:[%s4785_s8 + $0x70] sm:$0xff] %v2769_v46  }
 0x212   : > { %v2187_v60 = vadd.f32 %v2186_v35, %v2156_v22  ;;  %v2256_v1 = vadd.f32 %v2255_v57, %v2225_v31 }
 0x213   : > { %v2227_v16 = vmul.f32 %v2157_v56, %v2157_v56  ;;  %v2774_v43 = vpack.c.bf16 %v2157_v56, %v2156_v22 }
 0x214   : > { %v2188_v48 = vadd.f32 %v2187_v60, %v2157_v56  ;;  %v2257_v11 = vadd.f32 %v2256_v1, %v2226_v53 }
 0x215   : > { %2790 = vst [vmem:[%s4785_s8 + $0x78] sm:$0xff] %v2774_v43  }
 0x216   : > { %v2189_v54 = vrot.slane %v2188_v48, 4  ;;  %v2258_v59 = vadd.f32 %v2257_v11, %v2227_v16 }
 0x218   : > { %v2190_v58 = vadd.f32 %v2189_v54, %v2188_v48  ;;  %v2259_v23 = vrot.slane %v2258_v59, 4 }
 0x21a   : > { %v2191_v32 = vrot.slane %v2190_v58, 2  ;;  %v2260_v17 = vadd.f32 %v2259_v23, %v2258_v59 }
 0x21c   : > { %v2192_v15 = vadd.f32 %v2191_v32, %v2190_v58  ;;  %v2261_v13 = vrot.slane %v2260_v17, 2 }
 0x21e   : > { %v2193_v37 = vrot.slane %v2192_v15, 1  ;;  %v2262_v63 = vadd.f32 %v2261_v13, %v2260_v17 }
 0x220   : > { %v2194_v21 = vadd.f32 %v2193_v37, %v2192_v15  ;;  %v2263_v55 = vrot.slane %v2262_v63, 1 }
 0x222   : > { %2195 = vst [vmem:[%s238_s11] sm:$0x1] %v2194_v21  ;;  %v2264_v5 = vadd.f32 %v2263_v55, %v2262_v63 }
 0x224   : > { %2265 = vst [vmem:[%s241_s14] sm:$0x1] %v2264_v5 }
 0x225 PF: > { %s16_s18 = sadd.s32 1, %s3450_s18  }
 0x226   : > { %p13_p4 = scmp.ge.s32.totalorder %s16_s18, 4  }
 0x228   :  { %15 = sbr.rel (!%p13_p4) target bundleno = 1 (0x1), region = 86 }

</bundles_post_ra>
